<compile_context>
chip_gen: v7x
topology: tpu7x:2x2x1
jax: 0.10.0
libtpu: 0.0.40
codegen_flags: <defaults>
</compile_context>

<pallas_src>
import jax
import jax.numpy as jnp
import numpy as np
from jax.experimental import pallas as pl
from jax.experimental.pallas import tpu as pltpu

# ----------------------------- configuration --------------------------------
IN_MAPS = 4        # a : routed-over "input capsule" axis
OUT_MAPS = 8       # b : routing output-capsule axis (softmax axis)
NUM_ATOMS = 4      # c : capsule vector length (squash axis)
NUM_ROUTES = 3
KH = KW = 5        # self.ker_height / self.ker_width
STRIDE = 1
PAD = 2            # 'same' 5x5 / stride 1
H = W = 16
EPS = 1e-4         # epsilon used by UpCaps.squash

NO = NUM_ATOMS * OUT_MAPS          # 32 vote channels; row index = n*OUT_MAPS + o
NK = KH * KW                       # 25 taps

# Wide-grid layout: padded width WIDE on the lane axis so each tap (kh, kw)
# becomes the flat lane shift kh*WIDE + kw of the flattened padded input.
WIDE = 32                          # padded row width (>= W + KW - 1, lane friendly)
ROWS_PAD = 24                      # padded rows   (>= H + KH - 1, 24*32 = 6 lane tiles)
LPAD = ROWS_PAD * WIDE             # 768 = 6 * 128  -> unmasked input loads
LW = H * WIDE                      # 512 = 4 * 128  -> lane-dense compute & stores
SHIFTS = tuple(kh * WIDE + kw for kh in range(KH) for kw in range(KW))


# ------------------------------ fused kernel --------------------------------
def upcaps_kernel(x_ref, w_ref, out_ref):
    """Fused capsule voting (im2col + MXU matmul) + dynamic routing.

    x_ref  : (IN_MAPS, LPAD)   zero-padded maps, spatial flattened (row stride WIDE).
    w_ref  : (IN_MAPS, NO, NK) voting weights, row c = n*OUT_MAPS + o, col = kh*KW+kw.
    out_ref: (OUT_MAPS, NUM_ATOMS, LW) routed capsules on the wide grid.
    """
    x = x_ref[...]                                             # (I, LPAD) ~ 6 vregs
    inv_b = 1.0 / OUT_MAPS

    # ---------------- voting: per-map im2col + MXU matmul --------------------
    votes = []                                                 # per map: (C, B, LW)
    for i in range(IN_MAPS):
        # 25 flat lane-shifted windows -> (NK, LW) patch matrix (cheap rotates)
        rows = [x[i:i + 1, s:s + LW] for s in SHIFTS]
        patches = jnp.concatenate(rows, axis=0)                # (NK, LW)
        v = jnp.dot(w_ref[i], patches,
                    preferred_element_type=jnp.float32)        # (NO, LW) on the MXU
        # (NO, LW) -> (NUM_ATOMS, OUT_MAPS, LW): minor split factor == 8 -> free
        votes.append(v.reshape(NUM_ATOMS, OUT_MAPS, LW))

    # ------------------------------ routing ----------------------------------
    def squash(p):                                             # p: (C, B, L), over atoms
        sq = jnp.sum(p * p, axis=0, keepdims=True) + EPS       # (1, B, L)
        norm = jnp.sqrt(sq)
        return (sq * p) * pl.reciprocal((1.0 + sq) * norm + EPS)

    def weighted_preds(route):                                 # route: list of (1, B, L)
        p = votes[0] * route[0]
        for i in range(1, IN_MAPS):
            p = p + votes[i] * route[i]
        return p                                               # (C, B, L)

    # iteration 0: logits == 0  =>  softmax over out_maps == 1/OUT_MAPS
    p0 = votes[0]
    for i in range(1, IN_MAPS):
        p0 = p0 + votes[i]
    preds = squash(p0 * inv_b)                                 # (C, B, L)

    logits = None
    if NUM_ROUTES > 1:
        # logits_i = route(=1/B) + agreement_i  (agreement = sum over atoms)
        logits = [jnp.sum(votes[i] * preds, axis=0, keepdims=True) + inv_b
                  for i in range(IN_MAPS)]                     # each (1, B, L)

    for it in range(1, NUM_ROUTES):                            # unrolled (2 iterations)
        exps = [jnp.exp(l) for l in logits]                    # (1, B, L)
        route = [e * pl.reciprocal(jnp.sum(e, axis=1, keepdims=True))   # softmax over B
                 for e in exps]
        preds = squash(weighted_preds(route))
        if it < NUM_ROUTES - 1:                                # last agreement is unused
            logits = [route[i] + jnp.sum(votes[i] * preds, axis=0, keepdims=True)
                      for i in range(IN_MAPS)]

    # -------- emit (OUT_MAPS, NUM_ATOMS, LW): C/B swap via 4 strided stores ---
    for c in range(NUM_ATOMS):
        out_ref[:, c:c + 1, :] = preds[c][:, None, :]


def upcaps_fused(xflat, wmat):
    return pl.pallas_call(
        upcaps_kernel,
        out_shape=jax.ShapeDtypeStruct((OUT_MAPS, NUM_ATOMS, LW), jnp.float32),
        grid=(1,),
        in_specs=[
            pl.BlockSpec((IN_MAPS, LPAD), lambda i: (0, 0)),
            pl.BlockSpec((IN_MAPS, NO, NK), lambda i: (0, 0, 0)),
        ],
        out_specs=pl.BlockSpec((OUT_MAPS, NUM_ATOMS, LW), lambda i: (0, 0, 0)),
        compiler_params=pltpu.CompilerParams(
            dimension_semantics=("arbitrary",)),
    )(xflat, wmat)


# ------------------------------ forward wrapper ------------------------------
@jax.jit
def upcaps_forward(x, weights):
    """x: (1, in_maps, H, W) float32 (NCHW, batch must be 1).
    weights: (5, 5, in_maps, num_atoms, out_maps) float32.
    Returns preds: (out_maps, num_atoms, H, W)."""
    x0 = x[0].astype(jnp.float32)                                   # (I, H, W)

    # zero-pad into the wide flat grid (offset PAD, row stride WIDE)
    xw = jnp.zeros((IN_MAPS, ROWS_PAD, WIDE), jnp.float32)
    xw = xw.at[:, PAD:PAD + H, PAD:PAD + W].set(x0)
    xflat = xw.reshape(IN_MAPS, LPAD)                               # free reshape

    # weights (5,5,I,N,O) -> (I, N*O, 25); row index n*OUT_MAPS + o, col kh*KW+kw
    wmat = jnp.transpose(weights, (2, 3, 4, 0, 1)).reshape(
        IN_MAPS, NO, NK).astype(jnp.float32)

    preds_wide = upcaps_fused(xflat, wmat)                          # (O, N, LW)
    # drop the wide-grid padding columns: j = h*WIDE + w, keep w < W
    return preds_wide.reshape(OUT_MAPS, NUM_ATOMS, H, WIDE)[:, :, :, :W]


# ------------------------------ pure-JAX reference ---------------------------
def upcaps_reference(x, weights):
    x0 = x[0].astype(jnp.float32)
    xp = jnp.pad(x0, ((0, 0), (PAD, PAD), (PAD, PAD)))
    patches = jnp.stack([xp[:, kh:kh + H, kw:kw + W]
                         for kh in range(KH) for kw in range(KW)], axis=-1)  # (I,H,W,25)
    w_r = jnp.transpose(weights, (2, 0, 1, 3, 4)).reshape(
        IN_MAPS, KH * KW, NUM_ATOMS, OUT_MAPS)
    votes = jnp.einsum('ihwk,ikno->ihwon', patches, w_r)            # mat_conv_II out (I,H,W,O,N)
    votes = jnp.transpose(votes, (0, 3, 4, 1, 2))                   # permute(0,3,4,1,2)
    a, b, c, d, e = votes.shape
    logits = jnp.zeros((a, b, d, e), jnp.float32)
    preds = None
    for _ in range(NUM_ROUTES):
        exps = jnp.exp(logits)
        sums = exps.sum(axis=1, keepdims=True)
        logits = exps / sums
        preds = jnp.einsum('abcde,abde->bcde', votes, logits)
        sq = (preds ** 2).sum(axis=1, keepdims=True) + EPS
        norm = jnp.sqrt(sq)
        preds = (sq * preds) / ((1.0 + sq) * norm + EPS)
        logits = logits + jnp.einsum('abcde,bcde->abde', votes, preds)
    return preds


# ----------------------------------- main ------------------------------------
if __name__ == "__main__":
    key = jax.random.PRNGKey(0)
    kx, kw = jax.random.split(key)
    x = jax.random.normal(kx, (1, IN_MAPS, H, W), dtype=jnp.float32)
    # deterministic stand-in for torch.randn(5, 5, in_maps, num_atoms, out_maps)
    weights = jax.random.normal(
        kw, (KH, KW, IN_MAPS, NUM_ATOMS, OUT_MAPS), dtype=jnp.float32)

    out = jax.block_until_ready(upcaps_forward(x, weights))
    assert out.shape == (OUT_MAPS, NUM_ATOMS, H, W)
    assert bool(jnp.all(jnp.isfinite(out)))

    ref = jax.block_until_ready(upcaps_reference(x, weights))
    np.testing.assert_allclose(np.asarray(out), np.asarray(ref),
                               rtol=5e-3, atol=5e-3)
    print("KERNEL_OK")
</pallas_src>

<mosaic_0001>
module attributes {stable_mosaic.version = 11 : i64} {
  func.func @upcaps_kernel(%arg0: i32, %arg1: memref<4x768xf32, #tpu.memory_space<vmem>>, %arg2: memref<4x32x25xf32, #tpu.memory_space<vmem>>, %arg3: memref<8x4x512xf32, #tpu.memory_space<vmem>>) attributes {dimension_semantics = [#tpu.dimension_semantics<arbitrary>], iteration_bounds = array<i64: 1>, scalar_prefetch = 0 : i64, scratch_operands = 0 : i64, tpu.core_type = #tpu.core_type<tc>, window_params = [{pipeline_mode = #tpu.pipeline_mode<synchronous>, transform_indices = @transform_0, window_bounds = array<i64: 4, 768>}, {pipeline_mode = #tpu.pipeline_mode<synchronous>, transform_indices = @transform_1, window_bounds = array<i64: 4, 32, 25>}, {pipeline_mode = #tpu.pipeline_mode<synchronous>, transform_indices = @transform_2, window_bounds = array<i64: 8, 4, 512>}]} {
    %c0 = arith.constant 0 : index
    %c0_0 = arith.constant 0 : index
    %0 = vector.load %arg1[%c0, %c0_0] : memref<4x768xf32, #tpu.memory_space<vmem>>, vector<4x768xf32>
    %1 = vector.extract_strided_slice %0 {offsets = [0, 0], sizes = [1, 512], strides = [1, 1]} : vector<4x768xf32> to vector<1x512xf32>
    %2 = vector.extract_strided_slice %0 {offsets = [0, 1], sizes = [1, 512], strides = [1, 1]} : vector<4x768xf32> to vector<1x512xf32>
    %3 = vector.extract_strided_slice %0 {offsets = [0, 2], sizes = [1, 512], strides = [1, 1]} : vector<4x768xf32> to vector<1x512xf32>
    %4 = vector.extract_strided_slice %0 {offsets = [0, 3], sizes = [1, 512], strides = [1, 1]} : vector<4x768xf32> to vector<1x512xf32>
    %5 = vector.extract_strided_slice %0 {offsets = [0, 4], sizes = [1, 512], strides = [1, 1]} : vector<4x768xf32> to vector<1x512xf32>
    %6 = vector.extract_strided_slice %0 {offsets = [0, 32], sizes = [1, 512], strides = [1, 1]} : vector<4x768xf32> to vector<1x512xf32>
    %7 = vector.extract_strided_slice %0 {offsets = [0, 33], sizes = [1, 512], strides = [1, 1]} : vector<4x768xf32> to vector<1x512xf32>
    %8 = vector.extract_strided_slice %0 {offsets = [0, 34], sizes = [1, 512], strides = [1, 1]} : vector<4x768xf32> to vector<1x512xf32>
    %9 = vector.extract_strided_slice %0 {offsets = [0, 35], sizes = [1, 512], strides = [1, 1]} : vector<4x768xf32> to vector<1x512xf32>
    %10 = vector.extract_strided_slice %0 {offsets = [0, 36], sizes = [1, 512], strides = [1, 1]} : vector<4x768xf32> to vector<1x512xf32>
    %11 = vector.extract_strided_slice %0 {offsets = [0, 64], sizes = [1, 512], strides = [1, 1]} : vector<4x768xf32> to vector<1x512xf32>
    %12 = vector.extract_strided_slice %0 {offsets = [0, 65], sizes = [1, 512], strides = [1, 1]} : vector<4x768xf32> to vector<1x512xf32>
    %13 = vector.extract_strided_slice %0 {offsets = [0, 66], sizes = [1, 512], strides = [1, 1]} : vector<4x768xf32> to vector<1x512xf32>
    %14 = vector.extract_strided_slice %0 {offsets = [0, 67], sizes = [1, 512], strides = [1, 1]} : vector<4x768xf32> to vector<1x512xf32>
    %15 = vector.extract_strided_slice %0 {offsets = [0, 68], sizes = [1, 512], strides = [1, 1]} : vector<4x768xf32> to vector<1x512xf32>
    %16 = vector.extract_strided_slice %0 {offsets = [0, 96], sizes = [1, 512], strides = [1, 1]} : vector<4x768xf32> to vector<1x512xf32>
    %17 = vector.extract_strided_slice %0 {offsets = [0, 97], sizes = [1, 512], strides = [1, 1]} : vector<4x768xf32> to vector<1x512xf32>
    %18 = vector.extract_strided_slice %0 {offsets = [0, 98], sizes = [1, 512], strides = [1, 1]} : vector<4x768xf32> to vector<1x512xf32>
    %19 = vector.extract_strided_slice %0 {offsets = [0, 99], sizes = [1, 512], strides = [1, 1]} : vector<4x768xf32> to vector<1x512xf32>
    %20 = vector.extract_strided_slice %0 {offsets = [0, 100], sizes = [1, 512], strides = [1, 1]} : vector<4x768xf32> to vector<1x512xf32>
    %21 = vector.extract_strided_slice %0 {offsets = [0, 128], sizes = [1, 512], strides = [1, 1]} : vector<4x768xf32> to vector<1x512xf32>
    %22 = vector.extract_strided_slice %0 {offsets = [0, 129], sizes = [1, 512], strides = [1, 1]} : vector<4x768xf32> to vector<1x512xf32>
    %23 = vector.extract_strided_slice %0 {offsets = [0, 130], sizes = [1, 512], strides = [1, 1]} : vector<4x768xf32> to vector<1x512xf32>
    %24 = vector.extract_strided_slice %0 {offsets = [0, 131], sizes = [1, 512], strides = [1, 1]} : vector<4x768xf32> to vector<1x512xf32>
    %25 = vector.extract_strided_slice %0 {offsets = [0, 132], sizes = [1, 512], strides = [1, 1]} : vector<4x768xf32> to vector<1x512xf32>
    %26 = tpu.concatenate %1, %2, %3, %4, %5, %6, %7, %8, %9, %10, %11, %12, %13, %14, %15, %16 in 0 : vector<1x512xf32>, vector<1x512xf32>, vector<1x512xf32>, vector<1x512xf32>, vector<1x512xf32>, vector<1x512xf32>, vector<1x512xf32>, vector<1x512xf32>, vector<1x512xf32>, vector<1x512xf32>, vector<1x512xf32>, vector<1x512xf32>, vector<1x512xf32>, vector<1x512xf32>, vector<1x512xf32>, vector<1x512xf32> -> vector<16x512xf32>
    %27 = tpu.concatenate %17, %18, %19, %20, %21, %22, %23, %24, %25 in 0 : vector<1x512xf32>, vector<1x512xf32>, vector<1x512xf32>, vector<1x512xf32>, vector<1x512xf32>, vector<1x512xf32>, vector<1x512xf32>, vector<1x512xf32>, vector<1x512xf32> -> vector<9x512xf32>
    %28 = tpu.concatenate %26, %27 in 0 : vector<16x512xf32>, vector<9x512xf32> -> vector<25x512xf32>
    %c0_1 = arith.constant 0 : index
    %c0_2 = arith.constant 0 : index
    %c0_3 = arith.constant 0 : index
    %29 = vector.load %arg2[%c0_1, %c0_2, %c0_3] : memref<4x32x25xf32, #tpu.memory_space<vmem>>, vector<1x32x25xf32>
    %30 = vector.shape_cast %29 : vector<1x32x25xf32> to vector<32x25xf32>
    %cst = arith.constant dense<0.000000e+00> : vector<32x512xf32>
    %31 = tpu.matmul %30, %28, %cst {dimension_numbers = #tpu.dot_dimension_numbers<[1], [0], [0], [1], [0, 0, 1, 1], [], []>} : vector<32x25xf32>, vector<25x512xf32>, vector<32x512xf32> -> vector<32x512xf32>
    %32 = vector.shape_cast %31 : vector<32x512xf32> to vector<4x8x512xf32>
    %33 = vector.extract_strided_slice %0 {offsets = [1, 0], sizes = [1, 512], strides = [1, 1]} : vector<4x768xf32> to vector<1x512xf32>
    %34 = vector.extract_strided_slice %0 {offsets = [1, 1], sizes = [1, 512], strides = [1, 1]} : vector<4x768xf32> to vector<1x512xf32>
    %35 = vector.extract_strided_slice %0 {offsets = [1, 2], sizes = [1, 512], strides = [1, 1]} : vector<4x768xf32> to vector<1x512xf32>
    %36 = vector.extract_strided_slice %0 {offsets = [1, 3], sizes = [1, 512], strides = [1, 1]} : vector<4x768xf32> to vector<1x512xf32>
    %37 = vector.extract_strided_slice %0 {offsets = [1, 4], sizes = [1, 512], strides = [1, 1]} : vector<4x768xf32> to vector<1x512xf32>
    %38 = vector.extract_strided_slice %0 {offsets = [1, 32], sizes = [1, 512], strides = [1, 1]} : vector<4x768xf32> to vector<1x512xf32>
    %39 = vector.extract_strided_slice %0 {offsets = [1, 33], sizes = [1, 512], strides = [1, 1]} : vector<4x768xf32> to vector<1x512xf32>
    %40 = vector.extract_strided_slice %0 {offsets = [1, 34], sizes = [1, 512], strides = [1, 1]} : vector<4x768xf32> to vector<1x512xf32>
    %41 = vector.extract_strided_slice %0 {offsets = [1, 35], sizes = [1, 512], strides = [1, 1]} : vector<4x768xf32> to vector<1x512xf32>
    %42 = vector.extract_strided_slice %0 {offsets = [1, 36], sizes = [1, 512], strides = [1, 1]} : vector<4x768xf32> to vector<1x512xf32>
    %43 = vector.extract_strided_slice %0 {offsets = [1, 64], sizes = [1, 512], strides = [1, 1]} : vector<4x768xf32> to vector<1x512xf32>
    %44 = vector.extract_strided_slice %0 {offsets = [1, 65], sizes = [1, 512], strides = [1, 1]} : vector<4x768xf32> to vector<1x512xf32>
    %45 = vector.extract_strided_slice %0 {offsets = [1, 66], sizes = [1, 512], strides = [1, 1]} : vector<4x768xf32> to vector<1x512xf32>
    %46 = vector.extract_strided_slice %0 {offsets = [1, 67], sizes = [1, 512], strides = [1, 1]} : vector<4x768xf32> to vector<1x512xf32>
    %47 = vector.extract_strided_slice %0 {offsets = [1, 68], sizes = [1, 512], strides = [1, 1]} : vector<4x768xf32> to vector<1x512xf32>
    %48 = vector.extract_strided_slice %0 {offsets = [1, 96], sizes = [1, 512], strides = [1, 1]} : vector<4x768xf32> to vector<1x512xf32>
    %49 = vector.extract_strided_slice %0 {offsets = [1, 97], sizes = [1, 512], strides = [1, 1]} : vector<4x768xf32> to vector<1x512xf32>
    %50 = vector.extract_strided_slice %0 {offsets = [1, 98], sizes = [1, 512], strides = [1, 1]} : vector<4x768xf32> to vector<1x512xf32>
    %51 = vector.extract_strided_slice %0 {offsets = [1, 99], sizes = [1, 512], strides = [1, 1]} : vector<4x768xf32> to vector<1x512xf32>
    %52 = vector.extract_strided_slice %0 {offsets = [1, 100], sizes = [1, 512], strides = [1, 1]} : vector<4x768xf32> to vector<1x512xf32>
    %53 = vector.extract_strided_slice %0 {offsets = [1, 128], sizes = [1, 512], strides = [1, 1]} : vector<4x768xf32> to vector<1x512xf32>
    %54 = vector.extract_strided_slice %0 {offsets = [1, 129], sizes = [1, 512], strides = [1, 1]} : vector<4x768xf32> to vector<1x512xf32>
    %55 = vector.extract_strided_slice %0 {offsets = [1, 130], sizes = [1, 512], strides = [1, 1]} : vector<4x768xf32> to vector<1x512xf32>
    %56 = vector.extract_strided_slice %0 {offsets = [1, 131], sizes = [1, 512], strides = [1, 1]} : vector<4x768xf32> to vector<1x512xf32>
    %57 = vector.extract_strided_slice %0 {offsets = [1, 132], sizes = [1, 512], strides = [1, 1]} : vector<4x768xf32> to vector<1x512xf32>
    %58 = tpu.concatenate %33, %34, %35, %36, %37, %38, %39, %40, %41, %42, %43, %44, %45, %46, %47, %48 in 0 : vector<1x512xf32>, vector<1x512xf32>, vector<1x512xf32>, vector<1x512xf32>, vector<1x512xf32>, vector<1x512xf32>, vector<1x512xf32>, vector<1x512xf32>, vector<1x512xf32>, vector<1x512xf32>, vector<1x512xf32>, vector<1x512xf32>, vector<1x512xf32>, vector<1x512xf32>, vector<1x512xf32>, vector<1x512xf32> -> vector<16x512xf32>
    %59 = tpu.concatenate %49, %50, %51, %52, %53, %54, %55, %56, %57 in 0 : vector<1x512xf32>, vector<1x512xf32>, vector<1x512xf32>, vector<1x512xf32>, vector<1x512xf32>, vector<1x512xf32>, vector<1x512xf32>, vector<1x512xf32>, vector<1x512xf32> -> vector<9x512xf32>
    %60 = tpu.concatenate %58, %59 in 0 : vector<16x512xf32>, vector<9x512xf32> -> vector<25x512xf32>
    %c1 = arith.constant 1 : index
    %c0_4 = arith.constant 0 : index
    %c0_5 = arith.constant 0 : index
    %61 = vector.load %arg2[%c1, %c0_4, %c0_5] : memref<4x32x25xf32, #tpu.memory_space<vmem>>, vector<1x32x25xf32>
    %62 = vector.shape_cast %61 : vector<1x32x25xf32> to vector<32x25xf32>
    %cst_6 = arith.constant dense<0.000000e+00> : vector<32x512xf32>
    %63 = tpu.matmul %62, %60, %cst_6 {dimension_numbers = #tpu.dot_dimension_numbers<[1], [0], [0], [1], [0, 0, 1, 1], [], []>} : vector<32x25xf32>, vector<25x512xf32>, vector<32x512xf32> -> vector<32x512xf32>
    %64 = vector.shape_cast %63 : vector<32x512xf32> to vector<4x8x512xf32>
    %65 = vector.extract_strided_slice %0 {offsets = [2, 0], sizes = [1, 512], strides = [1, 1]} : vector<4x768xf32> to vector<1x512xf32>
    %66 = vector.extract_strided_slice %0 {offsets = [2, 1], sizes = [1, 512], strides = [1, 1]} : vector<4x768xf32> to vector<1x512xf32>
    %67 = vector.extract_strided_slice %0 {offsets = [2, 2], sizes = [1, 512], strides = [1, 1]} : vector<4x768xf32> to vector<1x512xf32>
    %68 = vector.extract_strided_slice %0 {offsets = [2, 3], sizes = [1, 512], strides = [1, 1]} : vector<4x768xf32> to vector<1x512xf32>
    %69 = vector.extract_strided_slice %0 {offsets = [2, 4], sizes = [1, 512], strides = [1, 1]} : vector<4x768xf32> to vector<1x512xf32>
    %70 = vector.extract_strided_slice %0 {offsets = [2, 32], sizes = [1, 512], strides = [1, 1]} : vector<4x768xf32> to vector<1x512xf32>
    %71 = vector.extract_strided_slice %0 {offsets = [2, 33], sizes = [1, 512], strides = [1, 1]} : vector<4x768xf32> to vector<1x512xf32>
    %72 = vector.extract_strided_slice %0 {offsets = [2, 34], sizes = [1, 512], strides = [1, 1]} : vector<4x768xf32> to vector<1x512xf32>
    %73 = vector.extract_strided_slice %0 {offsets = [2, 35], sizes = [1, 512], strides = [1, 1]} : vector<4x768xf32> to vector<1x512xf32>
    %74 = vector.extract_strided_slice %0 {offsets = [2, 36], sizes = [1, 512], strides = [1, 1]} : vector<4x768xf32> to vector<1x512xf32>
    %75 = vector.extract_strided_slice %0 {offsets = [2, 64], sizes = [1, 512], strides = [1, 1]} : vector<4x768xf32> to vector<1x512xf32>
    %76 = vector.extract_strided_slice %0 {offsets = [2, 65], sizes = [1, 512], strides = [1, 1]} : vector<4x768xf32> to vector<1x512xf32>
    %77 = vector.extract_strided_slice %0 {offsets = [2, 66], sizes = [1, 512], strides = [1, 1]} : vector<4x768xf32> to vector<1x512xf32>
    %78 = vector.extract_strided_slice %0 {offsets = [2, 67], sizes = [1, 512], strides = [1, 1]} : vector<4x768xf32> to vector<1x512xf32>
    %79 = vector.extract_strided_slice %0 {offsets = [2, 68], sizes = [1, 512], strides = [1, 1]} : vector<4x768xf32> to vector<1x512xf32>
    %80 = vector.extract_strided_slice %0 {offsets = [2, 96], sizes = [1, 512], strides = [1, 1]} : vector<4x768xf32> to vector<1x512xf32>
    %81 = vector.extract_strided_slice %0 {offsets = [2, 97], sizes = [1, 512], strides = [1, 1]} : vector<4x768xf32> to vector<1x512xf32>
    %82 = vector.extract_strided_slice %0 {offsets = [2, 98], sizes = [1, 512], strides = [1, 1]} : vector<4x768xf32> to vector<1x512xf32>
    %83 = vector.extract_strided_slice %0 {offsets = [2, 99], sizes = [1, 512], strides = [1, 1]} : vector<4x768xf32> to vector<1x512xf32>
    %84 = vector.extract_strided_slice %0 {offsets = [2, 100], sizes = [1, 512], strides = [1, 1]} : vector<4x768xf32> to vector<1x512xf32>
    %85 = vector.extract_strided_slice %0 {offsets = [2, 128], sizes = [1, 512], strides = [1, 1]} : vector<4x768xf32> to vector<1x512xf32>
    %86 = vector.extract_strided_slice %0 {offsets = [2, 129], sizes = [1, 512], strides = [1, 1]} : vector<4x768xf32> to vector<1x512xf32>
    %87 = vector.extract_strided_slice %0 {offsets = [2, 130], sizes = [1, 512], strides = [1, 1]} : vector<4x768xf32> to vector<1x512xf32>
    %88 = vector.extract_strided_slice %0 {offsets = [2, 131], sizes = [1, 512], strides = [1, 1]} : vector<4x768xf32> to vector<1x512xf32>
    %89 = vector.extract_strided_slice %0 {offsets = [2, 132], sizes = [1, 512], strides = [1, 1]} : vector<4x768xf32> to vector<1x512xf32>
    %90 = tpu.concatenate %65, %66, %67, %68, %69, %70, %71, %72, %73, %74, %75, %76, %77, %78, %79, %80 in 0 : vector<1x512xf32>, vector<1x512xf32>, vector<1x512xf32>, vector<1x512xf32>, vector<1x512xf32>, vector<1x512xf32>, vector<1x512xf32>, vector<1x512xf32>, vector<1x512xf32>, vector<1x512xf32>, vector<1x512xf32>, vector<1x512xf32>, vector<1x512xf32>, vector<1x512xf32>, vector<1x512xf32>, vector<1x512xf32> -> vector<16x512xf32>
    %91 = tpu.concatenate %81, %82, %83, %84, %85, %86, %87, %88, %89 in 0 : vector<1x512xf32>, vector<1x512xf32>, vector<1x512xf32>, vector<1x512xf32>, vector<1x512xf32>, vector<1x512xf32>, vector<1x512xf32>, vector<1x512xf32>, vector<1x512xf32> -> vector<9x512xf32>
    %92 = tpu.concatenate %90, %91 in 0 : vector<16x512xf32>, vector<9x512xf32> -> vector<25x512xf32>
    %c2 = arith.constant 2 : index
    %c0_7 = arith.constant 0 : index
    %c0_8 = arith.constant 0 : index
    %93 = vector.load %arg2[%c2, %c0_7, %c0_8] : memref<4x32x25xf32, #tpu.memory_space<vmem>>, vector<1x32x25xf32>
    %94 = vector.shape_cast %93 : vector<1x32x25xf32> to vector<32x25xf32>
    %cst_9 = arith.constant dense<0.000000e+00> : vector<32x512xf32>
    %95 = tpu.matmul %94, %92, %cst_9 {dimension_numbers = #tpu.dot_dimension_numbers<[1], [0], [0], [1], [0, 0, 1, 1], [], []>} : vector<32x25xf32>, vector<25x512xf32>, vector<32x512xf32> -> vector<32x512xf32>
    %96 = vector.shape_cast %95 : vector<32x512xf32> to vector<4x8x512xf32>
    %97 = vector.extract_strided_slice %0 {offsets = [3, 0], sizes = [1, 512], strides = [1, 1]} : vector<4x768xf32> to vector<1x512xf32>
    %98 = vector.extract_strided_slice %0 {offsets = [3, 1], sizes = [1, 512], strides = [1, 1]} : vector<4x768xf32> to vector<1x512xf32>
    %99 = vector.extract_strided_slice %0 {offsets = [3, 2], sizes = [1, 512], strides = [1, 1]} : vector<4x768xf32> to vector<1x512xf32>
    %100 = vector.extract_strided_slice %0 {offsets = [3, 3], sizes = [1, 512], strides = [1, 1]} : vector<4x768xf32> to vector<1x512xf32>
    %101 = vector.extract_strided_slice %0 {offsets = [3, 4], sizes = [1, 512], strides = [1, 1]} : vector<4x768xf32> to vector<1x512xf32>
    %102 = vector.extract_strided_slice %0 {offsets = [3, 32], sizes = [1, 512], strides = [1, 1]} : vector<4x768xf32> to vector<1x512xf32>
    %103 = vector.extract_strided_slice %0 {offsets = [3, 33], sizes = [1, 512], strides = [1, 1]} : vector<4x768xf32> to vector<1x512xf32>
    %104 = vector.extract_strided_slice %0 {offsets = [3, 34], sizes = [1, 512], strides = [1, 1]} : vector<4x768xf32> to vector<1x512xf32>
    %105 = vector.extract_strided_slice %0 {offsets = [3, 35], sizes = [1, 512], strides = [1, 1]} : vector<4x768xf32> to vector<1x512xf32>
    %106 = vector.extract_strided_slice %0 {offsets = [3, 36], sizes = [1, 512], strides = [1, 1]} : vector<4x768xf32> to vector<1x512xf32>
    %107 = vector.extract_strided_slice %0 {offsets = [3, 64], sizes = [1, 512], strides = [1, 1]} : vector<4x768xf32> to vector<1x512xf32>
    %108 = vector.extract_strided_slice %0 {offsets = [3, 65], sizes = [1, 512], strides = [1, 1]} : vector<4x768xf32> to vector<1x512xf32>
    %109 = vector.extract_strided_slice %0 {offsets = [3, 66], sizes = [1, 512], strides = [1, 1]} : vector<4x768xf32> to vector<1x512xf32>
    %110 = vector.extract_strided_slice %0 {offsets = [3, 67], sizes = [1, 512], strides = [1, 1]} : vector<4x768xf32> to vector<1x512xf32>
    %111 = vector.extract_strided_slice %0 {offsets = [3, 68], sizes = [1, 512], strides = [1, 1]} : vector<4x768xf32> to vector<1x512xf32>
    %112 = vector.extract_strided_slice %0 {offsets = [3, 96], sizes = [1, 512], strides = [1, 1]} : vector<4x768xf32> to vector<1x512xf32>
    %113 = vector.extract_strided_slice %0 {offsets = [3, 97], sizes = [1, 512], strides = [1, 1]} : vector<4x768xf32> to vector<1x512xf32>
    %114 = vector.extract_strided_slice %0 {offsets = [3, 98], sizes = [1, 512], strides = [1, 1]} : vector<4x768xf32> to vector<1x512xf32>
    %115 = vector.extract_strided_slice %0 {offsets = [3, 99], sizes = [1, 512], strides = [1, 1]} : vector<4x768xf32> to vector<1x512xf32>
    %116 = vector.extract_strided_slice %0 {offsets = [3, 100], sizes = [1, 512], strides = [1, 1]} : vector<4x768xf32> to vector<1x512xf32>
    %117 = vector.extract_strided_slice %0 {offsets = [3, 128], sizes = [1, 512], strides = [1, 1]} : vector<4x768xf32> to vector<1x512xf32>
    %118 = vector.extract_strided_slice %0 {offsets = [3, 129], sizes = [1, 512], strides = [1, 1]} : vector<4x768xf32> to vector<1x512xf32>
    %119 = vector.extract_strided_slice %0 {offsets = [3, 130], sizes = [1, 512], strides = [1, 1]} : vector<4x768xf32> to vector<1x512xf32>
    %120 = vector.extract_strided_slice %0 {offsets = [3, 131], sizes = [1, 512], strides = [1, 1]} : vector<4x768xf32> to vector<1x512xf32>
    %121 = vector.extract_strided_slice %0 {offsets = [3, 132], sizes = [1, 512], strides = [1, 1]} : vector<4x768xf32> to vector<1x512xf32>
    %122 = tpu.concatenate %97, %98, %99, %100, %101, %102, %103, %104, %105, %106, %107, %108, %109, %110, %111, %112 in 0 : vector<1x512xf32>, vector<1x512xf32>, vector<1x512xf32>, vector<1x512xf32>, vector<1x512xf32>, vector<1x512xf32>, vector<1x512xf32>, vector<1x512xf32>, vector<1x512xf32>, vector<1x512xf32>, vector<1x512xf32>, vector<1x512xf32>, vector<1x512xf32>, vector<1x512xf32>, vector<1x512xf32>, vector<1x512xf32> -> vector<16x512xf32>
    %123 = tpu.concatenate %113, %114, %115, %116, %117, %118, %119, %120, %121 in 0 : vector<1x512xf32>, vector<1x512xf32>, vector<1x512xf32>, vector<1x512xf32>, vector<1x512xf32>, vector<1x512xf32>, vector<1x512xf32>, vector<1x512xf32>, vector<1x512xf32> -> vector<9x512xf32>
    %124 = tpu.concatenate %122, %123 in 0 : vector<16x512xf32>, vector<9x512xf32> -> vector<25x512xf32>
    %c3 = arith.constant 3 : index
    %c0_10 = arith.constant 0 : index
    %c0_11 = arith.constant 0 : index
    %125 = vector.load %arg2[%c3, %c0_10, %c0_11] : memref<4x32x25xf32, #tpu.memory_space<vmem>>, vector<1x32x25xf32>
    %126 = vector.shape_cast %125 : vector<1x32x25xf32> to vector<32x25xf32>
    %cst_12 = arith.constant dense<0.000000e+00> : vector<32x512xf32>
    %127 = tpu.matmul %126, %124, %cst_12 {dimension_numbers = #tpu.dot_dimension_numbers<[1], [0], [0], [1], [0, 0, 1, 1], [], []>} : vector<32x25xf32>, vector<25x512xf32>, vector<32x512xf32> -> vector<32x512xf32>
    %128 = vector.shape_cast %127 : vector<32x512xf32> to vector<4x8x512xf32>
    %129 = arith.addf %32, %64 : vector<4x8x512xf32>
    %130 = arith.addf %129, %96 : vector<4x8x512xf32>
    %131 = arith.addf %130, %128 : vector<4x8x512xf32>
    %cst_13 = arith.constant 1.250000e-01 : f32
    %132 = vector.broadcast %cst_13 : f32 to vector<4x8x512xf32>
    %133 = arith.mulf %131, %132 : vector<4x8x512xf32>
    %134 = arith.mulf %133, %133 : vector<4x8x512xf32>
    %cst_14 = arith.constant dense<0.000000e+00> : vector<8x512xf32>
    %135 = vector.multi_reduction <add>, %134, %cst_14 [0] : vector<4x8x512xf32> to vector<8x512xf32>
    %136 = vector.shape_cast %135 : vector<8x512xf32> to vector<1x8x512xf32>
    %cst_15 = arith.constant 9.99999974E-5 : f32
    %137 = vector.broadcast %cst_15 : f32 to vector<1x8x512xf32>
    %138 = arith.addf %136, %137 : vector<1x8x512xf32>
    %139 = math.sqrt %138 : vector<1x8x512xf32>
    %140 = vector.broadcast %138 : vector<1x8x512xf32> to vector<4x8x512xf32>
    %141 = arith.mulf %140, %133 : vector<4x8x512xf32>
    %cst_16 = arith.constant 1.000000e+00 : f32
    %142 = vector.broadcast %cst_16 : f32 to vector<1x8x512xf32>
    %143 = arith.addf %142, %138 : vector<1x8x512xf32>
    %144 = arith.mulf %143, %139 : vector<1x8x512xf32>
    %cst_17 = arith.constant 9.99999974E-5 : f32
    %145 = vector.broadcast %cst_17 : f32 to vector<1x8x512xf32>
    %146 = arith.addf %144, %145 : vector<1x8x512xf32>
    %147 = tpu.reciprocal %146 : vector<1x8x512xf32> -> vector<1x8x512xf32>
    %148 = vector.broadcast %147 : vector<1x8x512xf32> to vector<4x8x512xf32>
    %149 = arith.mulf %141, %148 : vector<4x8x512xf32>
    %150 = arith.mulf %32, %149 : vector<4x8x512xf32>
    %cst_18 = arith.constant dense<0.000000e+00> : vector<8x512xf32>
    %151 = vector.multi_reduction <add>, %150, %cst_18 [0] : vector<4x8x512xf32> to vector<8x512xf32>
    %152 = vector.shape_cast %151 : vector<8x512xf32> to vector<1x8x512xf32>
    %cst_19 = arith.constant 1.250000e-01 : f32
    %153 = vector.broadcast %cst_19 : f32 to vector<1x8x512xf32>
    %154 = arith.addf %152, %153 : vector<1x8x512xf32>
    %155 = arith.mulf %64, %149 : vector<4x8x512xf32>
    %cst_20 = arith.constant dense<0.000000e+00> : vector<8x512xf32>
    %156 = vector.multi_reduction <add>, %155, %cst_20 [0] : vector<4x8x512xf32> to vector<8x512xf32>
    %157 = vector.shape_cast %156 : vector<8x512xf32> to vector<1x8x512xf32>
    %cst_21 = arith.constant 1.250000e-01 : f32
    %158 = vector.broadcast %cst_21 : f32 to vector<1x8x512xf32>
    %159 = arith.addf %157, %158 : vector<1x8x512xf32>
    %160 = arith.mulf %96, %149 : vector<4x8x512xf32>
    %cst_22 = arith.constant dense<0.000000e+00> : vector<8x512xf32>
    %161 = vector.multi_reduction <add>, %160, %cst_22 [0] : vector<4x8x512xf32> to vector<8x512xf32>
    %162 = vector.shape_cast %161 : vector<8x512xf32> to vector<1x8x512xf32>
    %cst_23 = arith.constant 1.250000e-01 : f32
    %163 = vector.broadcast %cst_23 : f32 to vector<1x8x512xf32>
    %164 = arith.addf %162, %163 : vector<1x8x512xf32>
    %165 = arith.mulf %128, %149 : vector<4x8x512xf32>
    %cst_24 = arith.constant dense<0.000000e+00> : vector<8x512xf32>
    %166 = vector.multi_reduction <add>, %165, %cst_24 [0] : vector<4x8x512xf32> to vector<8x512xf32>
    %167 = vector.shape_cast %166 : vector<8x512xf32> to vector<1x8x512xf32>
    %cst_25 = arith.constant 1.250000e-01 : f32
    %168 = vector.broadcast %cst_25 : f32 to vector<1x8x512xf32>
    %169 = arith.addf %167, %168 : vector<1x8x512xf32>
    %170 = math.exp %154 : vector<1x8x512xf32>
    %171 = math.exp %159 : vector<1x8x512xf32>
    %172 = math.exp %164 : vector<1x8x512xf32>
    %173 = math.exp %169 : vector<1x8x512xf32>
    %cst_26 = arith.constant dense<0.000000e+00> : vector<1x512xf32>
    %174 = vector.multi_reduction <add>, %170, %cst_26 [1] : vector<1x8x512xf32> to vector<1x512xf32>
    %175 = vector.shape_cast %174 : vector<1x512xf32> to vector<1x1x512xf32>
    %176 = tpu.reciprocal %175 : vector<1x1x512xf32> -> vector<1x1x512xf32>
    %177 = vector.broadcast %176 : vector<1x1x512xf32> to vector<1x8x512xf32>
    %178 = arith.mulf %170, %177 : vector<1x8x512xf32>
    %cst_27 = arith.constant dense<0.000000e+00> : vector<1x512xf32>
    %179 = vector.multi_reduction <add>, %171, %cst_27 [1] : vector<1x8x512xf32> to vector<1x512xf32>
    %180 = vector.shape_cast %179 : vector<1x512xf32> to vector<1x1x512xf32>
    %181 = tpu.reciprocal %180 : vector<1x1x512xf32> -> vector<1x1x512xf32>
    %182 = vector.broadcast %181 : vector<1x1x512xf32> to vector<1x8x512xf32>
    %183 = arith.mulf %171, %182 : vector<1x8x512xf32>
    %cst_28 = arith.constant dense<0.000000e+00> : vector<1x512xf32>
    %184 = vector.multi_reduction <add>, %172, %cst_28 [1] : vector<1x8x512xf32> to vector<1x512xf32>
    %185 = vector.shape_cast %184 : vector<1x512xf32> to vector<1x1x512xf32>
    %186 = tpu.reciprocal %185 : vector<1x1x512xf32> -> vector<1x1x512xf32>
    %187 = vector.broadcast %186 : vector<1x1x512xf32> to vector<1x8x512xf32>
    %188 = arith.mulf %172, %187 : vector<1x8x512xf32>
    %cst_29 = arith.constant dense<0.000000e+00> : vector<1x512xf32>
    %189 = vector.multi_reduction <add>, %173, %cst_29 [1] : vector<1x8x512xf32> to vector<1x512xf32>
    %190 = vector.shape_cast %189 : vector<1x512xf32> to vector<1x1x512xf32>
    %191 = tpu.reciprocal %190 : vector<1x1x512xf32> -> vector<1x1x512xf32>
    %192 = vector.broadcast %191 : vector<1x1x512xf32> to vector<1x8x512xf32>
    %193 = arith.mulf %173, %192 : vector<1x8x512xf32>
    %194 = vector.broadcast %178 : vector<1x8x512xf32> to vector<4x8x512xf32>
    %195 = arith.mulf %32, %194 : vector<4x8x512xf32>
    %196 = vector.broadcast %183 : vector<1x8x512xf32> to vector<4x8x512xf32>
    %197 = arith.mulf %64, %196 : vector<4x8x512xf32>
    %198 = arith.addf %195, %197 : vector<4x8x512xf32>
    %199 = vector.broadcast %188 : vector<1x8x512xf32> to vector<4x8x512xf32>
    %200 = arith.mulf %96, %199 : vector<4x8x512xf32>
    %201 = arith.addf %198, %200 : vector<4x8x512xf32>
    %202 = vector.broadcast %193 : vector<1x8x512xf32> to vector<4x8x512xf32>
    %203 = arith.mulf %128, %202 : vector<4x8x512xf32>
    %204 = arith.addf %201, %203 : vector<4x8x512xf32>
    %205 = arith.mulf %204, %204 : vector<4x8x512xf32>
    %cst_30 = arith.constant dense<0.000000e+00> : vector<8x512xf32>
    %206 = vector.multi_reduction <add>, %205, %cst_30 [0] : vector<4x8x512xf32> to vector<8x512xf32>
    %207 = vector.shape_cast %206 : vector<8x512xf32> to vector<1x8x512xf32>
    %cst_31 = arith.constant 9.99999974E-5 : f32
    %208 = vector.broadcast %cst_31 : f32 to vector<1x8x512xf32>
    %209 = arith.addf %207, %208 : vector<1x8x512xf32>
    %210 = math.sqrt %209 : vector<1x8x512xf32>
    %211 = vector.broadcast %209 : vector<1x8x512xf32> to vector<4x8x512xf32>
    %212 = arith.mulf %211, %204 : vector<4x8x512xf32>
    %cst_32 = arith.constant 1.000000e+00 : f32
    %213 = vector.broadcast %cst_32 : f32 to vector<1x8x512xf32>
    %214 = arith.addf %213, %209 : vector<1x8x512xf32>
    %215 = arith.mulf %214, %210 : vector<1x8x512xf32>
    %cst_33 = arith.constant 9.99999974E-5 : f32
    %216 = vector.broadcast %cst_33 : f32 to vector<1x8x512xf32>
    %217 = arith.addf %215, %216 : vector<1x8x512xf32>
    %218 = tpu.reciprocal %217 : vector<1x8x512xf32> -> vector<1x8x512xf32>
    %219 = vector.broadcast %218 : vector<1x8x512xf32> to vector<4x8x512xf32>
    %220 = arith.mulf %212, %219 : vector<4x8x512xf32>
    %221 = arith.mulf %32, %220 : vector<4x8x512xf32>
    %cst_34 = arith.constant dense<0.000000e+00> : vector<8x512xf32>
    %222 = vector.multi_reduction <add>, %221, %cst_34 [0] : vector<4x8x512xf32> to vector<8x512xf32>
    %223 = vector.shape_cast %222 : vector<8x512xf32> to vector<1x8x512xf32>
    %224 = arith.addf %178, %223 : vector<1x8x512xf32>
    %225 = arith.mulf %64, %220 : vector<4x8x512xf32>
    %cst_35 = arith.constant dense<0.000000e+00> : vector<8x512xf32>
    %226 = vector.multi_reduction <add>, %225, %cst_35 [0] : vector<4x8x512xf32> to vector<8x512xf32>
    %227 = vector.shape_cast %226 : vector<8x512xf32> to vector<1x8x512xf32>
    %228 = arith.addf %183, %227 : vector<1x8x512xf32>
    %229 = arith.mulf %96, %220 : vector<4x8x512xf32>
    %cst_36 = arith.constant dense<0.000000e+00> : vector<8x512xf32>
    %230 = vector.multi_reduction <add>, %229, %cst_36 [0] : vector<4x8x512xf32> to vector<8x512xf32>
    %231 = vector.shape_cast %230 : vector<8x512xf32> to vector<1x8x512xf32>
    %232 = arith.addf %188, %231 : vector<1x8x512xf32>
    %233 = arith.mulf %128, %220 : vector<4x8x512xf32>
    %cst_37 = arith.constant dense<0.000000e+00> : vector<8x512xf32>
    %234 = vector.multi_reduction <add>, %233, %cst_37 [0] : vector<4x8x512xf32> to vector<8x512xf32>
    %235 = vector.shape_cast %234 : vector<8x512xf32> to vector<1x8x512xf32>
    %236 = arith.addf %193, %235 : vector<1x8x512xf32>
    %237 = math.exp %224 : vector<1x8x512xf32>
    %238 = math.exp %228 : vector<1x8x512xf32>
    %239 = math.exp %232 : vector<1x8x512xf32>
    %240 = math.exp %236 : vector<1x8x512xf32>
    %cst_38 = arith.constant dense<0.000000e+00> : vector<1x512xf32>
    %241 = vector.multi_reduction <add>, %237, %cst_38 [1] : vector<1x8x512xf32> to vector<1x512xf32>
    %242 = vector.shape_cast %241 : vector<1x512xf32> to vector<1x1x512xf32>
    %243 = tpu.reciprocal %242 : vector<1x1x512xf32> -> vector<1x1x512xf32>
    %244 = vector.broadcast %243 : vector<1x1x512xf32> to vector<1x8x512xf32>
    %245 = arith.mulf %237, %244 : vector<1x8x512xf32>
    %cst_39 = arith.constant dense<0.000000e+00> : vector<1x512xf32>
    %246 = vector.multi_reduction <add>, %238, %cst_39 [1] : vector<1x8x512xf32> to vector<1x512xf32>
    %247 = vector.shape_cast %246 : vector<1x512xf32> to vector<1x1x512xf32>
    %248 = tpu.reciprocal %247 : vector<1x1x512xf32> -> vector<1x1x512xf32>
    %249 = vector.broadcast %248 : vector<1x1x512xf32> to vector<1x8x512xf32>
    %250 = arith.mulf %238, %249 : vector<1x8x512xf32>
    %cst_40 = arith.constant dense<0.000000e+00> : vector<1x512xf32>
    %251 = vector.multi_reduction <add>, %239, %cst_40 [1] : vector<1x8x512xf32> to vector<1x512xf32>
    %252 = vector.shape_cast %251 : vector<1x512xf32> to vector<1x1x512xf32>
    %253 = tpu.reciprocal %252 : vector<1x1x512xf32> -> vector<1x1x512xf32>
    %254 = vector.broadcast %253 : vector<1x1x512xf32> to vector<1x8x512xf32>
    %255 = arith.mulf %239, %254 : vector<1x8x512xf32>
    %cst_41 = arith.constant dense<0.000000e+00> : vector<1x512xf32>
    %256 = vector.multi_reduction <add>, %240, %cst_41 [1] : vector<1x8x512xf32> to vector<1x512xf32>
    %257 = vector.shape_cast %256 : vector<1x512xf32> to vector<1x1x512xf32>
    %258 = tpu.reciprocal %257 : vector<1x1x512xf32> -> vector<1x1x512xf32>
    %259 = vector.broadcast %258 : vector<1x1x512xf32> to vector<1x8x512xf32>
    %260 = arith.mulf %240, %259 : vector<1x8x512xf32>
    %261 = vector.broadcast %245 : vector<1x8x512xf32> to vector<4x8x512xf32>
    %262 = arith.mulf %32, %261 : vector<4x8x512xf32>
    %263 = vector.broadcast %250 : vector<1x8x512xf32> to vector<4x8x512xf32>
    %264 = arith.mulf %64, %263 : vector<4x8x512xf32>
    %265 = arith.addf %262, %264 : vector<4x8x512xf32>
    %266 = vector.broadcast %255 : vector<1x8x512xf32> to vector<4x8x512xf32>
    %267 = arith.mulf %96, %266 : vector<4x8x512xf32>
    %268 = arith.addf %265, %267 : vector<4x8x512xf32>
    %269 = vector.broadcast %260 : vector<1x8x512xf32> to vector<4x8x512xf32>
    %270 = arith.mulf %128, %269 : vector<4x8x512xf32>
    %271 = arith.addf %268, %270 : vector<4x8x512xf32>
    %272 = arith.mulf %271, %271 : vector<4x8x512xf32>
    %cst_42 = arith.constant dense<0.000000e+00> : vector<8x512xf32>
    %273 = vector.multi_reduction <add>, %272, %cst_42 [0] : vector<4x8x512xf32> to vector<8x512xf32>
    %274 = vector.shape_cast %273 : vector<8x512xf32> to vector<1x8x512xf32>
    %cst_43 = arith.constant 9.99999974E-5 : f32
    %275 = vector.broadcast %cst_43 : f32 to vector<1x8x512xf32>
    %276 = arith.addf %274, %275 : vector<1x8x512xf32>
    %277 = math.sqrt %276 : vector<1x8x512xf32>
    %278 = vector.broadcast %276 : vector<1x8x512xf32> to vector<4x8x512xf32>
    %279 = arith.mulf %278, %271 : vector<4x8x512xf32>
    %cst_44 = arith.constant 1.000000e+00 : f32
    %280 = vector.broadcast %cst_44 : f32 to vector<1x8x512xf32>
    %281 = arith.addf %280, %276 : vector<1x8x512xf32>
    %282 = arith.mulf %281, %277 : vector<1x8x512xf32>
    %cst_45 = arith.constant 9.99999974E-5 : f32
    %283 = vector.broadcast %cst_45 : f32 to vector<1x8x512xf32>
    %284 = arith.addf %282, %283 : vector<1x8x512xf32>
    %285 = tpu.reciprocal %284 : vector<1x8x512xf32> -> vector<1x8x512xf32>
    %286 = vector.broadcast %285 : vector<1x8x512xf32> to vector<4x8x512xf32>
    %287 = arith.mulf %279, %286 : vector<4x8x512xf32>
    %288 = vector.extract_strided_slice %287 {offsets = [0, 0, 0], sizes = [1, 8, 512], strides = [1, 1, 1]} : vector<4x8x512xf32> to vector<1x8x512xf32>
    %289 = vector.shape_cast %288 : vector<1x8x512xf32> to vector<8x512xf32>
    %290 = vector.shape_cast %289 : vector<8x512xf32> to vector<8x1x512xf32>
    %c0_46 = arith.constant 0 : index
    %c0_47 = arith.constant 0 : index
    %c0_48 = arith.constant 0 : index
    %291 = vector.load %arg3[%c0_46, %c0_47, %c0_48] : memref<8x4x512xf32, #tpu.memory_space<vmem>>, vector<8x1x512xf32>
    tpu.vector_store %arg3[%c0_46, %c0_47, %c0_48], %290 {strides = array<i32>} : memref<8x4x512xf32, #tpu.memory_space<vmem>>, vector<8x1x512xf32>,
    %292 = vector.extract_strided_slice %287 {offsets = [1, 0, 0], sizes = [1, 8, 512], strides = [1, 1, 1]} : vector<4x8x512xf32> to vector<1x8x512xf32>
    %293 = vector.shape_cast %292 : vector<1x8x512xf32> to vector<8x512xf32>
    %294 = vector.shape_cast %293 : vector<8x512xf32> to vector<8x1x512xf32>
    %c0_49 = arith.constant 0 : index
    %c1_50 = arith.constant 1 : index
    %c0_51 = arith.constant 0 : index
    %295 = vector.load %arg3[%c0_49, %c1_50, %c0_51] : memref<8x4x512xf32, #tpu.memory_space<vmem>>, vector<8x1x512xf32>
    tpu.vector_store %arg3[%c0_49, %c1_50, %c0_51], %294 {strides = array<i32>} : memref<8x4x512xf32, #tpu.memory_space<vmem>>, vector<8x1x512xf32>,
    %296 = vector.extract_strided_slice %287 {offsets = [2, 0, 0], sizes = [1, 8, 512], strides = [1, 1, 1]} : vector<4x8x512xf32> to vector<1x8x512xf32>
    %297 = vector.shape_cast %296 : vector<1x8x512xf32> to vector<8x512xf32>
    %298 = vector.shape_cast %297 : vector<8x512xf32> to vector<8x1x512xf32>
    %c0_52 = arith.constant 0 : index
    %c2_53 = arith.constant 2 : index
    %c0_54 = arith.constant 0 : index
    %299 = vector.load %arg3[%c0_52, %c2_53, %c0_54] : memref<8x4x512xf32, #tpu.memory_space<vmem>>, vector<8x1x512xf32>
    tpu.vector_store %arg3[%c0_52, %c2_53, %c0_54], %298 {strides = array<i32>} : memref<8x4x512xf32, #tpu.memory_space<vmem>>, vector<8x1x512xf32>,
    %300 = vector.extract_strided_slice %287 {offsets = [3, 0, 0], sizes = [1, 8, 512], strides = [1, 1, 1]} : vector<4x8x512xf32> to vector<1x8x512xf32>
    %301 = vector.shape_cast %300 : vector<1x8x512xf32> to vector<8x512xf32>
    %302 = vector.shape_cast %301 : vector<8x512xf32> to vector<8x1x512xf32>
    %c0_55 = arith.constant 0 : index
    %c3_56 = arith.constant 3 : index
    %c0_57 = arith.constant 0 : index
    %303 = vector.load %arg3[%c0_55, %c3_56, %c0_57] : memref<8x4x512xf32, #tpu.memory_space<vmem>>, vector<8x1x512xf32>
    tpu.vector_store %arg3[%c0_55, %c3_56, %c0_57], %302 {strides = array<i32>} : memref<8x4x512xf32, #tpu.memory_space<vmem>>, vector<8x1x512xf32>,
    return
  }
  func.func @transform_0(%arg0: i32) -> (i32, i32) {
    %c0_i32 = arith.constant 0 : i32
    %c0_i32_0 = arith.constant 0 : i32
    %c0_i32_1 = arith.constant 0 : i32
    return %c0_i32, %c0_i32_0 : i32, i32
  }
  func.func @transform_1(%arg0: i32) -> (i32, i32, i32) {
    %c0_i32 = arith.constant 0 : i32
    %c0_i32_0 = arith.constant 0 : i32
    %c0_i32_1 = arith.constant 0 : i32
    %c0_i32_2 = arith.constant 0 : i32
    return %c0_i32, %c0_i32_0, %c0_i32_1 : i32, i32, i32
  }
  func.func @transform_2(%arg0: i32) -> (i32, i32, i32) {
    %c0_i32 = arith.constant 0 : i32
    %c0_i32_0 = arith.constant 0 : i32
    %c0_i32_1 = arith.constant 0 : i32
    %c0_i32_2 = arith.constant 0 : i32
    return %c0_i32, %c0_i32_0, %c0_i32_1 : i32, i32, i32
  }
}

</mosaic_0001>

<bundles_post_ra>
// kernel: upcaps_forward.1
= control target key start
LH: loop header
LB: loop body
LE: loop exit
PB: predicated region body
PF: predicated region fallthrough
CT: control target
= control target key end

     0   :  { %v9200_v0 = vlaneseq  ;;  %s5538_s15 = smov 126   ;;  %s5539_s16 = smov 125   ;;  %vm9296_vm0 = vcmask 1040384   ;;  %vm51_vm1 = vcmask 1039360   ;;  %vm70_vm2 = vcmask 1031168   ;;  %s9197_s0 = inlined_call_operand.vmem [shape: f32[4,768], index: 0, kind: input, shape index: {}]   ;;  %s9198_s1 = inlined_call_operand.vmem [shape: f32[4,32,25], index: 1, kind: input, shape index: {}]   ;;  %s9199_s2 = inlined_call_operand.vmem [shape: f32[8,4,512], index: 2, kind: output, shape index: {}]  }
   0x1   :  { %v5578_v2 = vld [vmem:[%s9197_s0] sm:$0xff]  ;;  %v5583_v3 = vld [vmem:[%s9197_s0 + $0x10] sm:$0xff]  ;;  %v5593_v7 = vld [vmem:[%s9197_s0 + $0x8] sm:$0xff]  ;;  %s5537_s0 = smov 127   ;;  %s5540_s17 = smov 124   ;;  %vm331_vm3 = vcmask 1041408  }
   0x2   :  { %v5573_v1 = vshrl.u32 %v9200_v0, 7  ;;  %s5541_s18 = smov 96   ;;  %s5542_s19 = smov 95   ;;  %vm89_vm4 = vcmask 1022976   ;;  %vm336_vm5 = vcmask 1042432   ;;  %vm9232_vm6 = vcmask 1014784  }
   0x3   :  { %s5543_s20 = smov 94   ;;  %s5544_s21 = smov 93   ;;  %vm9264_vm7 = vcmask 1043456   ;;  %vm9291_vm8 = vcmask 785408   ;;  %vm9263_vm9 = vcmask 1044480   ;;  %vm9292_vm10 = vcmask 777216  }
   0x4   :  { %9432 = vst [vmem:[#allocation2_spill] sm:$0xff] %v5573_v1  ;;  %v18_v4 = vsub.s32 0, %v5573_v1  ;;  %v5587_v5 = vsub.s32 5, %v5573_v1  ;;  %v22_v6 = vsub.s32 4, %v5573_v1  ;;  %v5626_v17 = vsub.s32 6, %v5573_v1  ;;  %s5545_s22 = smov 92  }
   0x5   :  { %v1353_v20 = vsub.s32 2, %v5573_v1  ;;  %v5641_v21 = vsub.s32 7, %v5573_v1  ;;  %v2008_v27 = vsub.s32 3, %v5573_v1  ;;  %v698_v36 = vsub.s32 1, %v5573_v1  ;;  %s5546_s23 = smov 64   ;;  %s5547_s24 = smov 97  }
   0x6   :  { %v5596_v8 = vrot.slane %v5583_v3, %v18_v4  ;;  %v5600_v9 = vrot.slane %v5578_v2, %v5587_v5  ;;  %v5603_v10 = vrot.slane %v5578_v2, %v18_v4  ;;  %v5606_v11 = vrot.slane %v5578_v2, %v22_v6  ;;  %s5548_s25 = smov 63   ;;  %s5549_s26 = smov 62  }
   0x7   :  { %v5609_v12 = vrot.slane %v5593_v7, %v18_v4  ;;  %v5612_v13 = vrot.slane %v5593_v7, %v22_v6  ;;  %v1069_v18 = vrot.slane %v5583_v3, %v5587_v5  ;;  %v5634_v19 = vrot.slane %v5578_v2, %v5626_v17  ;;  %s5550_s27 = smov 61   ;;  %s5551_s28 = smov 60  }
   0x8   :  { %v5616_v14 = vpack.i.bf16 %v5600_v9, %v5596_v8  ;;  %v4431_v15 = vpack.i.bf16 %v5606_v11, %v5603_v10  ;;  %v5646_v22 = vrot.slane %v5593_v7, %v1353_v20  ;;  %v5649_v23 = vrot.slane %v5578_v2, %v1353_v20  ;;  %s5552_s29 = smov 32   ;;  %s5553_s30 = smov 31  }
   0x9   :  { %v4436_v16 = vpack.i.bf16 %v5612_v13, %v5609_v12  ;;  %9433 = vst [vmem:[#allocation3_spill] sm:$0xff] %v5634_v19  ;;  %v5653_v24 = vrot.slane %v5578_v2, %v5641_v21  ;;  %v5657_v25 = vrot.slane %v5593_v7, %v5626_v17  ;;  %v5660_v26 = vrot.slane %v5583_v3, %v1353_v20 }
   0xa   :  { %4442 = vrot.lane.b32.xlu1 %v5616_v14, %s5537_s0  ;;  %4432 = vrot.lane.b32.xlu0 %v4431_v15, %s5537_s0  ;;  %9434 = vst [vmem:[#allocation4_spill] sm:$0xff] %v5646_v22  ;;  %v1724_v28 = vrot.slane %v5583_v3, %v5626_v17  ;;  %v5669_v29 = vrot.slane %v5578_v2, %v2008_v27  ;;  %vm351_vm11 = vcmask 1045504   ;;  %vm9233_vm12 = vcmask 769024  }
   0xb   :  { %9435 = vst [vmem:[#allocation5_spill] sm:$0xff] %v5653_v24  ;;  %9436 = vst [vmem:[#allocation6_spill] sm:$0xff] %v5657_v25  ;;  %v5672_v30 = vrot.slane %v5593_v7, %v2008_v27  ;;  %v413_v31 = vrot.slane %v5583_v3, %v22_v6  ;;  %v5679_v32 = vrot.slane %v5583_v3, %v2008_v27  ;;  %vm356_vm13 = vcmask 1046528  }
   0xc   :  { %9437 = vst [vmem:[#allocation7_spill] sm:$0xff] %v5660_v26  ;;  %v5683_v33 = vrot.slane %v5593_v7, %v5641_v21  ;;  %v5704_v37 = vrot.slane %v5593_v7, %v698_v36  ;;  %v5711_v38 = vpack.i.bf16 %v5609_v12, %v5606_v11  ;;  %v5715_v39 = vrot.slane %v5593_v7, %v5587_v5 }
   0xd   :  { %9438 = vst [vmem:[#allocation8_spill] sm:$0xff] %v5672_v30  ;;  %9439 = vst [vmem:[#allocation9_spill] sm:$0xff] %v5679_v32  ;;  %v4501_v34 = vpack.i.bf16 %v413_v31, %v5596_v8  ;;  %v5719_v40 = vpack.i.bf16 %v5596_v8, %v5612_v13  ;;  %v5729_v42 = vrot.slane %v5578_v2, %v698_v36  ;;  %vm401_vm14 = vcmask 793600  }
   0xe   :  { %4447 = vrot.lane.b32.xlu1 %v4431_v15, %s5538_s15  ;;  %4437 = vrot.lane.b32.xlu0 %v4436_v16, %s5537_s0  ;;  %9440 = vst [vmem:[#allocation10_spill] sm:$0xff] %v5683_v33  ;;  %9441 = vst [vmem:[#allocation11_spill] sm:$0xff] %v5715_v39  ;;  %v5726_v41 = vpack.i.bf16 %v5715_v39, %v5704_v37  ;;  %v5732_v43 = vrot.slane %v5583_v3, %v698_v36  ;;  %vm9293_vm15 = vcmask 760832  }
   0xf   :  { %v4616_v45 = vpack.i.bf16 %v5704_v37, %v5600_v9  ;;  %v4636_v47 = vpack.i.bf16 %v5634_v19, %v1069_v18  ;;  %v5775_v48 = vpack.i.bf16 %v5646_v22, %v5634_v19  ;;  %v5782_v49 = vpack.i.bf16 %v5653_v24, %v5649_v23 }
  0x10   :  { %9442 = vst [vmem:[#allocation12_spill] sm:$0xff] %v5732_v43  ;;  %v5740_v44 = vpack.i.bf16 %v5729_v42, %v5732_v43  ;;  %v4621_v46 = vpack.i.bf16 %v5732_v43, %v5715_v39  ;;  %v5786_v50 = vpack.i.bf16 %v5660_v26, %v5657_v25  ;;  %v5814_v55 = vpack.i.bf16 %v1724_v28, %v5660_v26 }
  0x11   :  { %9443 = vst [vmem:[#allocation13_spill] sm:$0xff] %v5775_v48  ;;  %9444 = vst [vmem:[#allocation14_spill] sm:$0xff] %v5782_v49  ;;  %v5818_v56 = vpack.i.bf16 %v5657_v25, %v5646_v22  ;;  %v5834_v6 = vpack.i.bf16 %v5669_v29, %v5679_v32  ;;  %v5838_v7 = vpack.i.bf16 %v5683_v33, %v5672_v30 }
  0x12   :  { %4457 = vrot.lane.b32.xlu1 %v5616_v14, %s5538_s15  ;;  %4452 = vrot.lane.b32.xlu0 %v4436_v16, %s5538_s15  ;;  %9445 = vst [vmem:[#allocation15_spill] sm:$0xff] %v5786_v50 }
  0x13   :  { %9446 = vst [vmem:[#allocation16_spill] sm:$0xff] %v5834_v6  ;;  %9447 = vst [vmem:[#allocation17_spill] sm:$0xff] %v5838_v7 }
  0x16   :  { %4467 = vrot.lane.b32.xlu1 %v4436_v16, %s5539_s16  ;;  %4462 = vrot.lane.b32.xlu0 %v4431_v15, %s5539_s16 }
  0x1a   :  { %4477 = vrot.lane.b32.xlu1 %v4431_v15, %s5540_s17  ;;  %4472 = vrot.lane.b32.xlu0 %v5616_v14, %s5539_s16 }
  0x1e   :  { %4487 = vrot.lane.b32.xlu1 %v5616_v14, %s5540_s17  ;;  %4482 = vrot.lane.b32.xlu0 %v4436_v16, %s5540_s17 }
  0x22   :  { %4497 = vrot.lane.b32.xlu1 %v4436_v16, %s5541_s18  ;;  %4492 = vrot.lane.b32.xlu0 %v4431_v15, %s5541_s18 }
  0x26   :  { %4507 = vrot.lane.b32.xlu1 %v4431_v15, %s5542_s19  ;;  %4502 = vrot.lane.b32.xlu0 %v4501_v34, %s5541_s18 }
  0x2a   :  { %4517 = vrot.lane.b32.xlu1 %v4501_v34, %s5542_s19  ;;  %4512 = vrot.lane.b32.xlu0 %v4436_v16, %s5542_s19 }
  0x2e   :  { %4527 = vrot.lane.b32.xlu1 %v4436_v16, %s5543_s20  ;;  %4522 = vrot.lane.b32.xlu0 %v4431_v15, %s5543_s20 }
  0x32   :  { %4537 = vrot.lane.b32.xlu1 %v4431_v15, %s5544_s21  ;;  %4532 = vrot.lane.b32.xlu0 %v4501_v34, %s5543_s20 }
  0x36   :  { %4547 = vrot.lane.b32.xlu1 %v4501_v34, %s5544_s21  ;;  %4542 = vrot.lane.b32.xlu0 %v4436_v16, %s5544_s21 }
  0x3a   :  { %4557 = vrot.lane.b32.xlu1 %v4436_v16, %s5545_s22  ;;  %4552 = vrot.lane.b32.xlu0 %v4431_v15, %s5545_s22 }
  0x3e   :  { %4567 = vrot.lane.b32.xlu1 %v4431_v15, %s5546_s23  ;;  %4562 = vrot.lane.b32.xlu0 %v5616_v14, %s5545_s22 }
  0x42   :  { %4577 = vrot.lane.b32.xlu1 %v5711_v38, %s5547_s24  ;;  %4572 = vrot.lane.b32.xlu0 %v4436_v16, %s5546_s23 }
  0x46   :  { %4587 = vrot.lane.b32.xlu1 %v5726_v41, %s5537_s0  ;;  %4582 = vrot.lane.b32.xlu0 %v5719_v40, %s5547_s24 }
  0x4a   :  { %4597 = vrot.lane.b32.xlu1 %v5726_v41, %s5538_s15  ;;  %4592 = vrot.lane.b32.xlu0 %v5740_v44, %s5537_s0 }
  0x4e   :  { %4607 = vrot.lane.b32.xlu1 %v5726_v41, %s5539_s16  ;;  %4602 = vrot.lane.b32.xlu0 %v5740_v44, %s5538_s15 }
  0x52   :  { %4617 = vrot.lane.b32.xlu1 %v4616_v45, %s5547_s24  ;;  %4612 = vrot.lane.b32.xlu0 %v5740_v44, %s5539_s16 }
  0x56   :  { %4627 = vrot.lane.b32.xlu1 %v4616_v45, %s5541_s18  ;;  %4622 = vrot.lane.b32.xlu0 %v4621_v46, %s5547_s24 }
  0x5a   :  { %4637 = vrot.lane.b32.xlu1 %v4636_v47, %s5541_s18  ;;  %4632 = vrot.lane.b32.xlu0 %v4621_v46, %s5541_s18 }
  0x5e   :  { %4647 = vrot.lane.b32.xlu1 %v4621_v46, %s5542_s19  ;;  %4642 = vrot.lane.b32.xlu0 %v4616_v45, %s5542_s19 }
  0x62   :  { %4657 = vrot.lane.b32.xlu1 %v4616_v45, %s5543_s20  ;;  %4652 = vrot.lane.b32.xlu0 %v4636_v47, %s5542_s19 }
  0x66   :  { %4667 = vrot.lane.b32.xlu1 %v4636_v47, %s5543_s20  ;;  %4662 = vrot.lane.b32.xlu0 %v4621_v46, %s5543_s20 }
  0x6a   :  { %4677 = vrot.lane.b32.xlu1 %v4621_v46, %s5544_s21  ;;  %4672 = vrot.lane.b32.xlu0 %v4616_v45, %s5544_s21 }
  0x6e   :  { %4687 = vrot.lane.b32.xlu1 %v5775_v48, %s5537_s0  ;;  %4682 = vrot.lane.b32.xlu0 %v4636_v47, %s5544_s21 }
  0x72   :  { %4697 = vrot.lane.b32.xlu1 %v5782_v49, %s5537_s0  ;;  %4692 = vrot.lane.b32.xlu0 %v5786_v50, %s5537_s0 }
  0x76   :  { %4707 = vrot.lane.b32.xlu1 %v5786_v50, %s5538_s15  ;;  %4702 = vrot.lane.b32.xlu0 %v5775_v48, %s5538_s15 }
  0x7a   :  { %4717 = vrot.lane.b32.xlu1 %v5775_v48, %s5539_s16  ;;  %4712 = vrot.lane.b32.xlu0 %v5782_v49, %s5538_s15 }
  0x7c   :  { %v5800_v51 = vpop.permute.xlu1 %4442  ;;  %v4433_v52 = vpop.permute.xlu0 %4432 }
  0x7d   :  { %v4435_v59 = vunpack.i.h.bf16 %v4433_v52  ;;  %v4434_v60 = vunpack.i.l.bf16 %v4433_v52  ;;  %v9201_v15 = vunpack.i.l.bf16 %v5800_v51  ;;  %v9459_v26 = vunpack.i.l.bf16 %v5800_v51 }
  0x7e   :  { %4727 = vrot.lane.b32.xlu1 %v5782_v49, %s5539_s16  ;;  %4722 = vrot.lane.b32.xlu0 %v5786_v50, %s5539_s16 }
  0x7f   :  { %v52_v16 = vsel %vm51_vm1, %v4434_v60, %v4435_v59 }
  0x80   :  { %v4448_v53 = vpop.permute.xlu1 %4447  ;;  %v4438_v54 = vpop.permute.xlu0 %4437  ;;  %v327_v52 = vsel %vm9296_vm0, %v5603_v10, %v52_v16 }
  0x81   :  { %v4450_v61 = vunpack.i.h.bf16 %v4448_v53  ;;  %v4449_v62 = vunpack.i.l.bf16 %v4448_v53  ;;  %v4440_v4 = vunpack.i.h.bf16 %v4438_v54  ;;  %v4439_v5 = vunpack.i.l.bf16 %v4438_v54 }
  0x82   :  { %4737 = vrot.lane.b32.xlu1 %v5786_v50, %s5547_s24  ;;  %4732 = vrot.lane.b32.xlu0 %v5775_v48, %s5547_s24 }
  0x83   :  { %v71_v20 = vsel %vm70_vm2, %v4449_v62, %v4450_v61  ;;  %v55_v36 = vsel %vm51_vm1, %v4440_v4, %v9201_v15  ;;  %v54_v45 = vsel %vm51_vm1, %v4439_v5, %v4440_v4  ;;  %v53_v53 = vsel %vm51_vm1, %v4435_v59, %v4439_v5 }
  0x84   :  { %v5820_v57 = vpop.permute.xlu1 %4457  ;;  %v4453_v58 = vpop.permute.xlu0 %4452  ;;  %v329_v59 = vsel %vm9296_vm0, %v5609_v12, %v54_v45 }
  0x85   :  { %v4455_v17 = vunpack.i.h.bf16 %v4453_v58  ;;  %v4454_v18 = vunpack.i.l.bf16 %v4453_v58  ;;  %v9205_v54 = vunpack.i.l.bf16 %v5820_v57  ;;  %v332_v58 = vsel %vm331_vm3, %v327_v52, %v71_v20 }
  0x86   :  { %4747 = vrot.lane.b32.xlu1 %v5814_v55, %s5541_s18  ;;  %4742 = vrot.lane.b32.xlu0 %v5818_v56, %s5541_s18  ;;  %v9460_v19 = vunpack.i.l.bf16 %v5820_v57 }
  0x87   :  { %v73_v60 = vsel %vm70_vm2, %v4454_v18, %v4455_v17  ;;  %v72_v4 = vsel %vm70_vm2, %v4450_v61, %v4454_v18  ;;  %v74_v12 = vsel %vm70_vm2, %v4455_v17, %v9205_v54 }
  0x88   :  { %v5826_v63 = vpop.permute.xlu1 %4467  ;;  %v4463_v2 = vpop.permute.xlu0 %4462  ;;  %v334_v61 = vsel %vm331_vm3, %v329_v59, %v73_v60 }
  0x89   :  { %v4470_v27 = vunpack.i.h.bf16 %v5826_v63  ;;  %v4469_v28 = vunpack.i.l.bf16 %v5826_v63  ;;  %v4465_v46 = vunpack.i.h.bf16 %v4463_v2  ;;  %v4464_v47 = vunpack.i.l.bf16 %v4463_v2 }
  0x8a   :  { %4757 = vrot.lane.b32.xlu1 %v5814_v55, %s5542_s19  ;;  %4752 = vrot.lane.b32.xlu0 %v5818_v56, %s5542_s19  ;;  %v330_v2 = vsel %vm9296_vm0, %v5612_v13, %v55_v36  ;;  %v328_v13 = vsel %vm9296_vm0, %v5606_v11, %v53_v53 }
  0x8b   :  { %v92_v5 = vsel %vm89_vm4, %v4469_v28, %v4470_v27  ;;  %v91_v20 = vsel %vm89_vm4, %v4465_v46, %v4469_v28  ;;  %v90_v52 = vsel %vm89_vm4, %v4464_v47, %v4465_v46  ;;  %v333_v28 = vsel %vm331_vm3, %v328_v13, %v72_v4 }
  0x8c   :  { %v4478_v31 = vpop.permute.xlu1 %4477  ;;  %v5845_v34 = vpop.permute.xlu0 %4472  ;;  %v5889_v17 = vsel %vm336_vm5, %v333_v28, %v91_v20 }
  0x8d   :  { %v4480_v62 = vunpack.i.h.bf16 %v4478_v31  ;;  %v4479_v63 = vunpack.i.l.bf16 %v4478_v31  ;;  %v9204_v18 = vunpack.i.l.bf16 %v5845_v34 }
  0x8e   :  { %4767 = vrot.lane.b32.xlu1 %v5814_v55, %s5543_s20  ;;  %4762 = vrot.lane.b32.xlu0 %v5818_v56, %s5543_s20 }
  0x8f   :  { %v109_v11 = vsel %vm9232_vm6, %v4479_v63, %v4480_v62 }
  0x90   :  { %v5867_v16 = vpop.permute.xlu1 %4487  ;;  %v4483_v0 = vpop.permute.xlu0 %4482 }
  0x91   :  { %9448 = vst [vmem:[#allocation18_spill] sm:$0xff] %v5867_v16  ;;  %v4485_v15 = vunpack.i.h.bf16 %v4483_v0  ;;  %v4484_v31 = vunpack.i.l.bf16 %v4483_v0  ;;  %v5884_v0 = vsel %vm336_vm5, %v334_v61, %v92_v5  ;;  %v4489_v45 = vunpack.i.l.bf16 %v5867_v16 }
  0x92   :  { %4777 = vrot.lane.b32.xlu1 %v5814_v55, %s5544_s21  ;;  %4772 = vrot.lane.b32.xlu0 %v5818_v56, %s5544_s21  ;;  %v5894_v56 = vsel %vm336_vm5, %v332_v58, %v90_v52 }
  0x93   :  { %v110_v36 = vsel %vm9232_vm6, %v4480_v62, %v4484_v31  ;;  %v111_v46 = vsel %vm9232_vm6, %v4484_v31, %v4485_v15  ;;  %v93_v62 = vsel %vm89_vm4, %v4470_v27, %v9204_v18  ;;  %v342_v63 = vsel %vm9264_vm7, %v5894_v56, %v109_v11 }
  0x94   :  { %v4498_v55 = vpop.permute.xlu1 %4497  ;;  %v4493_v47 = vpop.permute.xlu0 %4492  ;;  %v343_v58 = vsel %vm9264_vm7, %v5889_v17, %v110_v36  ;;  %v344_v52 = vsel %vm9264_vm7, %v5884_v0, %v111_v46  ;;  %v112_v31 = vsel %vm9232_vm6, %v4485_v15, %v4489_v45  ;;  %vm9237_vm6 = vcmask 752640  }
  0x95   :  { %v4500_v53 = vunpack.i.h.bf16 %v4498_v55  ;;  %v4499_v60 = vunpack.i.l.bf16 %v4498_v55  ;;  %v5896_v59 = vunpack.i.h.bf16 %v4493_v47  ;;  %v4494_v4 = vunpack.i.l.bf16 %v4493_v47 }
  0x96   :  { %4787 = vrot.lane.b32.xlu1 %v5834_v6, %s5537_s0  ;;  %4782 = vrot.lane.b32.xlu0 %v5838_v7, %s5537_s0  ;;  %v335_v55 = vsel %vm331_vm3, %v330_v2, %v74_v12 }
  0x97   :  { %v5910_v5 = vsel %vm9291_vm8, %v4499_v60, %v4500_v53  ;;  %v5914_v20 = vsel %vm9291_vm8, %v5896_v59, %v4499_v60  ;;  %v128_v27 = vsel %vm9291_vm8, %v4494_v4, %v5896_v59  ;;  %v5933_v15 = vsel %vm336_vm5, %v335_v55, %v93_v62 }
  0x98   :  { %v4508_v13 = vpop.permute.xlu1 %4507  ;;  %v5921_v61 = vpop.permute.xlu0 %4502  ;;  %v348_v28 = vsel %vm9263_vm9, %v343_v58, %v5914_v20  ;;  %v347_v11 = vsel %vm9263_vm9, %v342_v63, %v128_v27  ;;  %v349_v36 = vsel %vm9263_vm9, %v344_v52, %v5910_v5  ;;  %v345_v12 = vsel %vm9264_vm7, %v5933_v15, %v112_v31 }
  0x99   :  { %v5929_v47 = vunpack.i.h.bf16 %v4508_v13  ;;  %v4509_v60 = vunpack.i.l.bf16 %v4508_v13  ;;  %v9202_v46 = vunpack.i.l.bf16 %v5921_v61  ;;  %v4811_v31 = vpack.i.bf16 %v5672_v30, %v5653_v24 }
  0x9a   :  { %4797 = vrot.lane.b32.xlu1 %v5834_v6, %s5538_s15  ;;  %4792 = vrot.lane.b32.xlu0 %v5838_v7, %s5538_s15 }
  0x9b   :  { %v5942_v45 = vsel %vm9291_vm8, %v4500_v53, %v9202_v46  ;;  %v147_v2 = vsel %vm9292_vm10, %v4509_v60, %v5929_v47  ;;  %v4816_v53 = vpack.i.bf16 %v5679_v32, %v5683_v33 }
  0x9c   :  { %v5948_v4 = vpop.permute.xlu1 %4517  ;;  %v4513_v62 = vpop.permute.xlu0 %4512  ;;  %v352_v58 = vsel %vm351_vm11, %v347_v11, %v147_v2  ;;  %v350_v63 = vsel %vm9263_vm9, %v345_v12, %v5942_v45 }
  0x9d   :  { %v9203_v27 = vunpack.i.l.bf16 %v5948_v4  ;;  %v4515_v52 = vunpack.i.h.bf16 %v4513_v62  ;;  %v4514_v13 = vunpack.i.l.bf16 %v4513_v62 }
  0x9e   :  { %4807 = vrot.lane.b32.xlu1 %v5834_v6, %s5539_s16  ;;  %4802 = vrot.lane.b32.xlu0 %v5838_v7, %s5539_s16 }
  0x9f   :  { %v5965_v11 = vsel %vm9292_vm10, %v4515_v52, %v9203_v27  ;;  %v5969_v55 = vsel %vm9292_vm10, %v5929_v47, %v4514_v13  ;;  %v5972_v60 = vsel %vm9292_vm10, %v4514_v13, %v4515_v52 }
  0xa0   :  { %v4528_v2 = vpop.permute.xlu1 %4527  ;;  %v4523_v12 = vpop.permute.xlu0 %4522  ;;  %v353_v62 = vsel %vm351_vm11, %v348_v28, %v5969_v55  ;;  %v355_v46 = vsel %vm351_vm11, %v350_v63, %v5965_v11  ;;  %v354_v27 = vsel %vm351_vm11, %v349_v36, %v5972_v60 }
  0xa1   :  { %v4530_v18 = vunpack.i.h.bf16 %v4528_v2  ;;  %v4529_v54 = vunpack.i.l.bf16 %v4528_v2  ;;  %v5980_v35 = vunpack.i.h.bf16 %v4523_v12  ;;  %v4524_v1 = vunpack.i.l.bf16 %v4523_v12 }
  0xa2   :  { %4817 = vrot.lane.b32.xlu1 %v4816_v53, %s5547_s24  ;;  %4812 = vrot.lane.b32.xlu0 %v4811_v31, %s5547_s24 }
  0xa3   :  { %v5985_v52 = vsel %vm9233_vm12, %v4529_v54, %v4530_v18  ;;  %v5989_v28 = vsel %vm9233_vm12, %v5980_v35, %v4529_v54  ;;  %v166_v63 = vsel %vm9233_vm12, %v4524_v1, %v5980_v35  ;;  %v9452_v1 = vrot.slane %v5583_v3, %v5641_v21 }
  0xa4   :  { %v5993_v36 = vpop.permute.xlu1 %4537  ;;  %v5995_v13 = vpop.permute.xlu0 %4532  ;;  %v5999_v2 = vsel %vm356_vm13, %v353_v62, %v5989_v28  ;;  %v6002_v12 = vsel %vm356_vm13, %v352_v58, %v166_v63  ;;  %v6006_v6 = vsel %vm356_vm13, %v354_v27, %v5985_v52 }
  0xa5   :  { %9449 = vst [vmem:[#allocation19_spill] sm:$0xff] %v5999_v2  ;;  %9450 = vst [vmem:[#allocation20_spill] sm:$0xff] %v6002_v12  ;;  %v9211_v54 = vunpack.i.l.bf16 %v5995_v13  ;;  %v4831_v7 = vpack.i.bf16 %v5729_v42, %v9452_v1 }
  0xa6   :  { %9451 = vst [vmem:[#allocation21_spill] sm:$0xff] %v6006_v6  ;;  %4827 = vrot.lane.b32.xlu1 %v4816_v53, %s5541_s18  ;;  %4822 = vrot.lane.b32.xlu0 %v4811_v31, %s5541_s18 }
  0xa7   :  { %v6018_v58 = vsel %vm9233_vm12, %v4530_v18, %v9211_v54 }
  0xa8   :  { %v6020_v62 = vpop.permute.xlu1 %4547  ;;  %v6022_v27 = vpop.permute.xlu0 %4542  ;;  %v6026_v63 = vsel %vm356_vm13, %v355_v46, %v6018_v58 }
  0xa9   :  { %9453 = vst [vmem:[#allocation22_spill] sm:$0xff] %v6026_v63 }
  0xaa   :  { %4837 = vrot.lane.b32.xlu1 %v4811_v31, %s5542_s19  ;;  %4832 = vrot.lane.b32.xlu0 %v4831_v7, %s5541_s18 }
  0xac   :  { %v6030_v3 = vpop.permute.xlu1 %4557  ;;  %v6032_v21 = vpop.permute.xlu0 %4552 }
  0xae   :  { %4847 = vrot.lane.b32.xlu1 %v4831_v7, %s5542_s19  ;;  %4842 = vrot.lane.b32.xlu0 %v4816_v53, %s5542_s19 }
  0xb0   :  { %v6036_v18 = vpop.permute.xlu1 %4567  ;;  %v6038_v1 = vpop.permute.xlu0 %4562 }
  0xb1   :  { %9454 = vst [vmem:[#allocation23_spill] sm:$0xff] %v6038_v1 }
  0xb2   :  { %4857 = vrot.lane.b32.xlu1 %v4816_v53, %s5543_s20  ;;  %4852 = vrot.lane.b32.xlu0 %v4811_v31, %s5543_s20 }
  0xb4   :  { %v6042_v46 = vpop.permute.xlu1 %4577  ;;  %v6044_v54 = vpop.permute.xlu0 %4572 }
  0xb5   :  { %v4580_v49 = vunpack.i.h.bf16 %v6042_v46  ;;  %v4579_v25 = vunpack.i.l.bf16 %v6042_v46  ;;  %v9461_v46 = vunpack.i.l.bf16 %v5845_v34 }
  0xb6   :  { %4867 = vrot.lane.b32.xlu1 %v4811_v31, %s5544_s21  ;;  %4862 = vrot.lane.b32.xlu0 %v4831_v7, %s5543_s20  ;;  %v6062_v31 = vpack.i.bf16 %v5600_v9, %v5603_v10 }
  0xb8   :  { %v6048_v6 = vpop.permute.xlu1 %4587  ;;  %v4583_v63 = vpop.permute.xlu0 %4582 }
  0xb9   :  { %v4585_v33 = vunpack.i.h.bf16 %v4583_v63  ;;  %v4584_v32 = vunpack.i.l.bf16 %v4583_v63  ;;  %v432_v63 = vsel %vm9296_vm0, %v5596_v8, %v9459_v26  ;;  %v402_v8 = vsel %vm401_vm14, %v4579_v25, %v4580_v49 }
  0xba   :  { %4877 = vrot.lane.b32.xlu1 %v4831_v7, %s5544_s21  ;;  %4872 = vrot.lane.b32.xlu0 %v4816_v53, %s5544_s21 }
  0xbb   :  { %v404_v50 = vsel %vm401_vm14, %v4584_v32, %v4585_v33  ;;  %v403_v43 = vsel %vm401_vm14, %v4580_v49, %v4584_v32 }
  0xbc   :  { %v6052_v12 = vpop.permute.xlu1 %4597  ;;  %v6054_v2 = vpop.permute.xlu0 %4592  ;;  %v438_v26 = vsel %vm9264_vm7, %v5933_v15, %v404_v50  ;;  %v437_v39 = vsel %vm9264_vm7, %v5884_v0, %v403_v43  ;;  %v4535_v43 = vunpack.i.h.bf16 %v5995_v13  ;;  %v9463_v15 = vunpack.i.l.bf16 %v5948_v4 }
  0xbd   :  { %v442_v50 = vsel %vm9263_vm9, %v437_v39, %v5910_v5 }
  0xbe   :  { %4887 = vrot.lane.b32.xlu1 %v5711_v38, %s5548_s25  ;;  %4882 = vrot.lane.b32.xlu0 %v5616_v14, %s5546_s23  ;;  %v447_v5 = vsel %vm351_vm11, %v442_v50, %v5972_v60 }
  0xc0   :  { %v6064_v30 = vpop.permute.xlu1 %4607  ;;  %v6066_v7 = vpop.permute.xlu0 %4602 }
  0xc2   :  { %4897 = vrot.lane.b32.xlu1 %v6062_v31, %s5548_s25  ;;  %4892 = vrot.lane.b32.xlu0 %v5719_v40, %s5548_s25 }
  0xc4   :  { %v6072_v53 = vpop.permute.xlu1 %4617  ;;  %v6074_v24 = vpop.permute.xlu0 %4612 }
  0xc6   :  { %4907 = vrot.lane.b32.xlu1 %v5719_v40, %s5549_s26  ;;  %4902 = vrot.lane.b32.xlu0 %v5711_v38, %s5549_s26 }
  0xc8   :  { %v6080_v10 = vpop.permute.xlu1 %4627  ;;  %v6082_v14 = vpop.permute.xlu0 %4622 }
  0xc9   :  { %9455 = vst [vmem:[#allocation24_spill] sm:$0xff] %v6080_v10  ;;  %9456 = vst [vmem:[#allocation25_spill] sm:$0xff] %v6082_v14  ;;  %v433_v14 = vsel %vm331_vm3, %v432_v63, %v9460_v19  ;;  %v4505_v10 = vunpack.i.h.bf16 %v5921_v61 }
  0xca   :  { %4917 = vrot.lane.b32.xlu1 %v5711_v38, %s5550_s27  ;;  %4912 = vrot.lane.b32.xlu0 %v6062_v31, %s5549_s26 }
  0xcc   :  { %v6090_v22 = vpop.permute.xlu1 %4637  ;;  %v6092_v48 = vpop.permute.xlu0 %4632 }
  0xcd   :  { %9457 = vst [vmem:[#allocation26_spill] sm:$0xff] %v6090_v22  ;;  %9458 = vst [vmem:[#allocation27_spill] sm:$0xff] %v6092_v48  ;;  %v434_v22 = vsel %vm336_vm5, %v433_v14, %v9461_v46  ;;  %v4520_v48 = vunpack.i.h.bf16 %v5948_v4  ;;  %v9462_v14 = vunpack.i.l.bf16 %v5921_v61 }
  0xce   :  { %4927 = vrot.lane.b32.xlu1 %v6062_v31, %s5550_s27  ;;  %4922 = vrot.lane.b32.xlu0 %v5719_v40, %s5550_s27  ;;  %v439_v19 = vsel %vm9264_vm7, %v434_v22, %v4585_v33  ;;  %v436_v22 = vsel %vm9264_vm7, %v5889_v17, %v402_v8  ;;  %v443_v33 = vsel %vm9263_vm9, %v438_v26, %v5942_v45  ;;  %v4549_v8 = vunpack.i.l.bf16 %v6020_v62 }
  0xcf   :  { %v416_v46 = vsel %vm9291_vm8, %v9462_v14, %v4505_v10  ;;  %v421_v17 = vsel %vm9292_vm10, %v9463_v15, %v4520_v48  ;;  %v441_v45 = vsel %vm9263_vm9, %v436_v22, %v5914_v20  ;;  %v448_v10 = vsel %vm351_vm11, %v443_v33, %v5965_v11 }
  0xd0   :  { %v6115_v63 = vpop.permute.xlu1 %4647  ;;  %v6117_v32 = vpop.permute.xlu0 %4642  ;;  %v444_v49 = vsel %vm9263_vm9, %v439_v19, %v416_v46  ;;  %v9464_v48 = vunpack.i.l.bf16 %v5995_v13  ;;  %v4550_v20 = vunpack.i.h.bf16 %v6020_v62  ;;  %v435_v19 = vsel %vm9264_vm7, %v5894_v56, %v4579_v25 }
  0xd1   :  { %v449_v39 = vsel %vm351_vm11, %v444_v49, %v421_v17  ;;  %v453_v60 = vsel %vm356_vm13, %v448_v10, %v6018_v58  ;;  %v446_v14 = vsel %vm351_vm11, %v441_v45, %v5969_v55  ;;  %v4544_v62 = vunpack.i.l.bf16 %v6022_v27 }
  0xd2   :  { %4937 = vrot.lane.b32.xlu1 %v5719_v40, %s5551_s28  ;;  %4932 = vrot.lane.b32.xlu0 %v5711_v38, %s5551_s28  ;;  %v426_v4 = vsel %vm9233_vm12, %v9464_v48, %v4535_v43  ;;  %v452_v46 = vsel %vm356_vm13, %v447_v5, %v5985_v52  ;;  %v4540_v25 = vunpack.i.h.bf16 %v5993_v36  ;;  %v440_v56 = vsel %vm9263_vm9, %v435_v19, %v5896_v59 }
  0xd3   :  { %v454_v13 = vsel %vm356_vm13, %v449_v39, %v426_v4  ;;  %v431_v22 = vsel %vm9293_vm15, %v4549_v8, %v4550_v20  ;;  %v4445_v59 = vunpack.i.h.bf16 %v5800_v51  ;;  %vm9245_vm12 = vcmask 523264  }
  0xd4   :  { %v6137_v0 = vpop.permute.xlu1 %4657  ;;  %v6139_v61 = vpop.permute.xlu0 %4652  ;;  %v4460_v17 = vunpack.i.h.bf16 %v5820_v57  ;;  %v4475_v10 = vunpack.i.h.bf16 %v5845_v34  ;;  %v4560_v48 = vunpack.i.h.bf16 %v6030_v3  ;;  %v4539_v4 = vunpack.i.l.bf16 %v5993_v36 }
  0xd5   :  { %v4555_v20 = vunpack.i.h.bf16 %v6032_v21 }
  0xd6   :  { %4947 = vrot.lane.b32.xlu1 %v5711_v38, %s5552_s29  ;;  %4942 = vrot.lane.b32.xlu0 %v6062_v31, %s5551_s28  ;;  %v4545_v38 = vunpack.i.h.bf16 %v6022_v27  ;;  %v4966_v27 = vpack.i.bf16 %v454_v13, %v453_v60  ;;  %v4570_v13 = vunpack.i.h.bf16 %v6036_v18 }
  0xd8   :  { %v6161_v26 = vpop.permute.xlu1 %4667  ;;  %v6163_v11 = vpop.permute.xlu0 %4662  ;;  %v188_v52 = vsel %vm9293_vm15, %v4545_v38, %v4549_v8  ;;  %v187_v49 = vsel %vm9293_vm15, %v4544_v62, %v4545_v38  ;;  %v4554_v8 = vunpack.i.l.bf16 %v6032_v21  ;;  %v185_v21 = vsel %vm9293_vm15, %v4539_v4, %v4540_v25 }
  0xd9   :  { %v4976_v15 = vpack.i.bf16 %v431_v22, %v188_v52 }
  0xda   :  { %4957 = vrot.lane.b32.xlu1 %v6062_v31, %s5552_s29  ;;  %4952 = vrot.lane.b32.xlu0 %v5719_v40, %s5552_s29  ;;  %v451_v31 = vsel %vm356_vm13, %v446_v14, %v5989_v28  ;;  %v186_v40 = vsel %vm9293_vm15, %v4540_v25, %v4544_v62  ;;  %v445_v28 = vsel %vm351_vm11, %v440_v56, %v5929_v47  ;;  %v4559_v47 = vunpack.i.l.bf16 %v6030_v3 }
  0xdb   :  { %v4961_v33 = vpack.i.bf16 %v452_v46, %v451_v31  ;;  %v4971_v45 = vpack.i.bf16 %v187_v49, %v186_v40  ;;  %v450_v39 = vsel %vm356_vm13, %v445_v28, %v5980_v35  ;;  %v6219_v35 = vpack.i.bf16 %v5669_v29, %v5649_v23 }
  0xdc   :  { %v6182_v58 = vpop.permute.xlu1 %4677  ;;  %v6184_v55 = vpop.permute.xlu0 %4672  ;;  %v4981_v60 = vpack.i.bf16 %v4540_v25, %v450_v39  ;;  %v4569_v3 = vunpack.i.l.bf16 %v6036_v18  ;;  %v4564_v14 = vunpack.i.l.bf16 %v6038_v1  ;;  %v206_v36 = vsel %vm9237_vm6, %v4559_v47, %v4560_v48 }
  0xdd   :  { %v205_v62 = vsel %vm9237_vm6, %v4555_v20, %v4559_v47  ;;  %v204_v46 = vsel %vm9237_vm6, %v4554_v8, %v4555_v20  ;;  %v6236_v18 = vsel %vm9296_vm0, %v187_v49, %v206_v36  ;;  %v4600_v49 = vunpack.i.h.bf16 %v6052_v12 }
  0xde   :  { %4967 = vrot.lane.b32.xlu1 %v4966_v27, %s5553_s30  ;;  %4962 = vrot.lane.b32.xlu0 %v4961_v33, %s5553_s30  ;;  %v223_v31 = vsel %vm9245_vm12, %v4569_v3, %v4570_v13  ;;  %v207_v22 = vsel %vm9237_vm6, %v4560_v48, %v4564_v14  ;;  %v4574_v33 = vunpack.i.l.bf16 %v6044_v54  ;;  %v361_v25 = vsel %vm9296_vm0, %v185_v21, %v204_v46 }
  0xdf   :  { %v362_v28 = vsel %vm9296_vm0, %v186_v40, %v205_v62  ;;  %v4599_v39 = vunpack.i.l.bf16 %v6052_v12  ;;  %v6256_v4 = vsel %vm331_vm3, %v361_v25, %v223_v31  ;;  %v6259_v40 = vsel %vm9296_vm0, %v188_v52, %v207_v22 }
  0xe0   :  { %v6197_v43 = vpop.permute.xlu1 %4687  ;;  %v6199_v50 = vpop.permute.xlu0 %4682  ;;  %v9234_v20 = vunpack.i.h.bf16 %v6044_v54  ;;  %v4595_v8 = vunpack.i.h.bf16 %v6054_v2  ;;  %v4610_v52 = vunpack.i.h.bf16 %v6064_v30  ;;  %v4609_v14 = vunpack.i.l.bf16 %v6064_v30 }
  0xe1   :  { %v4605_v36 = vunpack.i.h.bf16 %v6066_v7  ;;  %v4604_v21 = vunpack.i.l.bf16 %v6066_v7  ;;  %v4620_v22 = vunpack.i.h.bf16 %v6072_v53  ;;  %v9235_v25 = vunpack.i.l.bf16 %v6072_v53 }
  0xe2   :  { %4977 = vrot.lane.b32.xlu1 %v4976_v15, %s5553_s30  ;;  %4972 = vrot.lane.b32.xlu0 %v4971_v45, %s5553_s30  ;;  %v4590_v15 = vunpack.i.h.bf16 %v6048_v6  ;;  %v4589_v45 = vunpack.i.l.bf16 %v6048_v6  ;;  %v224_v6 = vsel %vm9245_vm12, %v4570_v13, %v4574_v33  ;;  %v750_v13 = vsel %vm70_vm2, %v4599_v39, %v4600_v49 }
  0xe3   :  { %v6288_v30 = vsel %vm9245_vm12, %v4574_v33, %v9234_v20  ;;  %v6291_v31 = vsel %vm331_vm3, %v362_v28, %v224_v6  ;;  %v751_v51 = vsel %vm70_vm2, %v4600_v49, %v4604_v21  ;;  %v9467_v49 = vld [vmem:[#allocation24_spill] sm:$0xff]  ;;  %vm9479_vm6 = vcmask 769024  }
  0xe4   :  { %v6213_v38 = vpop.permute.xlu1 %4697  ;;  %v6215_v19 = vpop.permute.xlu0 %4692  ;;  %v731_v12 = vsel %vm51_vm1, %v4445_v59, %v4589_v45  ;;  %v732_v3 = vsel %vm51_vm1, %v4589_v45, %v4590_v15  ;;  %vm9486_vm12 = vmmov %vm9479_vm6 }
  0xe5   :  { %v991_v45 = vsel %vm9296_vm0, %v5600_v9, %v731_v12  ;;  %v992_v7 = vsel %vm9296_vm0, %v5704_v37, %v732_v3  ;;  %v767_v9 = vsel %vm89_vm4, %v4475_v10, %v4609_v14  ;;  %v768_v12 = vsel %vm89_vm4, %v4609_v14, %v4610_v52 }
  0xe6   :  { %4987 = vrot.lane.b32.xlu1 %v5726_v41, %s5545_s22  ;;  %4982 = vrot.lane.b32.xlu0 %v4981_v60, %s5553_s30  ;;  %v4594_v60 = vunpack.i.l.bf16 %v6054_v2  ;;  %v749_v2 = vsel %vm70_vm2, %v4460_v17, %v4599_v39  ;;  %v730_v39 = vsel %vm51_vm1, %v4595_v8, %v4445_v59  ;;  %v996_v6 = vsel %vm331_vm3, %v992_v7, %v750_v13  ;;  %v9468_v7 = vld [vmem:[#allocation25_spill] sm:$0xff] }
  0xe7   :  { %v995_v28 = vsel %vm331_vm3, %v991_v45, %v749_v2  ;;  %v748_v37 = vsel %vm70_vm2, %v4605_v36, %v4460_v17  ;;  %v4615_v59 = vunpack.i.h.bf16 %v6074_v24  ;;  %v990_v14 = vsel %vm9296_vm0, %v5729_v42, %v730_v39  ;;  %v9465_v2 = vld [vmem:[#allocation11_spill] sm:$0xff]  ;;  %v9466_v45 = vld [vmem:[#allocation12_spill] sm:$0xff] }
  0xe8   :  { %v6231_v56 = vpop.permute.xlu1 %4707  ;;  %v6233_v27 = vpop.permute.xlu0 %4702  ;;  %v733_v33 = vsel %vm51_vm1, %v4590_v15, %v4594_v60  ;;  %v4614_v15 = vunpack.i.l.bf16 %v6074_v24  ;;  %v1088_v57 = vsel %vm9296_vm0, %v9466_v45, %v4594_v60  ;;  %v1058_v17 = vsel %vm401_vm14, %v9235_v25, %v4620_v22 }
  0xe9   :  { %v993_v13 = vsel %vm9296_vm0, %v9465_v2, %v733_v33  ;;  %v4630_v36 = vunpack.i.h.bf16 %v9467_v49  ;;  %v6334_v24 = vunpack.i.l.bf16 %v9467_v49  ;;  %v4625_v5 = vunpack.i.h.bf16 %v9468_v7 }
  0xea   :  { %4997 = vrot.lane.b32.xlu1 %v5726_v41, %s5546_s23  ;;  %4992 = vrot.lane.b32.xlu0 %v5740_v44, %s5545_s22  ;;  %v4624_v20 = vunpack.i.l.bf16 %v9468_v7  ;;  %v6341_v42 = vsel %vm336_vm5, %v995_v28, %v767_v9  ;;  %v6344_v60 = vsel %vm336_vm5, %v996_v6, %v768_v12  ;;  %v994_v39 = vsel %vm331_vm3, %v990_v14, %v748_v37  ;;  %v9471_v28 = vld [vmem:[#allocation27_spill] sm:$0xff] }
  0xeb   :  { %9469 = vst [vmem:[#allocation11_spill] sm:$0xff] %v6341_v42  ;;  %9470 = vst [vmem:[#allocation12_spill] sm:$0xff] %v6344_v60  ;;  %v997_v33 = vsel %vm331_vm3, %v993_v13, %v751_v51  ;;  %v1089_v2 = vsel %vm331_vm3, %v1088_v57, %v4604_v21  ;;  %v766_v45 = vsel %vm89_vm4, %v4615_v59, %v4475_v10  ;;  %v4634_v9 = vunpack.i.l.bf16 %v9471_v28  ;;  %v9475_v13 = vld [vmem:[#allocation26_spill] sm:$0xff] }
  0xec   :  { %v6251_v48 = vpop.permute.xlu1 %4717  ;;  %v6253_v47 = vpop.permute.xlu0 %4712  ;;  %v769_v49 = vsel %vm89_vm4, %v4610_v52, %v4614_v15  ;;  %v1092_v12 = vsel %vm9264_vm7, %v6341_v42, %v1058_v17  ;;  %v1090_v37 = vsel %vm336_vm5, %v1089_v2, %v4614_v15  ;;  %v4649_v51 = vunpack.i.l.bf16 %v6115_v63 }
  0xed   :  { %v4645_v21 = vunpack.i.h.bf16 %v6117_v32  ;;  %v6367_v34 = vsel %vm9291_vm8, %v6334_v24, %v4630_v36  ;;  %v1059_v10 = vsel %vm401_vm14, %v4620_v22, %v4624_v20  ;;  %v1060_v52 = vsel %vm401_vm14, %v4624_v20, %v4625_v5 }
  0xee   :  { %5007 = vrot.lane.b32.xlu1 %v5726_v41, %s5548_s25  ;;  %5002 = vrot.lane.b32.xlu0 %v5740_v44, %s5546_s23  ;;  %9472 = vst [vmem:[#allocation24_spill] sm:$0xff] %v6367_v34  ;;  %v4664_v59 = vunpack.i.l.bf16 %v6163_v11  ;;  %v6375_v14 = vsel %vm336_vm5, %v994_v39, %v766_v45  ;;  %v6378_v15 = vsel %vm336_vm5, %v997_v33, %v769_v49  ;;  %v4639_v57 = vunpack.i.l.bf16 %v9475_v13 }
  0xef   :  { %9473 = vst [vmem:[#allocation25_spill] sm:$0xff] %v6375_v14  ;;  %9474 = vst [vmem:[#allocation27_spill] sm:$0xff] %v6378_v15  ;;  %v6382_v17 = vunpack.i.l.bf16 %v6117_v32  ;;  %v4635_v20 = vunpack.i.h.bf16 %v9471_v28  ;;  %v6388_v22 = vsel %vm9291_vm8, %v4630_v36, %v4634_v9  ;;  %v4660_v2 = vunpack.i.h.bf16 %v6137_v0 }
  0xf0   :  { %v6281_v62 = vpop.permute.xlu1 %4727  ;;  %v6283_v46 = vpop.permute.xlu0 %4722  ;;  %9476 = vst [vmem:[#allocation26_spill] sm:$0xff] %v6388_v22  ;;  %v6392_v39 = vunpack.i.l.bf16 %v6137_v0  ;;  %v1097_v32 = vsel %vm9263_vm9, %v1092_v12, %v6367_v34  ;;  %v1093_v49 = vsel %vm9264_vm7, %v6344_v60, %v1059_v10  ;;  %v1094_v28 = vsel %vm9264_vm7, %v6378_v15, %v1060_v52 }
  0xf1   :  { %v6405_v36 = vsel %vm9292_vm10, %v4645_v21, %v4649_v51  ;;  %v1095_v25 = vsel %vm9264_vm7, %v1090_v37, %v4625_v5  ;;  %v4650_v0 = vunpack.i.h.bf16 %v6115_v63  ;;  %v4654_v42 = vunpack.i.l.bf16 %v6139_v61 }
  0xf2   :  { %5017 = vrot.lane.b32.xlu1 %v5726_v41, %s5540_s17  ;;  %5012 = vrot.lane.b32.xlu0 %v5740_v44, %s5548_s25  ;;  %9477 = vst [vmem:[#allocation28_spill] sm:$0xff] %v6392_v39  ;;  %9478 = vst [vmem:[#allocation29_spill] sm:$0xff] %v6405_v36  ;;  %v6411_v16 = vsel %vm9479_vm6, %v4660_v2, %v4664_v59  ;;  %v1098_v12 = vsel %vm9263_vm9, %v1093_v49, %v6388_v22  ;;  %v4669_v52 = vunpack.i.l.bf16 %v6161_v26 }
  0xf3   :  { %9480 = vst [vmem:[#allocation30_spill] sm:$0xff] %v6411_v16  ;;  %v6419_v10 = vsel %vm9292_vm10, %v6382_v17, %v4645_v21  ;;  %v4665_v5 = vunpack.i.h.bf16 %v6163_v11  ;;  %v1072_v63 = vsel %vm9291_vm8, %v4635_v20, %v4639_v57  ;;  %v6427_v37 = vsel %vm9291_vm8, %v4634_v9, %v4635_v20 }
  0xf4   :  { %v6319_v8 = vpop.permute.xlu1 %4737  ;;  %v6321_v3 = vpop.permute.xlu0 %4732  ;;  %9481 = vst [vmem:[#allocation31_spill] sm:$0xff] %v6419_v10  ;;  %9482 = vst [vmem:[#allocation32_spill] sm:$0xff] %v6427_v37  ;;  %v1103_v15 = vsel %vm351_vm11, %v1098_v12, %v6405_v36  ;;  %v6433_v49 = vsel %vm9479_vm6, %v6392_v39, %v4660_v2  ;;  %v4679_v11 = vunpack.i.l.bf16 %v6182_v58  ;;  %v4675_v22 = vunpack.i.h.bf16 %v6184_v55 }
  0xf5   :  { %9483 = vst [vmem:[#allocation33_spill] sm:$0xff] %v6433_v49  ;;  %v6442_v57 = vunpack.i.l.bf16 %v6184_v55  ;;  %v1108_v9 = vsel %vm356_vm13, %v1103_v15, %v6411_v16  ;;  %v6447_v20 = vsel %vm9292_vm10, %v4649_v51, %v4650_v0  ;;  %v1102_v2 = vsel %vm351_vm11, %v1097_v32, %v6419_v10  ;;  %v9495_v16 = vld [vmem:[#allocation3_spill] sm:$0xff] }
  0xf6   :  { %5027 = vrot.lane.b32.xlu1 %v5726_v41, %s5549_s26  ;;  %5022 = vrot.lane.b32.xlu0 %v5740_v44, %s5540_s17  ;;  %9485 = vst [vmem:[#allocation35_spill] sm:$0xff] %v6447_v20  ;;  %v1077_v12 = vsel %vm9292_vm10, %v4650_v0, %v4654_v42  ;;  %v1082_v60 = vsel %vm9479_vm6, %v4665_v5, %v4669_v52  ;;  %v9246_v15 = vmov 0.0   ;;  %v4705_v36 = vunpack.i.h.bf16 %v6233_v27 }
  0xf7   :  { %9484 = vst [vmem:[#allocation34_spill] sm:$0xff] %v6442_v57  ;;  %v6457_v55 = vsel %vm9486_vm12, %v4664_v59, %v4665_v5  ;;  %v1107_v51 = vsel %vm356_vm13, %v1102_v2, %v6433_v49  ;;  %582 = vmatprep.mubr.f32.mxu0 %v9246_v15  ;;  %v1099_v42 = vsel %vm9263_vm9, %v1094_v28, %v6427_v37  ;;  %v9498_v49 = vld [vmem:[#allocation13_spill] sm:$0xff]  ;;  %v9499_v37 = vld [vmem:[#allocation4_spill] sm:$0xff]  ;;  %v4719_v10 = vunpack.i.l.bf16 %v6251_v48  ;;  %vm9512_vm12 = vmmov %vm9479_vm6 }
  0xf8   :  { %v6356_v7 = vpop.permute.xlu1 %4747  ;;  %v6358_v6 = vpop.permute.xlu0 %4742  ;;  %9487 = vst [vmem:[#allocation36_spill] sm:$0xff] %v6457_v55  ;;  %v1100_v59 = vsel %vm9263_vm9, %v1095_v25, %v1072_v63  ;;  %v5066_v52 = vpack.i.bf16 %v1108_v9, %v1107_v51  ;;  %671 = vmatprep.mubr.f32.mxu1 %v9246_v15  ;;  %v1104_v5 = vsel %vm351_vm11, %v1099_v42, %v6447_v20  ;;  %v9490_v25 = vunpack.i.l.bf16 %v6072_v53 }
  0xf9   :  { %v1105_v2 = vsel %vm351_vm11, %v1100_v59, %v1077_v12  ;;  %v4684_v63 = vunpack.i.l.bf16 %v6199_v50  ;;  %v1109_v9 = vsel %vm356_vm13, %v1104_v5, %v6457_v55 }
  0xfa   :  { %5037 = vrot.lane.b32.xlu1 %v5726_v41, %s5550_s27  ;;  %5032 = vrot.lane.b32.xlu0 %v5740_v44, %s5549_s26  ;;  %v1091_v28 = vsel %vm9264_vm7, %v6375_v14, %v9490_v25  ;;  %v1110_v12 = vsel %vm356_vm13, %v1105_v2, %v1082_v60  ;;  %v4690_v2 = vunpack.i.h.bf16 %v6197_v43  ;;  %v4689_v25 = vunpack.i.l.bf16 %v6197_v43 }
  0xfb   :  { %v1096_v59 = vsel %vm9263_vm9, %v1091_v28, %v6334_v24  ;;  %v5071_v5 = vpack.i.bf16 %v1110_v12, %v1109_v9  ;;  %v4699_v28 = vunpack.i.l.bf16 %v6213_v38  ;;  %v4694_v43 = vunpack.i.l.bf16 %v6215_v19 }
  0xfc   :  { %v6394_v33 = vpop.permute.xlu1 %4757  ;;  %v6396_v45 = vpop.permute.xlu0 %4752  ;;  %v1101_v60 = vsel %vm351_vm11, %v1096_v59, %v6382_v17  ;;  %v6532_v59 = vunpack.i.h.bf16 %v6161_v26  ;;  %v4710_v26 = vunpack.i.h.bf16 %v6231_v56 }
  0xfd   :  { %v4759_v1 = vunpack.i.l.bf16 %v6394_v33 }
  0xfe   :  { %5047 = vrot.lane.b32.xlu1 %v5726_v41, %s5551_s28  ;;  %5042 = vrot.lane.b32.xlu0 %v5740_v44, %s5550_s27  ;;  %9494 = vst [vmem:[#allocation42_spill] sm:$0xff] %v6532_v59 }
 0x100   :  { %v6435_v21 = vpop.permute.xlu1 %4767  ;;  %v6437_v34 = vpop.permute.xlu0 %4762 }
 0x102   :  { %5057 = vrot.lane.b32.xlu1 %v5726_v41, %s5552_s29  ;;  %5052 = vrot.lane.b32.xlu0 %v5740_v44, %s5551_s28  ;;  %v6467_v41 = vsel %vm331_vm3, %v6236_v18, %v6288_v30  ;;  %v6481_v18 = vsel %vm9293_vm15, %v4675_v22, %v4679_v11  ;;  %v6485_v30 = vsel %vm9293_vm15, %v6442_v57, %v4675_v22  ;;  %v4680_v22 = vunpack.i.h.bf16 %v6182_v58 }
 0x103   :  { %9488 = vst [vmem:[#allocation37_spill] sm:$0xff] %v6481_v18  ;;  %9489 = vst [vmem:[#allocation38_spill] sm:$0xff] %v6485_v30  ;;  %v5076_v42 = vpack.i.bf16 %v6481_v18, %v6485_v30  ;;  %v1106_v58 = vsel %vm356_vm13, %v1101_v60, %v6392_v39  ;;  %v4695_v60 = vunpack.i.h.bf16 %v6215_v19  ;;  %v4714_v19 = vunpack.i.l.bf16 %v6253_v47  ;;  %v9501_v30 = vld [vmem:[#allocation14_spill] sm:$0xff] }
 0x104   :  { %v6472_v32 = vpop.permute.xlu1 %4777  ;;  %v6474_v0 = vpop.permute.xlu0 %4772  ;;  %v4725_v18 = vunpack.i.h.bf16 %v6283_v46 }
 0x106   :  { %5067 = vrot.lane.b32.xlu1 %v5066_v52, %s5553_s30  ;;  %5062 = vrot.lane.b32.xlu0 %v5740_v44, %s5552_s29  ;;  %v6508_v52 = vunpack.i.h.bf16 %v9475_v13  ;;  %v1087_v44 = vsel %vm9293_vm15, %v4680_v22, %v4684_v63  ;;  %v6520_v13 = vsel %vm9293_vm15, %v4679_v11, %v4680_v22  ;;  %v5086_v63 = vpack.i.bf16 %v6442_v57, %v1106_v58 }
 0x107   :  { %9492 = vst [vmem:[#allocation40_spill] sm:$0xff] %v6520_v13  ;;  %v1386_v11 = vsel %vm51_vm1, %v4689_v25, %v4690_v2  ;;  %v6539_v22 = vunpack.i.h.bf16 %v6199_v50  ;;  %v4709_v58 = vunpack.i.l.bf16 %v6231_v56  ;;  %v4704_v50 = vunpack.i.l.bf16 %v6233_v27  ;;  %v9496_v56 = vld [vmem:[#allocation15_spill] sm:$0xff] }
 0x108   :  { %v6499_v51 = vpop.permute.xlu1 %4787  ;;  %v6501_v53 = vpop.permute.xlu0 %4782  ;;  %9491 = vst [vmem:[#allocation39_spill] sm:$0xff] %v6508_v52  ;;  %v1388_v27 = vsel %vm51_vm1, %v4694_v43, %v4695_v60 }
 0x10a   :  { %5077 = vrot.lane.b32.xlu1 %v5076_v42, %s5553_s30  ;;  %5072 = vrot.lane.b32.xlu0 %v5071_v5, %s5553_s30  ;;  %v6529_v42 = vunpack.i.h.bf16 %v6139_v61  ;;  %v5081_v5 = vpack.i.bf16 %v1087_v44, %v6520_v13  ;;  %v1385_v61 = vsel %vm51_vm1, %v4699_v28, %v4689_v25  ;;  %v4729_v28 = vunpack.i.l.bf16 %v6281_v62  ;;  %v9500_v13 = vld [vmem:[#allocation6_spill] sm:$0xff] }
 0x10b   :  { %v1645_v55 = vsel %vm9296_vm0, %v5649_v23, %v1385_v61  ;;  %v4720_v25 = vunpack.i.h.bf16 %v6251_v48  ;;  %v1405_v61 = vsel %vm70_vm2, %v4705_v36, %v4709_v58  ;;  %v4734_v48 = vunpack.i.l.bf16 %v6321_v3 }
 0x10c   :  { %v6523_v9 = vpop.permute.xlu1 %4797  ;;  %v6525_v12 = vpop.permute.xlu0 %4792  ;;  %9493 = vst [vmem:[#allocation41_spill] sm:$0xff] %v6529_v42 }
 0x10e   :  { %5087 = vrot.lane.b32.xlu1 %v5086_v63, %s5553_s30  ;;  %5082 = vrot.lane.b32.xlu0 %v5081_v5, %s5553_s30  ;;  %v1387_v63 = vsel %vm51_vm1, %v4690_v2, %v4694_v43  ;;  %v1646_v5 = vsel %vm9296_vm0, %v9495_v16, %v1386_v11  ;;  %v9497_v2 = vld [vmem:[#allocation7_spill] sm:$0xff]  ;;  %v1406_v11 = vsel %vm70_vm2, %v4709_v58, %v4710_v26 }
 0x10f   :  { %v1743_v20 = vsel %vm9296_vm0, %v9497_v2, %v4695_v60  ;;  %v1647_v16 = vsel %vm9296_vm0, %v9499_v37, %v1387_v63  ;;  %v1404_v43 = vsel %vm70_vm2, %v4704_v50, %v4705_v36  ;;  %v1403_v60 = vsel %vm70_vm2, %v4714_v19, %v4704_v50 }
 0x110   :  { %v6546_v15 = vpop.permute.xlu1 %4807  ;;  %v6548_v44 = vpop.permute.xlu0 %4802  ;;  %v4724_v2 = vunpack.i.l.bf16 %v6283_v46  ;;  %v1648_v37 = vsel %vm9296_vm0, %v9500_v13, %v1388_v27  ;;  %v1421_v63 = vsel %vm89_vm4, %v4729_v28, %v4719_v10  ;;  %v1744_v36 = vsel %vm331_vm3, %v1743_v20, %v4710_v26 }
 0x111   :  { %v1652_v58 = vsel %vm331_vm3, %v1648_v37, %v1406_v11  ;;  %v1650_v50 = vsel %vm331_vm3, %v1646_v5, %v1404_v43  ;;  %v1651_v13 = vsel %vm331_vm3, %v1647_v16, %v1405_v61  ;;  %v1422_v19 = vsel %vm89_vm4, %v4719_v10, %v4720_v25 }
 0x112   :  { %5097 = vrot.lane.b32.xlu1 %v9496_v56, %s5545_s22  ;;  %5092 = vrot.lane.b32.xlu0 %v9498_v49, %s5545_s22  ;;  %v1649_v46 = vsel %vm331_vm3, %v1645_v55, %v1403_v60  ;;  %v1423_v11 = vsel %vm89_vm4, %v4720_v25, %v4724_v2  ;;  %v1424_v26 = vsel %vm89_vm4, %v4724_v2, %v4725_v18  ;;  %v4740_v5 = vunpack.i.h.bf16 %v6319_v8 }
 0x113   :  { %v6602_v20 = vsel %vm336_vm5, %v1649_v46, %v1421_v63  ;;  %v4739_v16 = vunpack.i.l.bf16 %v6319_v8  ;;  %v6612_v55 = vsel %vm336_vm5, %v1650_v50, %v1422_v19  ;;  %v4735_v61 = vunpack.i.h.bf16 %v6321_v3 }
 0x114   :  { %v6572_v14 = vpop.permute.xlu1 %4817  ;;  %v6574_v23 = vpop.permute.xlu0 %4812  ;;  %9502 = vst [vmem:[#allocation3_spill] sm:$0xff] %v6602_v20  ;;  %v1746_v10 = vsel %vm9264_vm7, %v6602_v20, %v4734_v48  ;;  %9503 = vst [vmem:[#allocation15_spill] sm:$0xff] %v6612_v55  ;;  %v4750_v43 = vunpack.i.h.bf16 %v6356_v7  ;;  %v4749_v8 = vunpack.i.l.bf16 %v6356_v7  ;;  %v4745_v60 = vunpack.i.h.bf16 %v6358_v6 }
 0x115   :  { %v4744_v2 = vunpack.i.l.bf16 %v6358_v6  ;;  %v6627_v50 = vsel %vm336_vm5, %v1651_v13, %v1423_v11  ;;  %v6630_v3 = vsel %vm336_vm5, %v1652_v58, %v1424_v26  ;;  %v1745_v19 = vsel %vm336_vm5, %v1744_v36, %v4725_v18 }
 0x116   :  { %5107 = vrot.lane.b32.xlu1 %v9501_v30, %s5545_s22  ;;  %5102 = vrot.lane.b32.xlu0 %v6219_v35, %s5544_s21  ;;  %9504 = vst [vmem:[#allocation7_spill] sm:$0xff] %v6627_v50  ;;  %9505 = vst [vmem:[#allocation13_spill] sm:$0xff] %v6630_v3  ;;  %v1751_v46 = vsel %vm9263_vm9, %v1746_v10, %v6508_v52  ;;  %v1715_v7 = vsel %vm401_vm14, %v4739_v16, %v4740_v5  ;;  %v4760_v6 = vunpack.i.h.bf16 %v6394_v33 }
 0x117   :  { %v1750_v25 = vsel %vm9264_vm7, %v1745_v19, %v4740_v5  ;;  %v1714_v13 = vsel %vm401_vm14, %v4735_v61, %v4739_v16  ;;  %v1713_v58 = vsel %vm401_vm14, %v4734_v48, %v4735_v61  ;;  %v4755_v18 = vunpack.i.h.bf16 %v6396_v45 }
 0x118   :  { %v6595_v28 = vpop.permute.xlu1 %4827  ;;  %v6597_v27 = vpop.permute.xlu0 %4822  ;;  %v4754_v36 = vunpack.i.l.bf16 %v6396_v45  ;;  %v1727_v11 = vsel %vm9291_vm8, %v4749_v8, %v4750_v43  ;;  %v6649_v26 = vsel %vm9291_vm8, %v4745_v60, %v4749_v8  ;;  %v6653_v33 = vsel %vm9291_vm8, %v6508_v52, %v4744_v2 }
 0x119   :  { %9506 = vst [vmem:[#allocation4_spill] sm:$0xff] %v6649_v26  ;;  %9507 = vst [vmem:[#allocation6_spill] sm:$0xff] %v6653_v33  ;;  %v1756_v48 = vsel %vm351_vm11, %v1751_v46, %v6529_v42  ;;  %v6662_v45 = vsel %vm9291_vm8, %v4744_v2, %v4745_v60  ;;  %v4770_v10 = vunpack.i.h.bf16 %v6435_v21  ;;  %v4769_v61 = vunpack.i.l.bf16 %v6435_v21 }
 0x11a   :  { %5117 = vrot.lane.b32.xlu1 %v9496_v56, %s5546_s23  ;;  %5112 = vrot.lane.b32.xlu0 %v9498_v49, %s5546_s23  ;;  %9508 = vst [vmem:[#allocation14_spill] sm:$0xff] %v6662_v45  ;;  %v4765_v43 = vunpack.i.h.bf16 %v6437_v34  ;;  %v1749_v8 = vsel %vm9264_vm7, %v6630_v3, %v1715_v7  ;;  %v1747_v19 = vsel %vm9264_vm7, %v6612_v55, %v1713_v58  ;;  %v4764_v20 = vunpack.i.l.bf16 %v6437_v34  ;;  %v9523_v55 = vld [vmem:[#allocation5_spill] sm:$0xff] }
 0x11b   :  { %v1732_v52 = vsel %vm9292_vm10, %v4759_v1, %v4760_v6  ;;  %v1748_v60 = vsel %vm9264_vm7, %v6627_v50, %v1714_v13  ;;  %v6678_v21 = vsel %vm9292_vm10, %v4755_v18, %v4759_v1  ;;  %v6682_v2 = vsel %vm9292_vm10, %v6529_v42, %v4754_v36  ;;  %vm9516_vm7 = vmmov %vm9479_vm6 }
 0x11c   :  { %v6622_v37 = vpop.permute.xlu1 %4837  ;;  %v6624_v63 = vpop.permute.xlu0 %4832  ;;  %9509 = vst [vmem:[#allocation43_spill] sm:$0xff] %v6678_v21  ;;  %9510 = vst [vmem:[#allocation44_spill] sm:$0xff] %v6682_v2  ;;  %v6688_v46 = vsel %vm356_vm13, %v1756_v48, %v6532_v59  ;;  %v1755_v34 = vsel %vm9263_vm9, %v1750_v25, %v1727_v11  ;;  %v1752_v7 = vsel %vm9263_vm9, %v1747_v19, %v6653_v33  ;;  %v4804_v3 = vunpack.i.l.bf16 %v6548_v44 }
 0x11d   :  { %v1753_v1 = vsel %vm9263_vm9, %v1748_v60, %v6662_v45  ;;  %v1754_v6 = vsel %vm9263_vm9, %v1749_v8, %v6649_v26  ;;  %v1760_v42 = vsel %vm351_vm11, %v1755_v34, %v1732_v52  ;;  %v6703_v48 = vsel %vm9292_vm10, %v4754_v36, %v4755_v18  ;;  %vm9514_vm9 = vmmov %vm9479_vm6 }
 0x11e   :  { %5127 = vrot.lane.b32.xlu1 %v9498_v49, %s5548_s25  ;;  %5122 = vrot.lane.b32.xlu0 %v9501_v30, %s5546_s23  ;;  %9511 = vst [vmem:[#allocation45_spill] sm:$0xff] %v6703_v48  ;;  %v1737_v25 = vsel %vm9512_vm12, %v4769_v61, %v4770_v10  ;;  %v6707_v11 = vsel %vm9479_vm6, %v4765_v43, %v4769_v61  ;;  %v4780_v18 = vunpack.i.h.bf16 %v6472_v32  ;;  %v4779_v36 = vunpack.i.l.bf16 %v6472_v32 }
 0x11f   :  { %9513 = vst [vmem:[#allocation46_spill] sm:$0xff] %v6707_v11  ;;  %v1757_v19 = vsel %vm351_vm11, %v1752_v7, %v6682_v2  ;;  %v1759_v8 = vsel %vm351_vm11, %v1754_v6, %v6678_v21  ;;  %v6715_v60 = vsel %vm9514_vm9, %v6532_v59, %v4764_v20  ;;  %v6718_v52 = vsel %vm9516_vm7, %v4764_v20, %v4765_v43 }
 0x120   :  { %v6655_v5 = vpop.permute.xlu1 %4847  ;;  %v6657_v16 = vpop.permute.xlu0 %4842  ;;  %9515 = vst [vmem:[#allocation47_spill] sm:$0xff] %v6715_v60  ;;  %9517 = vst [vmem:[#allocation48_spill] sm:$0xff] %v6718_v52  ;;  %v4775_v10 = vunpack.i.h.bf16 %v6474_v0  ;;  %v4774_v61 = vunpack.i.l.bf16 %v6474_v0  ;;  %v1758_v34 = vsel %vm351_vm11, %v1753_v1, %v6703_v48  ;;  %v4790_v20 = vunpack.i.h.bf16 %v6499_v51 }
 0x121   :  { %v6737_v6 = vsel %vm356_vm13, %v1759_v8, %v6707_v11  ;;  %v6740_v32 = vsel %vm356_vm13, %v1760_v42, %v1737_v25  ;;  %v4789_v0 = vunpack.i.l.bf16 %v6499_v51  ;;  %v4785_v59 = vunpack.i.h.bf16 %v6501_v53 }
 0x122   :  { %5137 = vrot.lane.b32.xlu1 %v9498_v49, %s5540_s17  ;;  %5132 = vrot.lane.b32.xlu0 %v9496_v56, %s5548_s25  ;;  %v6746_v1 = vsel %vm356_vm13, %v1757_v19, %v6715_v60  ;;  %v6750_v48 = vsel %vm356_vm13, %v1758_v34, %v6718_v52  ;;  %v4784_v21 = vunpack.i.l.bf16 %v6501_v53  ;;  %v6756_v42 = vsel %vm9293_vm15, %v4779_v36, %v4780_v18 }
 0x123   :  { %v6759_v51 = vsel %vm9293_vm15, %v4775_v10, %v4779_v36  ;;  %v6763_v25 = vsel %vm9293_vm15, %v6539_v22, %v4774_v61  ;;  %v6770_v53 = vsel %vm9293_vm15, %v4774_v61, %v4775_v10  ;;  %v9518_v8 = vunpack.i.h.bf16 %v6213_v38 }
 0x124   :  { %v6697_v13 = vpop.permute.xlu1 %4857  ;;  %v6699_v58 = vpop.permute.xlu0 %4852  ;;  %v2043_v60 = vsel %vm51_vm1, %v4785_v59, %v4789_v0  ;;  %v4800_v19 = vunpack.i.h.bf16 %v6523_v9  ;;  %v2042_v26 = vsel %vm51_vm1, %v4784_v21, %v4785_v59  ;;  %v4799_v45 = vunpack.i.l.bf16 %v6523_v9  ;;  %v9521_v59 = vld [vmem:[#allocation9_spill] sm:$0xff] }
 0x125   :  { %v2040_v18 = vsel %vm51_vm1, %v4790_v20, %v9518_v8  ;;  %v9519_v20 = vmov %v9518_v8  ;;  %v4795_v52 = vunpack.i.h.bf16 %v6525_v12  ;;  %v4794_v11 = vunpack.i.l.bf16 %v6525_v12 }
 0x126   :  { %5147 = vrot.lane.b32.xlu1 %v9501_v30, %s5548_s25  ;;  %5142 = vrot.lane.b32.xlu0 %v9496_v56, %s5540_s17  ;;  %v2041_v8 = vsel %vm51_vm1, %v9519_v20, %v4784_v21  ;;  %v4810_v2 = vunpack.i.h.bf16 %v6546_v15  ;;  %v2300_v9 = vsel %vm9296_vm0, %v5669_v29, %v2040_v18  ;;  %v2398_v21 = vsel %vm9296_vm0, %v9521_v59, %v4789_v0  ;;  %v9524_v29 = vld [vmem:[#allocation8_spill] sm:$0xff] }
 0x127   :  { %v2302_v18 = vsel %vm9296_vm0, %v9524_v29, %v2042_v26  ;;  %v9525_v0 = vunpack.i.h.bf16 %v6253_v47  ;;  %v2399_v57 = vsel %vm331_vm3, %v2398_v21, %v4799_v45  ;;  %v2061_v50 = vsel %vm70_vm2, %v4795_v52, %v4799_v45 }
 0x128   :  { %v6731_v43 = vpop.permute.xlu1 %4867  ;;  %v6733_v7 = vpop.permute.xlu0 %4862  ;;  %v4809_v39 = vunpack.i.l.bf16 %v6546_v15  ;;  %v2060_v26 = vsel %vm70_vm2, %v4794_v11, %v4795_v52  ;;  %v4820_v15 = vunpack.i.h.bf16 %v6572_v14  ;;  %v4815_v47 = vunpack.i.h.bf16 %v6574_v23 }
 0x129   :  { %v2058_v59 = vsel %vm70_vm2, %v4800_v19, %v9525_v0  ;;  %v4814_v21 = vunpack.i.l.bf16 %v6574_v23  ;;  %v4830_v29 = vunpack.i.h.bf16 %v6595_v28  ;;  %vm9295_vm1 = vcmask 515072  }
 0x12a   :  { %5157 = vrot.lane.b32.xlu1 %v9496_v56, %s5549_s26  ;;  %5152 = vrot.lane.b32.xlu0 %v9498_v49, %s5549_s26  ;;  %vm260_vm7 = vcmask 506880   ;;  %vm9541_vm6 = vcmask 1044480  }
 0x12c   :  { %v6775_v34 = vpop.permute.xlu1 %4877  ;;  %v6777_v36 = vpop.permute.xlu0 %4872 }
 0x12d   :  { %v4879_v10 = vunpack.i.l.bf16 %v6775_v34  ;;  %v9276_v61 = vunpack.i.h.bf16 %v6777_v36 }
 0x12e   :  { %5167 = vrot.lane.b32.xlu1 %v9501_v30, %s5549_s26  ;;  %5162 = vrot.lane.b32.xlu0 %v9501_v30, %s5540_s17 }
 0x12f   :  { %v6801_v38 = vsel %vm9293_vm15, %v9276_v61, %v4879_v10  ;;  %v9522_v61 = vld [vmem:[#allocation10_spill] sm:$0xff]  ;;  %v4805_v10 = vunpack.i.h.bf16 %v6548_v44  ;;  %v4819_v44 = vunpack.i.l.bf16 %v6572_v14  ;;  %v2306_v14 = vsel %vm331_vm3, %v2302_v18, %v2060_v26 }
 0x130   :  { %9520 = vst [vmem:[#allocation49_spill] sm:$0xff] %v6801_v38  ;;  %v6809_v20 = vpop.permute.xlu1 %4887  ;;  %v6811_v12 = vpop.permute.xlu0 %4882  ;;  %v2303_v33 = vsel %vm9296_vm0, %v9522_v61, %v2043_v60  ;;  %v2301_v38 = vsel %vm9296_vm0, %v9523_v55, %v2041_v8  ;;  %v9526_v55 = vmov %v9525_v0  ;;  %v9527_v61 = vunpack.i.h.bf16 %v6281_v62 }
 0x131   :  { %v2059_v60 = vsel %vm70_vm2, %v9526_v55, %v4794_v11  ;;  %v2307_v62 = vsel %vm331_vm3, %v2303_v33, %v2061_v50  ;;  %v4829_v0 = vunpack.i.l.bf16 %v6595_v28  ;;  %v2079_v23 = vsel %vm89_vm4, %v4805_v10, %v4809_v39 }
 0x132   :  { %5177 = vrot.lane.b32.xlu1 %v9496_v56, %s5550_s27  ;;  %v2076_v19 = vsel %vm89_vm4, %v4810_v2, %v9527_v61  ;;  %v9528_v8 = vmov %v9527_v61  ;;  %5172 = vrot.lane.b32.xlu0 %v9498_v49, %s5550_s27  ;;  %v2304_v2 = vsel %vm331_vm3, %v2300_v9, %v2058_v59  ;;  %v2305_v55 = vsel %vm331_vm3, %v2301_v38, %v2059_v60 }
 0x133   :  { %v2077_v45 = vsel %vm89_vm4, %v9528_v8, %v4804_v3  ;;  %v2400_v61 = vsel %vm336_vm5, %v2399_v57, %v4809_v39  ;;  %v2078_v9 = vsel %vm89_vm4, %v4804_v3, %v4805_v10  ;;  %v6867_v33 = vsel %vm336_vm5, %v2304_v2, %v2076_v19 }
 0x134   :  { %v6848_v11 = vpop.permute.xlu1 %4897  ;;  %v6850_v52 = vpop.permute.xlu0 %4892  ;;  %v6864_v50 = vsel %vm336_vm5, %v2305_v55, %v2077_v45  ;;  %9530 = vst [vmem:[#allocation10_spill] sm:$0xff] %v6867_v33  ;;  %v4825_v28 = vunpack.i.h.bf16 %v6597_v27  ;;  %v2370_v57 = vsel %vm401_vm14, %v4819_v44, %v4820_v15  ;;  %v2369_v39 = vsel %vm401_vm14, %v4815_v47, %v4819_v44 }
 0x135   :  { %9529 = vst [vmem:[#allocation9_spill] sm:$0xff] %v6864_v50  ;;  %v2368_v38 = vsel %vm401_vm14, %v4814_v21, %v4815_v47  ;;  %v6876_v18 = vunpack.i.l.bf16 %v6597_v27  ;;  %v6883_v59 = vsel %vm9291_vm8, %v4829_v0, %v4830_v29  ;;  %v4840_v60 = vunpack.i.h.bf16 %v6622_v37 }
 0x136   :  { %5187 = vrot.lane.b32.xlu1 %v9501_v30, %s5550_s27  ;;  %5182 = vrot.lane.b32.xlu0 %v6219_v35, %s5541_s18  ;;  %9531 = vst [vmem:[#allocation5_spill] sm:$0xff] %v6883_v59  ;;  %v6887_v26 = vunpack.i.l.bf16 %v6622_v37  ;;  %v4834_v19 = vunpack.i.l.bf16 %v6624_v63  ;;  %v6891_v8 = vsel %vm336_vm5, %v2306_v14, %v2078_v9  ;;  %v6894_v27 = vsel %vm336_vm5, %v2307_v62, %v2079_v23 }
 0x137   :  { %9533 = vst [vmem:[#allocation50_spill] sm:$0xff] %v6891_v8  ;;  %9534 = vst [vmem:[#allocation51_spill] sm:$0xff] %v6894_v27  ;;  %vm9535_vm2 = vcmask 1043456   ;;  %v6908_v62 = vsel %vm9291_vm8, %v4825_v28, %v4829_v0  ;;  %v4835_v14 = vunpack.i.h.bf16 %v6624_v63  ;;  %v4884_v63 = vunpack.i.l.bf16 %v6811_v12 }
 0x138   :  { %v6878_v3 = vpop.permute.xlu1 %4907  ;;  %v6880_v10 = vpop.permute.xlu0 %4902  ;;  %9532 = vst [vmem:[#allocation8_spill] sm:$0xff] %v6887_v26  ;;  %v2405_v45 = vsel %vm9535_vm2, %v2400_v61, %v4820_v15  ;;  %vm9536_vm4 = vmmov %vm9535_vm2  ;;  %v6929_v23 = vsel %vm9292_vm10, %v6887_v26, %v4840_v60  ;;  %v2382_v9 = vsel %vm9291_vm8, %v4830_v29, %v4834_v19  ;;  %v4895_v19 = vunpack.i.h.bf16 %v6850_v52 }
 0x139   :  { %v2401_v44 = vsel %vm9536_vm4, %v6867_v33, %v4814_v21  ;;  %vm9537_vm9 = vmmov %vm9535_vm2  ;;  %9540 = vst [vmem:[#allocation52_spill] sm:$0xff] %v6908_v62  ;;  %v6918_v21 = vsel %vm9291_vm8, %v6876_v18, %v4825_v28  ;;  %vm279_vm4 = vcmask 498688   ;;  %v4889_v28 = vunpack.i.l.bf16 %v6809_v20 }
 0x13a   :  { %5197 = vrot.lane.b32.xlu1 %v9496_v56, %s5551_s28  ;;  %v2404_v37 = vsel %vm9537_vm9, %v6894_v27, %v2370_v57  ;;  %vm9538_vm14 = vmmov %vm9535_vm2  ;;  %5192 = vrot.lane.b32.xlu0 %v9498_v49, %s5551_s28  ;;  %9542 = vst [vmem:[#allocation53_spill] sm:$0xff] %v6918_v21  ;;  %v4890_v57 = vunpack.i.h.bf16 %v6809_v20  ;;  %vm298_vm9 = vcmask 490496   ;;  %v4905_v33 = vunpack.i.h.bf16 %v6880_v10 }
 0x13b   :  { %v2402_v47 = vsel %vm9538_vm14, %v6864_v50, %v2368_v38  ;;  %vm9539_vm12 = vmmov %vm9535_vm2  ;;  %v6914_v15 = vsel %vm9541_vm6, %v2404_v37, %v6883_v59  ;;  %9544 = vst [vmem:[#allocation54_spill] sm:$0xff] %v6929_v23  ;;  %v4899_v38 = vunpack.i.l.bf16 %v6848_v11 }
 0x13c   :  { %v2403_v2 = vsel %vm9539_vm12, %v6891_v8, %v2369_v39  ;;  %vm9543_vm2 = vmmov %vm9541_vm6  ;;  %v6923_v61 = vpop.permute.xlu1 %4917  ;;  %v6925_v0 = vpop.permute.xlu0 %4912  ;;  %v4844_v39 = vunpack.i.l.bf16 %v6657_v16 }
 0x13d   :  { %v2406_v55 = vsel %vm9543_vm2, %v2401_v44, %v6876_v18  ;;  %v4894_v44 = vunpack.i.l.bf16 %v6850_v52  ;;  %vm9545_vm14 = vmmov %vm9543_vm2 }
 0x13e   :  { %5207 = vrot.lane.b32.xlu1 %v9501_v30, %s5551_s28  ;;  %v2407_v37 = vsel %vm9545_vm14, %v2402_v47, %v6918_v21  ;;  %vm9546_vm12 = vmmov %vm9543_vm2  ;;  %v6948_v20 = vsel %vm351_vm11, %v2406_v55, %v6887_v26  ;;  %5202 = vrot.lane.b32.xlu0 %v6219_v35, %s5542_s19  ;;  %v6959_v47 = vsel %vm9291_vm8, %v4835_v14, %v6334_v24  ;;  %vm9549_vm14 = vcmask 523264  }
 0x13f   :  { %v6944_v29 = vsel %vm9546_vm12, %v2403_v2, %v6908_v62  ;;  %v6955_v59 = vsel %vm351_vm11, %v2407_v37, %v6929_v23  ;;  %vm9547_vm6 = vmmov %vm9543_vm2  ;;  %vm9299_vm2 = vcmask 261120   ;;  %v243_v21 = vsel %vm9295_vm1, %v4889_v28, %v4890_v57 }
 0x140   :  { %v6962_v2 = vsel %vm9547_vm6, %v2405_v45, %v2382_v9  ;;  %v6965_v55 = vpop.permute.xlu1 %4927  ;;  %v4904_v37 = vunpack.i.l.bf16 %v6880_v10  ;;  %v4923_v23 = vpop.permute.xlu0 %4922  ;;  %v6972_v24 = vsel %vm9292_vm10, %v4840_v60, %v4844_v39  ;;  %v9548_v45 = vunpack.i.h.bf16 %v6044_v54 }
 0x141   :  { %v242_v9 = vsel %vm9295_vm1, %v4899_v38, %v4889_v28  ;;  %v244_v27 = vsel %vm9295_vm1, %v4890_v57, %v4894_v44  ;;  %v245_v52 = vsel %vm9295_vm1, %v4894_v44, %v4895_v19  ;;  %v4909_v62 = vunpack.i.l.bf16 %v6878_v3 }
 0x142   :  { %v226_v14 = vsel %vm9549_vm14, %v9548_v45, %v4884_v63  ;;  %5217 = vrot.lane.b32.xlu1 %v9496_v56, %s5552_s29  ;;  %v4920_v10 = vunpack.i.h.bf16 %v6923_v61  ;;  %v4919_v60 = vunpack.i.l.bf16 %v6923_v61  ;;  %5212 = vrot.lane.b32.xlu0 %v9498_v49, %s5552_s29  ;;  %v9550_v54 = vunpack.i.h.bf16 %v6657_v16 }
 0x143   :  { %v370_v57 = vsel %vm336_vm5, %v6291_v31, %v243_v21  ;;  %v4910_v56 = vunpack.i.h.bf16 %v6878_v3  ;;  %v4914_v63 = vunpack.i.l.bf16 %v6925_v0  ;;  %v368_v44 = vsel %vm331_vm3, %v6259_v40, %v226_v14 }
 0x144   :  { %v6990_v28 = vsel %vm9292_vm10, %v4844_v39, %v9550_v54  ;;  %v4938_v38 = vpop.permute.xlu1 %4937  ;;  %v369_v61 = vsel %vm336_vm5, %v6256_v4, %v242_v9  ;;  %v371_v49 = vsel %vm336_vm5, %v6467_v41, %v244_v27  ;;  %v262_v39 = vsel %vm260_vm7, %v4904_v37, %v4905_v33  ;;  %v4933_v19 = vpop.permute.xlu0 %4932 }
 0x145   :  { %v372_v45 = vsel %vm336_vm5, %v368_v44, %v245_v52  ;;  %v4929_v31 = vunpack.i.l.bf16 %v6965_v55  ;;  %v4935_v3 = vunpack.i.h.bf16 %v4933_v19  ;;  %v4934_v21 = vunpack.i.l.bf16 %v4933_v19 }
 0x146   :  { %5227 = vrot.lane.b32.xlu1 %v9501_v30, %s5552_s29  ;;  %v263_v40 = vsel %vm260_vm7, %v4905_v33, %v4909_v62  ;;  %v281_v14 = vsel %vm279_vm4, %v4919_v60, %v4920_v10  ;;  %v4925_v4 = vunpack.i.h.bf16 %v4923_v23  ;;  %v4924_v9 = vunpack.i.l.bf16 %v4923_v23  ;;  %5222 = vrot.lane.b32.xlu0 %v6219_v35, %s5543_s20 }
 0x147   :  { %v264_v41 = vsel %vm260_vm7, %v4909_v62, %v4910_v56  ;;  %v261_v27 = vsel %vm260_vm7, %v4914_v63, %v4904_v37  ;;  %v300_v54 = vsel %vm298_vm9, %v4934_v21, %v4935_v3  ;;  %vm9551_vm12 = vcmask 1043456  }
 0x148   :  { %v4948_v52 = vpop.permute.xlu1 %4947  ;;  %v374_v44 = vsel %vm9551_vm12, %v370_v57, %v262_v39  ;;  %v4940_v19 = vunpack.i.h.bf16 %v4938_v38  ;;  %v4939_v30 = vunpack.i.l.bf16 %v4938_v38  ;;  %v7015_v50 = vpop.permute.xlu0 %4942  ;;  %vm9552_vm6 = vmmov %vm9551_vm12  ;;  %v280_v26 = vsel %vm279_vm4, %v4929_v31, %v4919_v60 }
 0x149   :  { %v4950_v8 = vunpack.i.h.bf16 %v4948_v52  ;;  %v4949_v33 = vunpack.i.l.bf16 %v4948_v52  ;;  %v375_v23 = vsel %vm9552_vm6, %v371_v49, %v263_v40  ;;  %v4944_v35 = vunpack.i.l.bf16 %v7015_v50  ;;  %vm9556_vm12 = vmmov %vm9552_vm6  ;;  %v9557_v40 = vld [vmem:[#allocation19_spill] sm:$0xff] }
 0x14a   :  { %v9553_v62 = vpack.i.bf16 %v6740_v32, %v6737_v6  ;;  %vm9554_vm14 = vcmask 1044480   ;;  %v283_v57 = vsel %vm279_vm4, %v4924_v9, %v4925_v4  ;;  %v9555_v56 = vpack.i.bf16 %v6750_v48, %v6746_v1 }
 0x14b   :  { %v378_v37 = vsel %vm9554_vm14, %v374_v44, %v281_v14  ;;  %v319_v63 = vsel %vm9299_vm2, %v4949_v33, %v4950_v8  ;;  %v376_v38 = vsel %vm9556_vm12, %v372_v45, %v264_v41  ;;  %v373_v49 = vsel %vm9552_vm6, %v369_v61, %v261_v27 }
 0x14c   :  { %5237 = vrot.lane.b32.xlu1 %v9553_v62, %s5553_s30  ;;  %5232 = vrot.lane.b32.xlu0 %v9555_v56, %s5553_s30  ;;  %v382_v60 = vsel %vm351_vm11, %v378_v37, %v300_v54  ;;  %v282_v6 = vsel %vm279_vm4, %v4920_v10, %v4924_v9  ;;  %v299_v32 = vsel %vm298_vm9, %v4944_v35, %v4934_v21  ;;  %v7036_v39 = vpop.permute.xlu1 %4957  ;;  %vm9298_vm14 = vcmask 252928   ;;  %v4953_v1 = vpop.permute.xlu0 %4952 }
 0x14d   :  { %v386_v31 = vsel %vm356_vm13, %v382_v60, %v319_v63  ;;  %v4959_v48 = vunpack.i.l.bf16 %v7036_v39  ;;  %vm9558_vm8 = vcmask 1044480   ;;  %v302_v45 = vsel %vm298_vm9, %v4939_v30, %v4940_v19 }
 0x14e   :  { %v4331_v14 = vpack.c.bf16 %v386_v31, %v9557_v40  ;;  %v377_v4 = vsel %vm9558_vm8, %v373_v49, %v280_v26  ;;  %v301_v61 = vsel %vm298_vm9, %v4935_v3, %v4939_v30  ;;  %v4955_v41 = vunpack.i.h.bf16 %v4953_v1  ;;  %vm9560_vm12 = vmmov %vm9558_vm8  ;;  %v9564_v49 = vld [vmem:[#allocation22_spill] sm:$0xff]  ;;  %v9566_v40 = vld [vmem:[#allocation21_spill] sm:$0xff] }
 0x14f   :  { %v4954_v10 = vunpack.i.l.bf16 %v4953_v1  ;;  %v9559_v21 = vpack.i.bf16 %v6756_v42, %v6759_v51  ;;  %v380_v9 = vsel %vm9560_vm12, %v376_v38, %v283_v57  ;;  %v4849_v27 = vunpack.i.l.bf16 %v6655_v5  ;;  %v9562_v57 = vld [vmem:[#allocation20_spill] sm:$0xff]  ;;  %v9563_v38 = vld [vmem:[#allocation17_spill] sm:$0xff] }
 0x150   :  { %v9561_v52 = vpack.i.bf16 %v6770_v53, %v6763_v25  ;;  %4332 = vmatprep.subr.bf16.mxu0 %v4331_v14  ;;  %v318_v26 = vsel %vm9299_vm2, %v4959_v48, %v4949_v33  ;;  %v381_v3 = vsel %vm351_vm11, %v377_v4, %v299_v32  ;;  %v379_v54 = vsel %vm9558_vm8, %v375_v23, %v282_v6  ;;  %v4968_v44 = vpop.permute.xlu1 %4967  ;;  %v7062_v37 = vpop.permute.xlu0 %4962 }
 0x151   :  { %5247 = vrot.lane.b32.xlu1 %v9559_v21, %s5553_s30  ;;  %v385_v42 = vsel %vm356_vm13, %v381_v3, %v318_v26  ;;  %v321_v19 = vsel %vm9299_vm2, %v4954_v10, %v4955_v41  ;;  %v384_v30 = vsel %vm351_vm11, %v380_v9, %v302_v45  ;;  %v320_v35 = vsel %vm9299_vm2, %v4950_v8, %v4954_v10 }
 0x152   :  { %5242 = vrot.lane.b32.xlu0 %v9561_v52, %s5553_s30  ;;  %v4859_v62 = vunpack.i.l.bf16 %v6697_v13  ;;  %v4333_v56 = vpack.c.bf16 %v385_v42, %v9562_v57  ;;  %v388_v33 = vsel %vm356_vm13, %v384_v30, %v321_v19  ;;  %v383_v63 = vsel %vm351_vm11, %v379_v54, %v301_v61  ;;  %v4286_v42 = vld [vmem:[%s9198_s1 + $0x70] sm:$0xff] }
 0x153   :  { %v4855_v23 = vunpack.i.h.bf16 %v6699_v58  ;;  %v7069_v60 = vunpack.i.l.bf16 %v6699_v58  ;;  %v4341_v8 = vpack.c.bf16 %v388_v33, %v9564_v49  ;;  %v387_v6 = vsel %vm356_vm13, %v383_v63, %v320_v35 }
 0x154   :  { %v4970_v32 = vunpack.i.h.bf16 %v4968_v44  ;;  %v4969_v31 = vunpack.i.l.bf16 %v4968_v44  ;;  %v4965_v48 = vunpack.i.h.bf16 %v7062_v37  ;;  %v9565_v1 = vpack.i.bf16 %v6539_v22, %v6688_v46  ;;  %4334 = vmatpush1.bf16.msra.mxu0 %v4333_v56  ;;  %v4978_v10 = vpop.permute.xlu1 %4977  ;;  %v9571_v44 = vld [vmem:[#allocation16_spill] sm:$0xff] }
 0x155   :  { %5257 = vrot.lane.b32.xlu1 %v9563_v38, %s5545_s22  ;;  %v4343_v58 = vpack.c.bf16 %v387_v6, %v9566_v40  ;;  %v9567_v14 = vunpack.i.h.bf16 %v6655_v5  ;;  %v9568_v45 = vunpack.i.h.bf16 %v6657_v16  ;;  %v2413_v41 = vsel %vm351_vm11, %v6944_v29, %v6972_v24  ;;  %4342 = vmatprep.subr.bf16.mxu1 %v4341_v8  ;;  %v4973_v16 = vpop.permute.xlu0 %4972 }
 0x156   :  { %5252 = vrot.lane.b32.xlu0 %v9565_v1, %s5553_s30  ;;  %v4964_v46 = vunpack.i.l.bf16 %v7062_v37  ;;  %v2414_v21 = vsel %vm351_vm11, %v6914_v15, %v6990_v28  ;;  %v4860_v5 = vunpack.i.h.bf16 %v6697_v13  ;;  %v4979_v9 = vunpack.i.l.bf16 %v4978_v10 }
 0x157   :  { %v7085_v4 = vsel %vm9292_vm10, %v9567_v14, %v6382_v17  ;;  %v2387_v61 = vsel %vm9292_vm10, %v9568_v45, %v4849_v27  ;;  %v4980_v17 = vunpack.i.h.bf16 %v4978_v10  ;;  %4344 = vmatpush1.bf16.msra.mxu1 %v4343_v58  ;;  %vm9297_vm6 = vcmask 203776  }
 0x158   :  { %vm9569_vm12 = vcmask 769024   ;;  %v4864_v29 = vunpack.i.l.bf16 %v6733_v7  ;;  %v4975_v52 = vunpack.i.h.bf16 %v4973_v16  ;;  %v4974_v26 = vunpack.i.l.bf16 %v4973_v16  ;;  %v7121_v57 = vpop.permute.xlu1 %4987 }
 0x159   :  { %v7099_v27 = vsel %vm9569_vm12, %v4855_v23, %v4859_v62  ;;  %5267 = vrot.lane.b32.xlu1 %v9563_v38, %s5546_s23  ;;  %vm9570_vm8 = vmmov %vm9569_vm12  ;;  %v484_v13 = vsel %vm9298_vm14, %v4969_v31, %v4970_v32  ;;  %v483_v3 = vsel %vm9298_vm14, %v4965_v48, %v4969_v31  ;;  %v488_v54 = vsel %vm9298_vm14, %v4979_v9, %v4980_v17  ;;  %v4983_v49 = vpop.permute.xlu0 %4982  ;;  %v9575_v17 = vld [vmem:[#allocation28_spill] sm:$0xff] }
 0x15a   :  { %v7106_v15 = vsel %vm9570_vm8, %v7069_v60, %v4855_v23  ;;  %5262 = vrot.lane.b32.xlu0 %v9571_v44, %s5545_s22  ;;  %vm5555_vm12 = vmmov 1   ;;  %v482_v19 = vsel %vm9298_vm14, %v4964_v46, %v4965_v48  ;;  %v4345_v30 = vpack.c.bf16 %v488_v54, %v484_v13  ;;  %v9577_v13 = vld [vmem:[#allocation34_spill] sm:$0xff] }
 0x15b   :  { %vm7114_vm10 = vmpackc.low %vm9296_vm0, %vm5555_vm12  ;;  %v487_v35 = vsel %vm9298_vm14, %v4975_v52, %v4979_v9  ;;  %v486_v37 = vsel %vm9298_vm14, %v4974_v26, %v4975_v52  ;;  %v4870_v56 = vunpack.i.h.bf16 %v6731_v43  ;;  %v7125_v33 = vunpack.i.l.bf16 %v6731_v43 }
 0x15c   :  { %v4335_v63 = vpack.c.bf16 %v486_v37, %v482_v19  ;;  %v4348_v23 = vpack.c.bf16 %v487_v35, %v483_v3  ;;  %v4865_v8 = vunpack.i.h.bf16 %v6733_v7  ;;  %v2392_v6 = vsel %vm9570_vm8, %v4860_v5, %v4864_v29  ;;  %4347 = vmatprep.subr.msk.bf16.mxu1 %vm7114_vm10, %v4345_v30  ;;  %vm9574_vm12 = vmmov %vm9570_vm8  ;;  %v7153_v58 = vpop.permute.xlu1 %4997  ;;  %v9578_v37 = vld [vmem:[#allocation23_spill] sm:$0xff] }
 0x15d   :  { %v4985_v32 = vunpack.i.h.bf16 %v4983_v49  ;;  %v4984_v31 = vunpack.i.l.bf16 %v4983_v49  ;;  %5277 = vrot.lane.b32.xlu1 %v9563_v38, %s5548_s25  ;;  %v2415_v48 = vsel %vm351_vm11, %v6962_v2, %v2387_v61  ;;  %v7136_v43 = vsel %vm9574_vm12, %v4859_v62, %v4860_v5  ;;  %v4993_v10 = vpop.permute.xlu0 %4992 }
 0x15e   :  { %v4874_v1 = vunpack.i.l.bf16 %v6777_v36  ;;  %5272 = vrot.lane.b32.xlu0 %v9571_v44, %s5546_s23  ;;  %4337 = vmatprep.subr.msk.bf16.mxu0 %vm7114_vm10, %v4335_v63  ;;  %v7146_v7 = vsel %vm356_vm13, %v6955_v59, %v7106_v15  ;;  %v4880_v40 = vunpack.i.h.bf16 %v6775_v34  ;;  %v7157_v14 = vsel %vm356_vm13, %v2413_v41, %v7099_v27 }
 0x15f   :  { %v485_v2 = vsel %vm9298_vm14, %v4985_v32, %v4974_v26  ;;  %v481_v62 = vsel %vm9298_vm14, %v4984_v31, %v4964_v46  ;;  %4350 = vmatpush1.bf16.msk.msra.mxu1 %vm7114_vm10, %v4348_v23  ;;  %v4990_v45 = vunpack.i.h.bf16 %v7121_v57  ;;  %v4989_v59 = vunpack.i.l.bf16 %v7121_v57  ;;  %v493_v46 = vld [vmem:[%s9198_s1] sm:$0xff]  ;;  %v9583_v32 = vld [vmem:[#allocation49_spill] sm:$0xff] }
 0x160   :  { %v4338_v61 = vpack.c.bf16 %v485_v2, %v481_v62  ;;  %v7162_v34 = vsel %vm356_vm13, %v2415_v48, %v2392_v6  ;;  %v7170_v5 = vsel %vm356_vm13, %v6948_v20, %v7069_v60  ;;  %v7174_v41 = vsel %vm9293_vm15, %v7125_v33, %v4870_v56  ;;  %v7204_v54 = vpop.permute.xlu1 %5007  ;;  %v494_v6 = vld [vmem:[%s9198_s1 + $0x8] sm:$0xff] }
 0x161   :  { %v7178_v9 = vsel %vm9570_vm8, %v4865_v8, %v9575_v17  ;;  %5287 = vrot.lane.b32.xlu1 %v9563_v38, %s5540_s17  ;;  %v7184_v16 = vsel %vm356_vm13, %v2414_v21, %v7136_v43  ;;  %v9576_v29 = vunpack.i.h.bf16 %v6777_v36  ;;  %v7192_v52 = vsel %vm9293_vm15, %v4870_v56, %v4874_v1  ;;  %v5003_v49 = vpop.permute.xlu0 %5002  ;;  %v9586_v17 = vld [vmem:[#allocation37_spill] sm:$0xff]  ;;  %v9596_v2 = vld [vmem:[#allocation11_spill] sm:$0xff] }
 0x162   :  { %v4999_v26 = vunpack.i.l.bf16 %v7153_v58  ;;  %5282 = vrot.lane.b32.xlu0 %v9571_v44, %s5548_s25  ;;  %4340 = vmatpush1.bf16.msk.msra.mxu0 %vm7114_vm10, %v4338_v61  ;;  %v856_v36 = vsel %vm9293_vm15, %v4880_v40, %v9577_v13  ;;  %v9294_v3 = vunpack.i.h.bf16 %v7153_v58  ;;  %v4885_v35 = vunpack.i.h.bf16 %v6811_v12  ;;  %v9585_v61 = vld [vmem:[#allocation38_spill] sm:$0xff] }
 0x163   :  { %v7189_v20 = vsel %vm9293_vm15, %v4874_v1, %v9576_v29  ;;  %4248 = vmatmul.mubr.msk.f32.vlgmr.msra.gmra.mrb[0].mxu1 %vm9297_vm6, %v493_v46  ;;  %v9579_v57 = vunpack.i.h.bf16 %v9578_v37  ;;  %vm9580_vm12 = vcmask 752640   ;;  %v4995_v23 = vunpack.i.h.bf16 %v4993_v10 }
 0x164   :  { %vm9581_vm8 = vmmov %vm9580_vm12  ;;  %v9582_v8 = vmov 0.0   ;;  %v4994_v48 = vunpack.i.l.bf16 %v4993_v10  ;;  %v5009_v1 = vunpack.i.l.bf16 %v7204_v54  ;;  %v4900_v40 = vunpack.i.h.bf16 %v6848_v11  ;;  %v5018_v13 = vpop.permute.xlu1 %5017 }
 0x165   :  { %v875_v56 = vsel %vm9580_vm12, %v9579_v57, %v4989_v59  ;;  %v876_v63 = vsel %vm9581_vm8, %v4989_v59, %v4990_v45  ;;  %677 = vmatprep.mubr.f32.mxu1 %v9582_v8  ;;  %5297 = vrot.lane.b32.xlu1 %v9563_v38, %s5549_s26  ;;  %vm9584_vm12 = vcmask 523264   ;;  %v5010_v30 = vunpack.i.h.bf16 %v7204_v54 }
 0x166   :  { %4242 = vmatmul.mubr.msk.f32.vlgmr.msra.gmra.mrb[0].mxu0 %vm9297_vm6, %v493_v46  ;;  %v893_v59 = vsel %vm9584_vm12, %v4885_v35, %v4999_v26  ;;  %5292 = vrot.lane.b32.xlu0 %v9571_v44, %s5540_s17  ;;  %v1019_v10 = vsel %vm9296_vm0, %v9585_v61, %v875_v56  ;;  %v1020_v29 = vsel %vm9296_vm0, %v9586_v17, %v876_v63  ;;  %vm9587_vm8 = vmmov %vm9584_vm12  ;;  %v5005_v46 = vunpack.i.h.bf16 %v5003_v49  ;;  %v5013_v56 = vpop.permute.xlu0 %5012  ;;  %v495_v63 = vld [vmem:[%s9198_s1 + $0x10] sm:$0xff] }
 0x167   :  { %588 = vmatprep.mubr.f32.mxu0 %v9582_v8  ;;  %v894_v11 = vsel %vm9587_vm8, %v4999_v26, %v9294_v3  ;;  %4249 = vmatmul.mubr.msk.f32.gmra.mrb[2].mxu1 %vm9297_vm6, %v494_v6  ;;  %vm9588_vm12 = vcmask 752640   ;;  %v5020_v19 = vunpack.i.h.bf16 %v5018_v13  ;;  %v5019_v12 = vunpack.i.l.bf16 %v5018_v13 }
 0x168   :  { %v874_v31 = vsel %vm9588_vm12, %v4995_v23, %v9579_v57  ;;  %683 = vmatprep.mubr.f32.mxu1 %v9582_v8  ;;  %v1023_v61 = vsel %vm331_vm3, %v1019_v10, %v893_v59  ;;  %vm9589_vm8 = vmmov %vm9588_vm12  ;;  %v911_v37 = vsel %vm9295_vm1, %v4900_v40, %v5009_v1  ;;  %v5004_v54 = vunpack.i.l.bf16 %v5003_v49  ;;  %v9590_v23 = vld [vmem:[#allocation18_spill] sm:$0xff]  ;;  %v7268_v49 = vpop.permute.xlu1 %5027  ;;  %v9595_v10 = vld [vmem:[#allocation40_spill] sm:$0xff] }
 0x169   :  { %v877_v17 = vsel %vm9589_vm8, %v4990_v45, %v4994_v48  ;;  %5307 = vrot.lane.b32.xlu1 %v9563_v38, %s5550_s27  ;;  %v9591_v13 = vunpack.i.h.bf16 %v9590_v23  ;;  %vm9592_vm12 = vcmask 1014784   ;;  %v5015_v62 = vunpack.i.h.bf16 %v5013_v56 }
 0x16a   :  { %4243 = vmatmul.mubr.msk.f32.gmra.mrb[2].mxu0 %vm9297_vm6, %v494_v6  ;;  %vm9593_vm15 = vmmov %vm9592_vm12  ;;  %5302 = vrot.lane.b32.xlu0 %v9571_v44, %s5549_s26  ;;  %v1024_v45 = vsel %vm331_vm3, %v1020_v29, %v894_v11  ;;  %v1018_v48 = vsel %vm9296_vm0, %v856_v36, %v874_v31  ;;  %vm9594_vm8 = vcmask 523264   ;;  %v5014_v6 = vunpack.i.l.bf16 %v5013_v56  ;;  %v5023_v29 = vpop.permute.xlu0 %5022  ;;  %v496_v36 = vld [vmem:[%s9198_s1 + $0x18] sm:$0xff] }
 0x16b   :  { %v785_v57 = vsel %vm9592_vm12, %v9591_v13, %v5019_v12  ;;  %v786_v21 = vsel %vm9593_vm15, %v5019_v12, %v5020_v19  ;;  %594 = vmatprep.mubr.f32.mxu0 %v9582_v8  ;;  %v892_v59 = vsel %vm9594_vm8, %v5005_v46, %v4885_v35  ;;  %4250 = vmatmul.mubr.msk.f32.gmra.mrb[4].mxu1 %vm9297_vm6, %v495_v63  ;;  %vm9597_vm15 = vcmask 1043456   ;;  %v9598_v35 = vld [vmem:[#allocation12_spill] sm:$0xff] }
 0x16c   :  { %v1021_v12 = vsel %vm9296_vm0, %v9595_v10, %v877_v17  ;;  %v912_v13 = vsel %vm9295_vm1, %v5009_v1, %v5010_v30  ;;  %v1027_v26 = vsel %vm336_vm5, %v1023_v61, %v911_v37  ;;  %v1003_v3 = vsel %vm9597_vm15, %v9596_v2, %v785_v57  ;;  %689 = vmatprep.mubr.f32.mxu1 %v9582_v8  ;;  %vm9599_vm12 = vmmov %vm9597_vm15 }
 0x16d   :  { %v1004_v31 = vsel %vm9599_vm12, %v9598_v35, %v786_v21  ;;  %v5029_v11 = vunpack.i.l.bf16 %v7268_v49  ;;  %v5025_v46 = vunpack.i.h.bf16 %v5023_v29  ;;  %v5024_v56 = vunpack.i.l.bf16 %v5023_v29  ;;  %5317 = vrot.lane.b32.xlu1 %v9563_v38, %s5551_s28  ;;  %v9607_v29 = vld [vmem:[#allocation25_spill] sm:$0xff]  ;;  %v9612_v35 = vld [vmem:[#allocation27_spill] sm:$0xff] }
 0x16e   :  { %4244 = vmatmul.mubr.msk.f32.gmra.mrb[4].mxu0 %vm9297_vm6, %v495_v63  ;;  %v4960_v1 = vunpack.i.h.bf16 %v7036_v39  ;;  %v9600_v2 = vunpack.i.h.bf16 %v7153_v58  ;;  %v1022_v17 = vsel %vm331_vm3, %v1018_v48, %v892_v59  ;;  %v910_v37 = vsel %vm9295_vm1, %v5015_v62, %v4900_v40  ;;  %5312 = vrot.lane.b32.xlu0 %v9571_v44, %s5550_s27  ;;  %v9604_v48 = vld [vmem:[#allocation26_spill] sm:$0xff] }
 0x16f   :  { %600 = vmatprep.mubr.f32.mxu0 %v9582_v8  ;;  %v913_v21 = vsel %vm9295_vm1, %v5010_v30, %v5014_v6  ;;  %v5030_v57 = vunpack.i.h.bf16 %v7268_v49  ;;  %v9601_v63 = vunpack.i.h.bf16 %v9590_v23  ;;  %vm9602_vm15 = vcmask 1014784   ;;  %4251 = vmatmul.mubr.msk.f32.gmra.mrb[6].mxu1 %vm9297_vm6, %v496_v36  ;;  %v5033_v6 = vpop.permute.xlu0 %5032  ;;  %v9609_v49 = vld [vmem:[#allocation24_spill] sm:$0xff]  ;;  %v9638_v39 = vld [vmem:[#allocation30_spill] sm:$0xff] }
 0x170   :  { %v895_v61 = vsel %vm9594_vm8, %v9600_v2, %v5004_v54  ;;  %vm9603_vm12 = vmmov %vm9602_vm15  ;;  %v5038_v54 = vpop.permute.xlu1 %5037  ;;  %vm9605_vm8 = vcmask 1044480   ;;  %v9606_v62 = vunpack.i.h.bf16 %v6925_v0  ;;  %vm9608_vm1 = vcmask 1043456   ;;  %1326 = vmatprep.mubr.f32.mxu1 %v9582_v8 }
 0x171   :  { %v784_v10 = vsel %vm9602_vm15, %v5025_v46, %v9601_v63  ;;  %v787_v58 = vsel %vm9603_vm12, %v5020_v19, %v5024_v56  ;;  %v1008_v40 = vsel %vm9605_vm8, %v1004_v31, %v9604_v48  ;;  %vm9610_vm0 = vmmov %vm9605_vm8  ;;  %v5040_v31 = vunpack.i.h.bf16 %v5038_v54  ;;  %5327 = vrot.lane.b32.xlu1 %v9563_v38, %s5552_s29  ;;  %v9614_v48 = vld [vmem:[#allocation31_spill] sm:$0xff] }
 0x172   :  { %v929_v59 = vsel %vm260_vm7, %v9606_v62, %v5029_v11  ;;  %v1002_v30 = vsel %vm9608_vm1, %v9607_v29, %v784_v10  ;;  %v1007_v23 = vsel %vm9610_vm0, %v1003_v3, %v9609_v49  ;;  %vm9611_vm15 = vmmov %vm9610_vm0  ;;  %v5039_v56 = vunpack.i.l.bf16 %v5038_v54  ;;  %4245 = vmatmul.mubr.msk.f32.gmra.mrb[6].mxu0 %vm9297_vm6, %v496_v36  ;;  %5322 = vrot.lane.b32.xlu0 %v9571_v44, %s5551_s28 }
 0x173   :  { %v1006_v19 = vsel %vm9611_vm15, %v1002_v30, %v6959_v47  ;;  %vm9613_vm12 = vmmov %vm9608_vm1  ;;  %v1028_v2 = vsel %vm336_vm5, %v1024_v45, %v912_v13  ;;  %v1025_v63 = vsel %vm331_vm3, %v1021_v12, %v895_v61  ;;  %v1026_v3 = vsel %vm336_vm5, %v1022_v17, %v910_v37  ;;  %1237 = vmatprep.mubr.f32.mxu0 %v9582_v8  ;;  %v5043_v12 = vpop.permute.xlu0 %5042  ;;  %v9616_v61 = vld [vmem:[#allocation32_spill] sm:$0xff]  ;;  %v9618_v37 = vld [vmem:[#allocation29_spill] sm:$0xff] }
 0x174   :  { %v1005_v46 = vsel %vm9613_vm12, %v9612_v35, %v787_v58  ;;  %v5035_v10 = vunpack.i.h.bf16 %v5033_v6  ;;  %v1029_v47 = vsel %vm336_vm5, %v1025_v63, %v913_v21  ;;  %v930_v58 = vsel %vm260_vm7, %v5029_v11, %v5030_v57  ;;  %v5048_v38 = vpop.permute.xlu1 %5047  ;;  %vm9615_vm0 = vmmov %vm9608_vm1 }
 0x175   :  { %v5034_v54 = vunpack.i.l.bf16 %v5033_v6  ;;  %v1011_v36 = vsel %vm351_vm11, %v1007_v23, %v9614_v48  ;;  %v1031_v45 = vsel %vm9615_vm0, %v1027_v26, %v929_v59  ;;  %v1010_v13 = vsel %vm351_vm11, %v1006_v19, %v7085_v4  ;;  %vm9617_vm1 = vmmov %vm9605_vm8  ;;  %v9623_v23 = vld [vmem:[#allocation33_spill] sm:$0xff] }
 0x176   :  { %v1009_v17 = vsel %vm9617_vm1, %v1005_v46, %v9616_v61  ;;  %v7337_v62 = vsel %vm351_vm11, %v1008_v40, %v9618_v37  ;;  %v9619_v11 = vunpack.i.h.bf16 %v6965_v55  ;;  %v948_v29 = vsel %vm279_vm4, %v5039_v56, %v5040_v31  ;;  %vm9621_vm8 = vmmov %vm9615_vm0  ;;  %5332 = vrot.lane.b32.xlu0 %v9571_v44, %s5552_s29  ;;  %v9632_v37 = vld [vmem:[#allocation36_spill] sm:$0xff] }
 0x177   :  { %v5050_v30 = vunpack.i.h.bf16 %v5048_v38  ;;  %v5049_v6 = vunpack.i.l.bf16 %v5048_v38  ;;  %v9620_v26 = vpack.i.bf16 %v7157_v14, %v7146_v7  ;;  %v1032_v4 = vsel %vm9621_vm8, %v1028_v2, %v930_v58  ;;  %v9624_v14 = vld [vmem:[#allocation35_spill] sm:$0xff]  ;;  %vm9625_vm15 = vmmov %vm9617_vm1  ;;  %v5053_v38 = vpop.permute.xlu0 %5052 }
 0x178   :  { %v947_v21 = vsel %vm279_vm4, %v9619_v11, %v5039_v56  ;;  %v9622_v59 = vunpack.i.h.bf16 %v6925_v0  ;;  %v5045_v49 = vunpack.i.h.bf16 %v5043_v12  ;;  %v1015_v19 = vsel %vm356_vm13, %v1011_v36, %v9623_v23  ;;  %v5058_v56 = vpop.permute.xlu1 %5057  ;;  %vm9626_vm12 = vmmov %vm9617_vm1 }
 0x179   :  { %5337 = vrot.lane.b32.xlu1 %v9620_v26, %s5553_s30  ;;  %v931_v35 = vsel %vm260_vm7, %v5030_v57, %v5034_v54  ;;  %v5044_v46 = vunpack.i.l.bf16 %v5043_v12  ;;  %v1014_v7 = vsel %vm356_vm13, %v1010_v13, %v7178_v9  ;;  %v1013_v2 = vsel %vm351_vm11, %v1009_v17, %v9624_v14  ;;  %vm9629_vm1 = vmmov %vm9615_vm0 }
 0x17a   :  { %v928_v40 = vsel %vm260_vm7, %v5035_v10, %v9622_v59  ;;  %v1035_v0 = vsel %vm9625_vm15, %v1031_v45, %v947_v21  ;;  %v1036_v63 = vsel %vm9626_vm12, %v1032_v4, %v948_v29  ;;  %v9627_v10 = vunpack.i.h.bf16 %v7015_v50  ;;  %vm9634_vm8 = vmmov %vm9626_vm12 }
 0x17b   :  { %v5060_v58 = vunpack.i.h.bf16 %v5058_v56  ;;  %v966_v57 = vsel %vm298_vm9, %v5049_v6, %v5050_v30  ;;  %v5059_v54 = vunpack.i.l.bf16 %v5058_v56  ;;  %v5055_v48 = vunpack.i.h.bf16 %v5053_v38  ;;  %v5063_v4 = vpop.permute.xlu0 %5062  ;;  %vm9636_vm15 = vmmov %vm9634_vm8 }
 0x17c   :  { %v965_v44 = vsel %vm298_vm9, %v9627_v10, %v5049_v6  ;;  %v5054_v36 = vunpack.i.l.bf16 %v5053_v38  ;;  %v9628_v9 = vpack.i.bf16 %v7192_v52, %v7174_v41  ;;  %v1030_v45 = vsel %vm9615_vm0, %v1026_v3, %v928_v40  ;;  %v5068_v29 = vpop.permute.xlu1 %5067 }
 0x17d   :  { %v1033_v12 = vsel %vm9629_vm1, %v1029_v47, %v931_v35  ;;  %v9630_v13 = vmov %v9619_v11  ;;  %v9631_v17 = vpack.i.bf16 %v7162_v34, %v7184_v16  ;;  %v1017_v11 = vsel %vm356_vm13, %v1013_v2, %v9632_v37 }
 0x17e   :  { %5347 = vrot.lane.b32.xlu1 %v9628_v9, %s5553_s30  ;;  %v946_v61 = vsel %vm279_vm4, %v5045_v49, %v9630_v13  ;;  %v949_v21 = vsel %vm279_vm4, %v5040_v31, %v5044_v46  ;;  %v983_v3 = vsel %vm9299_vm2, %v4960_v1, %v5059_v54  ;;  %v9633_v47 = vmov %v9627_v10 }
 0x17f   :  { %5342 = vrot.lane.b32.xlu0 %v9631_v17, %s5553_s30  ;;  %v964_v55 = vsel %vm298_vm9, %v5055_v48, %v9633_v47  ;;  %v1039_v6 = vsel %vm351_vm11, %v1035_v0, %v965_v44  ;;  %v1040_v26 = vsel %vm351_vm11, %v1036_v63, %v966_v57  ;;  %v984_v34 = vsel %vm9299_vm2, %v5059_v54, %v5060_v58  ;;  %v5073_v38 = vpop.permute.xlu0 %5072 }
 0x180   :  { %v967_v16 = vsel %vm298_vm9, %v5050_v30, %v5054_v36  ;;  %v1043_v31 = vsel %vm356_vm13, %v1039_v6, %v983_v3  ;;  %v1034_v59 = vsel %vm9634_vm8, %v1030_v45, %v946_v61  ;;  %v5065_v40 = vunpack.i.h.bf16 %v5063_v4 }
 0x181   :  { %v5064_v49 = vunpack.i.l.bf16 %v5063_v4  ;;  %v9635_v50 = vpack.i.bf16 %v7125_v33, %v7170_v5  ;;  %v4351_v23 = vpack.c.bf16 %v1043_v31, %v1015_v19  ;;  %v1037_v35 = vsel %vm9636_vm15, %v1033_v12, %v949_v21  ;;  %v5078_v5 = vpop.permute.xlu1 %5077 }
 0x182   :  { %v1038_v46 = vsel %vm351_vm11, %v1034_v59, %v964_v55  ;;  %v5070_v56 = vunpack.i.h.bf16 %v5068_v29  ;;  %v5069_v14 = vunpack.i.l.bf16 %v5068_v29  ;;  %v9637_v30 = vpack.i.bf16 %v9583_v32, %v7189_v20 }
 0x183   :  { %5357 = vrot.lane.b32.xlu1 %v9635_v50, %s5553_s30  ;;  %v982_v2 = vsel %vm9299_vm2, %v5065_v40, %v4960_v1  ;;  %v985_v0 = vsel %vm9299_vm2, %v5060_v58, %v5064_v49  ;;  %4352 = vmatprep.subr.bf16.mxu0 %v4351_v23  ;;  %v1041_v19 = vsel %vm351_vm11, %v1037_v35, %v967_v16  ;;  %v5080_v10 = vunpack.i.h.bf16 %v5078_v5  ;;  %v5083_v21 = vpop.permute.xlu0 %5082  ;;  %v4252_v40 = vld [vmem:[%s9198_s1 + $0x20] sm:$0xff]  ;;  %v4253_v23 = vld [vmem:[%s9198_s1 + $0x28] sm:$0xff] }
 0x184   :  { %5352 = vrot.lane.b32.xlu0 %v9637_v30, %s5553_s30  ;;  %v1044_v63 = vsel %vm356_vm13, %v1040_v26, %v984_v34  ;;  %v5079_v44 = vunpack.i.l.bf16 %v5078_v5  ;;  %v1042_v57 = vsel %vm356_vm13, %v1038_v46, %v982_v2  ;;  %v1045_v32 = vsel %vm356_vm13, %v1041_v19, %v985_v0  ;;  %v4255_v2 = vld [vmem:[%s9198_s1 + $0x38] sm:$0xff] }
 0x185   :  { %v4353_v54 = vpack.c.bf16 %v1042_v57, %v1014_v7  ;;  %v4361_v48 = vpack.c.bf16 %v1045_v32, %v1017_v11  ;;  %v1016_v1 = vsel %vm356_vm13, %v7337_v62, %v9638_v39  ;;  %v1137_v58 = vsel %vm9298_vm14, %v5069_v14, %v5070_v56  ;;  %v5088_v61 = vpop.permute.xlu1 %5087 }
 0x186   :  { %v1141_v36 = vsel %vm9298_vm14, %v5079_v44, %v5080_v10  ;;  %v5074_v9 = vunpack.i.l.bf16 %v5073_v38  ;;  %v4363_v45 = vpack.c.bf16 %v1044_v63, %v1016_v1  ;;  %v5075_v13 = vunpack.i.h.bf16 %v5073_v38 }
 0x187   :  { %v4355_v12 = vpack.c.bf16 %v1141_v36, %v1137_v58  ;;  %4354 = vmatpush1.bf16.msra.mxu0 %v4353_v54  ;;  %4362 = vmatprep.subr.bf16.mxu1 %v4361_v48  ;;  %v5090_v17 = vunpack.i.h.bf16 %v5088_v61  ;;  %v5089_v37 = vunpack.i.l.bf16 %v5088_v61  ;;  %v5085_v7 = vunpack.i.h.bf16 %v5083_v21  ;;  %v5093_v31 = vpop.permute.xlu0 %5092 }
 0x188   :  { %4364 = vmatpush1.bf16.msra.mxu1 %v4363_v45  ;;  %v5084_v11 = vunpack.i.l.bf16 %v5083_v21  ;;  %v1138_v62 = vsel %vm9298_vm14, %v5070_v56, %v5074_v9  ;;  %v1139_v55 = vsel %vm9298_vm14, %v5074_v9, %v5075_v13  ;;  %v4254_v56 = vld [vmem:[%s9198_s1 + $0x30] sm:$0xff]  ;;  %v5095_v32 = vunpack.i.h.bf16 %v5093_v31 }
 0x189   :  { %4357 = vmatprep.subr.msk.bf16.mxu0 %vm7114_vm10, %v4355_v12  ;;  %v1136_v3 = vsel %vm9298_vm14, %v5089_v37, %v5069_v14  ;;  %v1140_v47 = vsel %vm9298_vm14, %v5090_v17, %v5079_v44  ;;  %v5098_v34 = vpop.permute.xlu1 %5097  ;;  %v5094_v54 = vunpack.i.l.bf16 %v5093_v31  ;;  %vm9639_vm12 = vcmask 1014784  }
 0x18a   :  { %v4358_v29 = vpack.c.bf16 %v1140_v47, %v1136_v3  ;;  %v1142_v6 = vsel %vm9298_vm14, %v5080_v10, %v5084_v11  ;;  %v1143_v26 = vsel %vm9298_vm14, %v5084_v11, %v5085_v7  ;;  %v5100_v44 = vunpack.i.h.bf16 %v5098_v34 }
 0x18b   :  { %v4365_v16 = vpack.c.bf16 %v1143_v26, %v1139_v55  ;;  %v4368_v4 = vpack.c.bf16 %v1142_v6, %v1138_v62  ;;  %v7436_v49 = vpop.permute.xlu0 %5102  ;;  %v5099_v38 = vunpack.i.l.bf16 %v5098_v34  ;;  %vm9640_vm0 = vcmask 752640  }
 0x18c   :  { %4360 = vmatpush1.bf16.msk.msra.mxu0 %vm7114_vm10, %v4358_v29  ;;  %v5104_v39 = vunpack.i.l.bf16 %v7436_v49  ;;  %vm9641_vm1 = vmmov %vm9640_vm0  ;;  %v9647_v29 = vld [vmem:[#allocation15_spill] sm:$0xff] }
 0x18d   :  { %4367 = vmatprep.subr.msk.bf16.mxu1 %vm7114_vm10, %v4365_v16  ;;  %v7431_v59 = vpop.permute.xlu1 %5107  ;;  %v1532_v13 = vsel %vm9640_vm0, %v5099_v38, %v5100_v44  ;;  %v1531_v37 = vsel %vm9641_vm1, %v5095_v32, %v5099_v38  ;;  %vm9642_vm8 = vmmov %vm9640_vm0  ;;  %vm9649_vm1 = vcmask 1014784  }
 0x18e   :  { %4370 = vmatpush1.bf16.msk.msra.mxu1 %vm7114_vm10, %v4368_v4  ;;  %v5109_v48 = vunpack.i.l.bf16 %v7431_v59  ;;  %v1530_v21 = vsel %vm9642_vm8, %v5094_v54, %v5095_v32  ;;  %vm9643_vm15 = vmmov %vm9640_vm0  ;;  %vm9648_vm0 = vcmask 1043456   ;;  %v9658_v32 = vld [vmem:[#allocation7_spill] sm:$0xff] }
 0x18f   :  { %4258 = vmatmul.mubr.msk.f32.vlgmr.msra.gmra.mrb[8].mxu0 %vm9297_vm6, %v4252_v40  ;;  %v7447_v35 = vpop.permute.xlu0 %5112 }
 0x190   :  { %1243 = vmatprep.mubr.f32.mxu0 %v9582_v8  ;;  %v5115_v36 = vunpack.i.h.bf16 %v7447_v35  ;;  %v5114_v9 = vunpack.i.l.bf16 %v7447_v35  ;;  %v1529_v7 = vsel %vm9643_vm15, %v5109_v48, %v5094_v54  ;;  %v9662_v48 = vld [vmem:[#allocation13_spill] sm:$0xff] }
 0x191   :  { %4264 = vmatmul.mubr.msk.f32.vlgmr.msra.gmra.mrb[8].mxu1 %vm9297_vm6, %v4252_v40  ;;  %v7441_v50 = vpop.permute.xlu1 %5117 }
 0x192   :  { %1332 = vmatprep.mubr.f32.mxu1 %v9582_v8  ;;  %v5119_v58 = vunpack.i.l.bf16 %v7441_v50  ;;  %v5120_v3 = vunpack.i.h.bf16 %v7441_v50 }
 0x193   :  { %4259 = vmatmul.mubr.msk.f32.gmra.mrb[10].mxu0 %vm9297_vm6, %v4253_v23  ;;  %v7458_v14 = vpop.permute.xlu0 %5122 }
 0x194   :  { %1249 = vmatprep.mubr.f32.mxu0 %v9582_v8  ;;  %v5124_v16 = vunpack.i.l.bf16 %v7458_v14 }
 0x195   :  { %4265 = vmatmul.mubr.msk.f32.gmra.mrb[10].mxu1 %vm9297_vm6, %v4253_v23  ;;  %v7452_v46 = vpop.permute.xlu1 %5127 }
 0x196   :  { %1338 = vmatprep.mubr.f32.mxu1 %v9582_v8  ;;  %v5130_v26 = vunpack.i.h.bf16 %v7452_v46  ;;  %v5129_v34 = vunpack.i.l.bf16 %v7452_v46 }
 0x197   :  { %4260 = vmatmul.mubr.msk.f32.gmra.mrb[12].mxu0 %vm9297_vm6, %v4254_v56  ;;  %v5133_v0 = vpop.permute.xlu0 %5132 }
 0x198   :  { %1255 = vmatprep.mubr.f32.mxu0 %v9582_v8  ;;  %v5134_v31 = vunpack.i.l.bf16 %v5133_v0 }
 0x199   :  { %4266 = vmatmul.mubr.msk.f32.gmra.mrb[12].mxu1 %vm9297_vm6, %v4254_v56  ;;  %v7463_v30 = vpop.permute.xlu1 %5137 }
 0x19a   :  { %1344 = vmatprep.mubr.f32.mxu1 %v9582_v8  ;;  %v5140_v63 = vunpack.i.h.bf16 %v7463_v30  ;;  %v5139_v10 = vunpack.i.l.bf16 %v7463_v30  ;;  %v9679_v30 = vld [vmem:[#allocation46_spill] sm:$0xff] }
 0x19b   :  { %4261 = vmatmul.mubr.msk.f32.gmra.mrb[14].mxu0 %vm9297_vm6, %v4255_v2  ;;  %v5143_v19 = vpop.permute.xlu0 %5142 }
 0x19c   :  { %1892 = vmatprep.mubr.f32.mxu0 %v9582_v8  ;;  %v1440_v45 = vsel %vm9639_vm12, %v5139_v10, %v5140_v63  ;;  %v5144_v12 = vunpack.i.l.bf16 %v5143_v19  ;;  %v5145_v61 = vunpack.i.h.bf16 %v5143_v19  ;;  %vm9645_vm12 = vcmask 523264   ;;  %v9654_v19 = vld [vmem:[#allocation6_spill] sm:$0xff] }
 0x19d   :  { %4267 = vmatmul.mubr.msk.f32.gmra.mrb[14].mxu1 %vm9297_vm6, %v4255_v2  ;;  %v7472_v5 = vpop.permute.xlu1 %5147  ;;  %vm9644_vm6 = vcmask 760832   ;;  %v1549_v47 = vsel %vm9645_vm12, %v5115_v36, %v5119_v58  ;;  %vm9646_vm14 = vmmov %vm9645_vm12  ;;  %v1658_v6 = vsel %vm9648_vm0, %v9647_v29, %v1440_v45  ;;  %vm9655_vm12 = vcmask 1044480  }
 0x19e   :  { %1981 = vmatprep.mubr.f32.mxu1 %v9582_v8  ;;  %v1511_v11 = vsel %vm9644_vm6, %v5104_v39, %v6539_v22  ;;  %v1548_v55 = vsel %vm9646_vm14, %v5114_v9, %v5115_v36  ;;  %v1441_v4 = vsel %vm9649_vm1, %v5140_v63, %v5144_v12  ;;  %v5135_v22 = vunpack.i.h.bf16 %v5133_v0  ;;  %vm9650_vm6 = vmmov %vm9649_vm1 }
 0x19f   :  { %v7481_v1 = vpop.permute.xlu0 %5152  ;;  %v5149_v40 = vunpack.i.l.bf16 %v7472_v5  ;;  %v1442_v50 = vsel %vm9650_vm6, %v5144_v12, %v5145_v61  ;;  %vm9651_vm14 = vcmask 1040384   ;;  %v1662_v63 = vsel %vm9655_vm12, %v1658_v6, %v9654_v19  ;;  %v9670_v6 = vld [vmem:[#allocation4_spill] sm:$0xff] }
 0x1a0   :  { %v1676_v35 = vsel %vm9651_vm14, %v6759_v51, %v1532_v13  ;;  %vm9652_vm8 = vmmov %vm9651_vm14  ;;  %vm9657_vm1 = vcmask 523264   ;;  %vm9659_vm6 = vcmask 1043456   ;;  %vm9660_vm14 = vcmask 515072   ;;  %v9667_v13 = vld [vmem:[#allocation44_spill] sm:$0xff] }
 0x1a1   :  { %v7477_v57 = vpop.permute.xlu1 %5157  ;;  %v1675_v56 = vsel %vm9652_vm8, %v6770_v53, %v1531_v37  ;;  %vm9653_vm15 = vmmov %vm9652_vm8  ;;  %v1550_v44 = vsel %vm9657_vm1, %v5119_v58, %v5120_v3  ;;  %v1659_v51 = vsel %vm9659_vm6, %v9658_v32, %v1441_v4  ;;  %v1566_v53 = vsel %vm9660_vm14, %v5129_v34, %v5130_v26  ;;  %v9668_v37 = vld [vmem:[#allocation14_spill] sm:$0xff] }
 0x1a2   :  { %v1674_v46 = vsel %vm9653_vm15, %v6763_v25, %v1530_v21  ;;  %vm9656_vm0 = vmmov %vm9652_vm8  ;;  %v1679_v54 = vsel %vm331_vm3, %v1675_v56, %v1549_v47  ;;  %v1666_v61 = vsel %vm351_vm11, %v1662_v63, %v9667_v13  ;;  %v5154_v47 = vunpack.i.l.bf16 %v7481_v1  ;;  %v9672_v63 = vld [vmem:[#allocation47_spill] sm:$0xff] }
 0x1a3   :  { %v7497_v62 = vpop.permute.xlu0 %5162  ;;  %v1673_v0 = vsel %vm9656_vm0, %v1511_v11, %v1529_v7  ;;  %v1678_v38 = vsel %vm331_vm3, %v1674_v46, %v1548_v55  ;;  %vm9661_vm8 = vmmov %vm9657_vm1  ;;  %vm9669_vm1 = vcmask 1044480   ;;  %v5160_v7 = vunpack.i.h.bf16 %v7477_v57 }
 0x1a4   :  { %v1547_v25 = vsel %vm9661_vm8, %v5124_v16, %v5114_v9  ;;  %vm9663_vm15 = vmmov %vm9659_vm6  ;;  %v1663_v21 = vsel %vm9669_vm1, %v1659_v51, %v9668_v37  ;;  %v5159_v9 = vunpack.i.l.bf16 %v7477_v57  ;;  %v5155_v11 = vunpack.i.h.bf16 %v7481_v1 }
 0x1a5   :  { %v7490_v17 = vpop.permute.xlu1 %5167  ;;  %v1660_v39 = vsel %vm9663_vm15, %v9662_v48, %v1442_v50  ;;  %vm9664_vm2 = vmmov %vm9660_vm14  ;;  %v5164_v29 = vunpack.i.l.bf16 %v7497_v62  ;;  %v1680_v57 = vsel %vm331_vm3, %v1676_v35, %v1550_v44  ;;  %v7560_v32 = vsel %vm356_vm13, %v1666_v61, %v9672_v63  ;;  %v9673_v44 = vld [vmem:[#allocation43_spill] sm:$0xff] }
 0x1a6   :  { %v1567_v36 = vsel %vm9664_vm2, %v5130_v26, %v5134_v31  ;;  %vm9665_vm12 = vmmov %vm9664_vm2  ;;  %v5169_v55 = vunpack.i.l.bf16 %v7490_v17  ;;  %v1586_v19 = vsel %vm260_vm7, %v5159_v9, %v5160_v7  ;;  %v1585_v35 = vsel %vm260_vm7, %v5155_v11, %v5159_v9 }
 0x1a7   :  { %v7516_v2 = vpop.permute.xlu0 %5172  ;;  %v1568_v45 = vsel %vm9665_vm12, %v5134_v31, %v5135_v22  ;;  %vm9666_vm0 = vmmov %vm9664_vm2  ;;  %v1682_v31 = vsel %vm336_vm5, %v1678_v38, %v1566_v53  ;;  %v1683_v1 = vsel %vm336_vm5, %v1679_v54, %v1567_v36  ;;  %v9674_v38 = vld [vmem:[#allocation45_spill] sm:$0xff]  ;;  %vm9675_vm6 = vcmask 1014784  }
 0x1a8   :  { %v1565_v58 = vsel %vm9666_vm0, %v5149_v40, %v5129_v34  ;;  %vm9671_vm2 = vmmov %vm9669_vm1  ;;  %v5175_v4 = vunpack.i.h.bf16 %v7516_v2  ;;  %v5174_v22 = vunpack.i.l.bf16 %v7516_v2  ;;  %v1677_v40 = vsel %vm331_vm3, %v1673_v0, %v1547_v25 }
 0x1a9   :  { %v5178_v23 = vpop.permute.xlu1 %5177  ;;  %v1664_v26 = vsel %vm9671_vm2, %v1660_v39, %v9670_v6  ;;  %v1684_v56 = vsel %vm336_vm5, %v1680_v57, %v1568_v45  ;;  %v1681_v46 = vsel %vm336_vm5, %v1677_v40, %v1565_v58  ;;  %v1584_v2 = vsel %vm260_vm7, %v5154_v47, %v5155_v11  ;;  %vm9676_vm14 = vmmov %vm9663_vm15 }
 0x1aa   :  { %v5180_v34 = vunpack.i.h.bf16 %v5178_v23  ;;  %v5179_v16 = vunpack.i.l.bf16 %v5178_v23  ;;  %v1668_v0 = vsel %vm351_vm11, %v1664_v26, %v9673_v44  ;;  %v1667_v51 = vsel %vm351_vm11, %v1663_v21, %v9674_v38  ;;  %vm9677_vm8 = vmmov %vm9676_vm14  ;;  %v9682_v26 = vld [vmem:[#allocation3_spill] sm:$0xff] }
 0x1ab   :  { %v7542_v3 = vpop.permute.xlu0 %5182  ;;  %v1583_v54 = vsel %vm260_vm7, %v5169_v55, %v5154_v47  ;;  %v1439_v53 = vsel %vm9675_vm6, %v5164_v29, %v5139_v10  ;;  %v1602_v48 = vsel %vm279_vm4, %v5174_v22, %v5175_v4  ;;  %v1688_v61 = vsel %vm9676_vm14, %v1684_v56, %v1586_v19  ;;  %vm9678_vm15 = vmmov %vm9677_vm8  ;;  %v9680_v55 = vld [vmem:[#allocation48_spill] sm:$0xff] }
 0x1ac   :  { %v1604_v25 = vsel %vm279_vm4, %v5179_v16, %v5180_v34  ;;  %v1686_v37 = vsel %vm9677_vm8, %v1682_v31, %v1584_v2  ;;  %v1687_v21 = vsel %vm9678_vm15, %v1683_v1, %v1585_v35  ;;  %v1672_v10 = vsel %vm356_vm13, %v1668_v0, %v9679_v30  ;;  %vm9681_vm12 = vmmov %vm9677_vm8  ;;  %v9686_v2 = vld [vmem:[#allocation39_spill] sm:$0xff] }
 0x1ad   :  { %v7533_v12 = vpop.permute.xlu1 %5187  ;;  %v1603_v9 = vsel %vm279_vm4, %v5175_v4, %v5179_v16  ;;  %v5184_v47 = vunpack.i.l.bf16 %v7542_v3  ;;  %v1671_v29 = vsel %vm356_vm13, %v1667_v51, %v9680_v55  ;;  %v1685_v6 = vsel %vm9681_vm12, %v1681_v46, %v1583_v54  ;;  %vm9683_vm0 = vmmov %vm9677_vm8 }
 0x1ae   :  { %v5189_v11 = vunpack.i.l.bf16 %v7533_v12  ;;  %v1657_v34 = vsel %vm9683_vm0, %v9682_v26, %v1439_v53  ;;  %v1692_v57 = vsel %vm9669_vm1, %v1688_v61, %v1604_v25  ;;  %vm9684_vm2 = vmmov %vm9669_vm1  ;;  %vm9687_vm14 = vcmask 785408   ;;  %v9691_v61 = vld [vmem:[#allocation41_spill] sm:$0xff] }
 0x1af   :  { %v5193_v23 = vpop.permute.xlu0 %5192  ;;  %v1690_v31 = vsel %vm9684_vm2, %v1686_v37, %v1602_v48  ;;  %vm9685_vm6 = vmmov %vm9669_vm1  ;;  %v1457_v44 = vsel %vm9687_vm14, %v5184_v47, %v9686_v2  ;;  %vm9688_vm8 = vcmask 261120   ;;  %vm9692_vm0 = vcmask 777216  }
 0x1b0   :  { %v5195_v45 = vunpack.i.h.bf16 %v5193_v23  ;;  %v5194_v58 = vunpack.i.l.bf16 %v5193_v23  ;;  %v1691_v56 = vsel %vm9685_vm6, %v1687_v21, %v1603_v9  ;;  %v1601_v35 = vsel %vm279_vm4, %v5189_v11, %v5174_v22  ;;  %vm9689_vm15 = vmmov %vm9688_vm8 }
 0x1b1   :  { %v5198_v50 = vpop.permute.xlu1 %5197  ;;  %vm9690_vm12 = vmmov %vm9688_vm8  ;;  %vm9696_vm14 = vcmask 769024  }
 0x1b2   :  { %v5200_v39 = vunpack.i.h.bf16 %v5198_v50  ;;  %v5199_v36 = vunpack.i.l.bf16 %v5198_v50  ;;  %v1620_v4 = vsel %vm298_vm9, %v5194_v58, %v5195_v45  ;;  %vm9693_vm2 = vmmov %vm9669_vm1 }
 0x1b3   :  { %v7579_v7 = vpop.permute.xlu0 %5202  ;;  %v1694_v53 = vsel %vm351_vm11, %v1690_v31, %v1620_v4  ;;  %vm9694_vm6 = vmmov %vm9688_vm8 }
 0x1b4   :  { %v1622_v40 = vsel %vm298_vm9, %v5199_v36, %v5200_v39  ;;  %v1621_v16 = vsel %vm298_vm9, %v5195_v45, %v5199_v36  ;;  %v5204_v46 = vunpack.i.l.bf16 %v7579_v7 }
 0x1b5   :  { %v7574_v13 = vpop.permute.xlu1 %5207  ;;  %v1695_v51 = vsel %vm351_vm11, %v1691_v56, %v1621_v16  ;;  %v1696_v25 = vsel %vm351_vm11, %v1692_v57, %v1622_v40  ;;  %v1661_v57 = vsel %vm9693_vm2, %v1657_v34, %v1457_v44 }
 0x1b6   :  { %v5209_v1 = vunpack.i.l.bf16 %v7574_v13  ;;  %v1475_v37 = vsel %vm9692_vm0, %v5204_v46, %v9691_v61 }
 0x1b7   :  { %v5213_v63 = vpop.permute.xlu0 %5212  ;;  %v1665_v4 = vsel %vm351_vm11, %v1661_v57, %v1475_v37 }
 0x1b8   :  { %v5215_v0 = vunpack.i.h.bf16 %v5213_v63  ;;  %v5214_v38 = vunpack.i.l.bf16 %v5213_v63  ;;  %v1619_v48 = vsel %vm298_vm9, %v5209_v1, %v5194_v58  ;;  %v1689_v58 = vsel %vm9669_vm1, %v1685_v6, %v1601_v35  ;;  %v9695_v1 = vld [vmem:[#allocation42_spill] sm:$0xff] }
 0x1b9   :  { %v5218_v50 = vpop.permute.xlu1 %5217  ;;  %v1693_v31 = vsel %vm351_vm11, %v1689_v58, %v1619_v48 }
 0x1ba   :  { %v5220_v19 = vunpack.i.h.bf16 %v5218_v50  ;;  %v5219_v23 = vunpack.i.l.bf16 %v5218_v50  ;;  %v1638_v36 = vsel %vm9690_vm12, %v5214_v38, %v5215_v0 }
 0x1bb   :  { %v7615_v30 = vpop.permute.xlu0 %5222  ;;  %v1698_v9 = vsel %vm356_vm13, %v1694_v53, %v1638_v36 }
 0x1bc   :  { %v1640_v54 = vsel %vm9688_vm8, %v5219_v23, %v5220_v19  ;;  %v1639_v39 = vsel %vm9689_vm15, %v5215_v0, %v5219_v23  ;;  %v5224_v47 = vunpack.i.l.bf16 %v7615_v30  ;;  %v4371_v55 = vpack.c.bf16 %v1698_v9, %v7560_v32 }
 0x1bd   :  { %v7609_v22 = vpop.permute.xlu1 %5227  ;;  %v1700_v45 = vsel %vm356_vm13, %v1696_v25, %v1640_v54  ;;  %v1699_v26 = vsel %vm356_vm13, %v1695_v51, %v1639_v39  ;;  %vm9697_vm8 = vcmask 252928  }
 0x1be   :  { %v5229_v21 = vunpack.i.l.bf16 %v7609_v22  ;;  %v4381_v11 = vpack.c.bf16 %v1700_v45, %v1672_v10  ;;  %v4383_v16 = vpack.c.bf16 %v1699_v26, %v1671_v29  ;;  %v1493_v10 = vsel %vm9696_vm14, %v5224_v47, %v9695_v1  ;;  %4372 = vmatprep.subr.bf16.mxu0 %v4371_v55  ;;  %vm9698_vm15 = vmmov %vm9697_vm8  ;;  %v4268_v55 = vld [vmem:[%s9198_s1 + $0x40] sm:$0xff] }
 0x1bf   :  { %v5233_v32 = vpop.permute.xlu0 %5232  ;;  %v1669_v56 = vsel %vm356_vm13, %v1665_v4, %v1493_v10  ;;  %vm9699_vm12 = vmmov %vm9697_vm8  ;;  %v5105_v26 = vunpack.i.h.bf16 %v7436_v49 }
 0x1c0   :  { %v1637_v40 = vsel %vm9694_vm6, %v5229_v21, %v5214_v38  ;;  %4382 = vmatprep.subr.bf16.mxu1 %v4381_v11  ;;  %v5235_v23 = vunpack.i.h.bf16 %v5233_v32  ;;  %v5234_v63 = vunpack.i.l.bf16 %v5233_v32  ;;  %vm9700_vm0 = vmmov %vm9697_vm8  ;;  %v5110_v11 = vunpack.i.h.bf16 %v7431_v59 }
 0x1c1   :  { %v5238_v6 = vpop.permute.xlu1 %5237  ;;  %v1697_v50 = vsel %vm356_vm13, %v1693_v31, %v1637_v40  ;;  %4384 = vmatpush1.bf16.msra.mxu1 %v4383_v16  ;;  %vm9701_vm1 = vmmov %vm9700_vm0  ;;  %vm9703_vm6 = vcmask 752640   ;;  %v5125_v16 = vunpack.i.h.bf16 %v7458_v14  ;;  %v4269_v14 = vld [vmem:[%s9198_s1 + $0x48] sm:$0xff] }
 0x1c2   :  { %v4373_v34 = vpack.c.bf16 %v1697_v50, %v1669_v56  ;;  %v5240_v46 = vunpack.i.h.bf16 %v5238_v6  ;;  %v5239_v19 = vunpack.i.l.bf16 %v5238_v6  ;;  %v1792_v25 = vsel %vm9700_vm0, %v5234_v63, %v5235_v23  ;;  %vm9702_vm2 = vmmov %vm9700_vm0 }
 0x1c3   :  { %vm9704_vm14 = vmmov %vm9700_vm0  ;;  %v5185_v56 = vunpack.i.h.bf16 %v7542_v3 }
 0x1c4   :  { %4374 = vmatpush1.bf16.msra.mxu0 %v4373_v34  ;;  %v5243_v44 = vpop.permute.xlu0 %5242  ;;  %v1794_v51 = vsel %vm9697_vm8, %v5239_v19, %v5240_v46  ;;  %v1793_v54 = vsel %vm9698_vm15, %v5235_v23, %v5239_v19  ;;  %vm9705_vm8 = vmmov %vm9700_vm0  ;;  %vm9706_vm15 = vcmask 203776   ;;  %vm9708_vm0 = vcmask 523264  }
 0x1c5   :  { %v5248_v29 = vpop.permute.xlu1 %5247  ;;  %v5245_v0 = vunpack.i.h.bf16 %v5243_v44  ;;  %v5244_v38 = vunpack.i.l.bf16 %v5243_v44  ;;  %v5150_v19 = vunpack.i.h.bf16 %v7472_v5  ;;  %v5170_v44 = vunpack.i.h.bf16 %v7490_v17 }
 0x1c6   :  { %v5250_v35 = vunpack.i.h.bf16 %v5248_v29  ;;  %v5249_v2 = vunpack.i.l.bf16 %v5248_v29  ;;  %v5165_v5 = vunpack.i.h.bf16 %v7497_v62 }
 0x1c7   :  { %v1796_v36 = vsel %vm9702_vm2, %v5244_v38, %v5245_v0  ;;  %vm9710_vm2 = vmmov %vm9703_vm6 }
 0x1c8   :  { %v1798_v53 = vsel %vm9699_vm12, %v5249_v2, %v5250_v35  ;;  %v1797_v39 = vsel %vm9701_vm1, %v5245_v0, %v5249_v2  ;;  %v4375_v61 = vpack.c.bf16 %v1796_v36, %v1792_v25  ;;  %v5253_v9 = vpop.permute.xlu0 %5252  ;;  %vm9707_vm12 = vcmask 1040384  }
 0x1c9   :  { %v4385_v48 = vpack.c.bf16 %v1798_v53, %v1794_v51  ;;  %v7636_v45 = vpop.permute.xlu1 %5257  ;;  %v4388_v37 = vpack.c.bf16 %v1797_v39, %v1793_v54  ;;  %v5255_v58 = vunpack.i.h.bf16 %v5253_v9  ;;  %v5254_v47 = vunpack.i.l.bf16 %v5253_v9  ;;  %v9717_v9 = vld [vmem:[#allocation8_spill] sm:$0xff] }
 0x1ca   :  { %v5259_v21 = vunpack.i.l.bf16 %v7636_v45  ;;  %4377 = vmatprep.subr.msk.bf16.mxu0 %vm7114_vm10, %v4375_v61  ;;  %vm9709_vm1 = vcmask 760832   ;;  %v5260_v23 = vunpack.i.h.bf16 %v7636_v45  ;;  %v5205_v2 = vunpack.i.h.bf16 %v7579_v7  ;;  %v4270_v7 = vld [vmem:[%s9198_s1 + $0x50] sm:$0xff] }
 0x1cb   :  { %4387 = vmatprep.subr.msk.bf16.mxu1 %vm7114_vm10, %v4385_v48  ;;  %v1791_v59 = vsel %vm9704_vm14, %v5254_v47, %v5234_v63  ;;  %v1795_v31 = vsel %vm9705_vm8, %v5255_v58, %v5244_v38  ;;  %v2166_v32 = vsel %vm9709_vm1, %v5105_v26, %v7125_v33  ;;  %vm9712_vm14 = vmmov %vm9706_vm15  ;;  %v5190_v0 = vunpack.i.h.bf16 %v7533_v12 }
 0x1cc   :  { %4390 = vmatpush1.bf16.msk.msra.mxu1 %vm7114_vm10, %v4388_v37  ;;  %v2185_v57 = vsel %vm9703_vm6, %v5110_v11, %v5259_v21  ;;  %v4378_v4 = vpack.c.bf16 %v1795_v31, %v1791_v59  ;;  %v5263_v10 = vpop.permute.xlu0 %5262  ;;  %vm9711_vm6 = vmmov %vm9707_vm12  ;;  %v5210_v37 = vunpack.i.h.bf16 %v7574_v13 }
 0x1cd   :  { %v7653_v40 = vpop.permute.xlu1 %5267  ;;  %v5265_v6 = vunpack.i.h.bf16 %v5263_v10  ;;  %v2329_v49 = vsel %vm9707_vm12, %v7174_v41, %v2185_v57  ;;  %vm9713_vm8 = vmmov %vm9712_vm14  ;;  %vm9715_vm12 = vcmask 785408   ;;  %v5264_v54 = vunpack.i.l.bf16 %v5263_v10  ;;  %v4271_v57 = vld [vmem:[%s9198_s1 + $0x58] sm:$0xff] }
 0x1ce   :  { %v5269_v1 = vunpack.i.l.bf16 %v7653_v40  ;;  %4380 = vmatpush1.bf16.msk.msra.mxu0 %vm7114_vm10, %v4378_v4  ;;  %v5270_v33 = vunpack.i.h.bf16 %v7653_v40  ;;  %v2112_v51 = vsel %vm9715_vm12, %v5185_v56, %v6876_v18  ;;  %vm9716_vm1 = vmmov %vm9710_vm2 }
 0x1cf   :  { %4280 = vmatmul.mubr.msk.f32.vlgmr.msra.gmra.mrb[16].mxu1 %vm9706_vm15, %v4268_v55  ;;  %v2184_v41 = vsel %vm9710_vm2, %v5265_v6, %v5110_v11  ;;  %vm9714_vm15 = vcmask 515072   ;;  %v2186_v48 = vsel %vm9716_vm1, %v5259_v21, %v5260_v23  ;;  %vm9718_vm2 = vcmask 777216   ;;  %v9725_v6 = vld [vmem:[#allocation9_spill] sm:$0xff] }
 0x1d0   :  { %v2203_v50 = vsel %vm9708_vm0, %v5125_v16, %v5269_v1  ;;  %1987 = vmatprep.mubr.f32.mxu1 %v9582_v8  ;;  %v2328_v63 = vsel %vm9711_vm6, %v2166_v32, %v2184_v41  ;;  %v5273_v35 = vpop.permute.xlu0 %5272  ;;  %v2130_v11 = vsel %vm9718_vm2, %v5205_v2, %v9717_v9  ;;  %vm9719_vm6 = vmmov %vm9708_vm0  ;;  %v2187_v31 = vsel %vm9716_vm1, %v5260_v23, %v5264_v54  ;;  %v9727_v32 = vld [vmem:[#allocation50_spill] sm:$0xff] }
 0x1d1   :  { %v2333_v34 = vsel %vm331_vm3, %v2329_v49, %v2203_v50  ;;  %v7672_v46 = vpop.permute.xlu1 %5277  ;;  %v5275_v3 = vunpack.i.h.bf16 %v5273_v35  ;;  %4274 = vmatmul.mubr.msk.f32.vlgmr.msra.gmra.mrb[16].mxu0 %vm9712_vm14, %v4268_v55  ;;  %v2204_v18 = vsel %vm9719_vm6, %v5269_v1, %v5270_v33  ;;  %vm9720_vm14 = vmmov %vm9713_vm8  ;;  %v5274_v21 = vunpack.i.l.bf16 %v5273_v35 }
 0x1d2   :  { %v5279_v29 = vunpack.i.l.bf16 %v7672_v46  ;;  %1898 = vmatprep.mubr.f32.mxu0 %v9582_v8  ;;  %v5280_v47 = vunpack.i.h.bf16 %v7672_v46  ;;  %vm9724_vm2 = vcmask 515072   ;;  %v5230_v1 = vunpack.i.h.bf16 %v7609_v22 }
 0x1d3   :  { %4281 = vmatmul.mubr.msk.f32.gmra.mrb[18].mxu1 %vm9713_vm8, %v4269_v14  ;;  %v2202_v62 = vsel %vm9708_vm0, %v5275_v3, %v5125_v16  ;;  %vm9723_vm0 = vcmask 1040384   ;;  %vm9726_vm6 = vcmask 1043456   ;;  %v5225_v46 = vunpack.i.h.bf16 %v7615_v30  ;;  %v9736_v30 = vld [vmem:[#allocation52_spill] sm:$0xff] }
 0x1d4   :  { %v2221_v38 = vsel %vm9714_vm15, %v5150_v19, %v5279_v29  ;;  %1993 = vmatprep.mubr.f32.mxu1 %v9582_v8  ;;  %v2332_v39 = vsel %vm331_vm3, %v2328_v63, %v2202_v62  ;;  %v5283_v61 = vpop.permute.xlu0 %5282  ;;  %vm9721_vm15 = vcmask 1014784   ;;  %v2330_v59 = vsel %vm9723_vm0, %v7192_v52, %v2186_v48 }
 0x1d5   :  { %v7694_v53 = vsel %vm336_vm5, %v2333_v34, %v2221_v38  ;;  %v5288_v25 = vpop.permute.xlu1 %5287  ;;  %v5285_v58 = vunpack.i.h.bf16 %v5283_v61  ;;  %4275 = vmatmul.mubr.msk.f32.gmra.mrb[18].mxu0 %vm9720_vm14, %v4269_v14  ;;  %vm9722_vm12 = vmmov %vm9721_vm15  ;;  %v5284_v16 = vunpack.i.l.bf16 %v5283_v61  ;;  %v2334_v10 = vsel %vm331_vm3, %v2330_v59, %v2204_v18  ;;  %v9747_v59 = vld [vmem:[#allocation54_spill] sm:$0xff] }
 0x1d6   :  { %v5290_v36 = vunpack.i.h.bf16 %v5288_v25  ;;  %v5289_v45 = vunpack.i.l.bf16 %v5288_v25  ;;  %1904 = vmatprep.mubr.f32.mxu0 %v9582_v8  ;;  %vm9728_vm14 = vmmov %vm9726_vm6  ;;  %vm9732_vm1 = vcmask 523264   ;;  %v9740_v25 = vld [vmem:[#allocation53_spill] sm:$0xff] }
 0x1d7   :  { %4282 = vmatmul.mubr.msk.f32.gmra.mrb[20].mxu1 %vm9713_vm8, %v4270_v7  ;;  %v2220_v40 = vsel %vm9724_vm2, %v5285_v58, %v5150_v19  ;;  %v2205_v63 = vsel %vm9732_vm1, %v5270_v33, %v5274_v21 }
 0x1d8   :  { %v2095_v55 = vsel %vm9721_vm15, %v5165_v5, %v5289_v45  ;;  %v2096_v26 = vsel %vm9722_vm12, %v5289_v45, %v5290_v36  ;;  %1999 = vmatprep.mubr.f32.mxu1 %v9582_v8  ;;  %v7722_v50 = vsel %vm336_vm5, %v2332_v39, %v2220_v40  ;;  %v5293_v14 = vpop.permute.xlu0 %5292  ;;  %vm9729_vm15 = vmmov %vm9713_vm8  ;;  %v9742_v39 = vld [vmem:[#allocation51_spill] sm:$0xff] }
 0x1d9   :  { %v5298_v4 = vpop.permute.xlu1 %5297  ;;  %v2313_v49 = vsel %vm9726_vm6, %v9725_v6, %v2095_v55  ;;  %v2314_v52 = vsel %vm9728_vm14, %v9727_v32, %v2096_v26  ;;  %v5295_v34 = vunpack.i.h.bf16 %v5293_v14  ;;  %v5294_v41 = vunpack.i.l.bf16 %v5293_v14  ;;  %4276 = vmatmul.mubr.msk.f32.gmra.mrb[20].mxu0 %vm9713_vm8, %v4270_v7  ;;  %vm9730_vm12 = vmmov %vm9723_vm0 }
 0x1da   :  { %v5299_v56 = vunpack.i.l.bf16 %v5298_v4  ;;  %v2331_v19 = vsel %vm9730_vm12, %v7189_v20, %v2187_v31  ;;  %vm9731_vm0 = vmmov %vm9724_vm2  ;;  %1910 = vmatprep.mubr.f32.mxu0 %v9582_v8  ;;  %v5300_v2 = vunpack.i.h.bf16 %v5298_v4  ;;  %vm9734_vm6 = vcmask 1014784  }
 0x1db   :  { %4283 = vmatmul.mubr.msk.f32.gmra.mrb[22].mxu1 %vm9729_vm15, %v4271_v57  ;;  %v2222_v23 = vsel %vm9731_vm0, %v5279_v29, %v5280_v47  ;;  %vm9733_vm2 = vmmov %vm9731_vm0  ;;  %v2094_v3 = vsel %vm9734_vm6, %v5295_v34, %v5165_v5  ;;  %vm9737_vm8 = vcmask 1044480   ;;  %v9738_v29 = vld [vmem:[#allocation10_spill] sm:$0xff]  ;;  %vm9739_vm15 = vcmask 1043456  }
 0x1dc   :  { %2636 = vmatprep.mubr.f32.mxu1 %v9582_v8  ;;  %v2223_v35 = vsel %vm9733_vm2, %v5280_v47, %v5284_v16  ;;  %vm9735_vm14 = vmmov %vm9734_vm6  ;;  %v2318_v54 = vsel %vm9737_vm8, %v2314_v52, %v9736_v30  ;;  %v2239_v20 = vsel %vm260_vm7, %v5170_v44, %v5299_v56  ;;  %v2312_v33 = vsel %vm9739_vm15, %v9738_v29, %v2094_v3  ;;  %v5303_v62 = vpop.permute.xlu0 %5302  ;;  %v9749_v16 = vld [vmem:[#allocation5_spill] sm:$0xff] }
 0x1dd   :  { %v2097_v38 = vsel %vm9735_vm14, %v5290_v36, %v5294_v41  ;;  %v5308_v7 = vpop.permute.xlu1 %5307  ;;  %vm9741_vm12 = vmmov %vm9737_vm8  ;;  %vm9745_vm2 = vcmask 203776   ;;  %vm9746_vm6 = vcmask 769024   ;;  %v2338_v18 = vsel %vm336_vm5, %v2334_v10, %v2222_v23 }
 0x1de   :  { %v2317_v48 = vsel %vm9741_vm12, %v2313_v49, %v9740_v25  ;;  %vm9743_vm0 = vmmov %vm9739_vm15  ;;  %v5310_v45 = vunpack.i.h.bf16 %v5308_v7  ;;  %v5309_v61 = vunpack.i.l.bf16 %v5308_v7  ;;  %4277 = vmatmul.mubr.msk.f32.gmra.mrb[22].mxu0 %vm9745_vm2, %v4271_v57  ;;  %v2148_v9 = vsel %vm9746_vm6, %v5225_v46, %v7069_v60 }
 0x1df   :  { %v2315_v5 = vsel %vm9743_vm0, %v9742_v39, %v2097_v38  ;;  %vm9744_vm1 = vmmov %vm9737_vm8  ;;  %v2335_v58 = vsel %vm331_vm3, %v2331_v19, %v2205_v63  ;;  %v5305_v47 = vunpack.i.h.bf16 %v5303_v62  ;;  %2547 = vmatprep.mubr.f32.mxu0 %v9582_v8  ;;  %v2240_v55 = vsel %vm260_vm7, %v5299_v56, %v5300_v2 }
 0x1e0   :  { %v2316_v36 = vsel %vm9744_vm1, %v2312_v33, %v2112_v51  ;;  %v2339_v21 = vsel %vm336_vm5, %v2335_v58, %v2223_v35  ;;  %v5304_v26 = vunpack.i.l.bf16 %v5303_v62  ;;  %v2321_v31 = vsel %vm351_vm11, %v2317_v48, %v9747_v59  ;;  %vm9748_vm14 = vmmov %vm9743_vm0  ;;  %v5313_v60 = vpop.permute.xlu0 %5312 }
 0x1e1   :  { %v5318_v51 = vpop.permute.xlu1 %5317  ;;  %v2341_v57 = vsel %vm9748_vm14, %v7694_v53, %v2239_v20  ;;  %v2320_v40 = vsel %vm351_vm11, %v2316_v36, %v2130_v11  ;;  %vm9750_vm3 = vmmov %vm9744_vm1  ;;  %v2322_v10 = vsel %vm351_vm11, %v2318_v54, %v6972_v24  ;;  %v2257_v6 = vsel %vm279_vm4, %v5190_v0, %v5309_v61 }
 0x1e2   :  { %v2319_v4 = vsel %vm9750_vm3, %v2315_v5, %v9749_v16  ;;  %v2258_v49 = vsel %vm279_vm4, %v5309_v61, %v5310_v45  ;;  %v5320_v14 = vunpack.i.h.bf16 %v5318_v51  ;;  %v5319_v32 = vunpack.i.l.bf16 %v5318_v51  ;;  %vm9751_vm5 = vmmov %vm9743_vm0 }
 0x1e3   :  { %v2342_v52 = vsel %vm9751_vm5, %v2338_v18, %v2240_v55  ;;  %v2238_v53 = vsel %vm260_vm7, %v5305_v47, %v5170_v44  ;;  %v5315_v11 = vunpack.i.h.bf16 %v5313_v60  ;;  %v2325_v56 = vsel %vm356_vm13, %v2321_v31, %v7106_v15  ;;  %vm9752_vm8 = vmmov %vm9744_vm1 }
 0x1e4   :  { %v2241_v24 = vsel %vm260_vm7, %v5300_v2, %v5304_v26  ;;  %v5314_v34 = vunpack.i.l.bf16 %v5313_v60  ;;  %v2324_v46 = vsel %vm356_vm13, %v2320_v40, %v2148_v9  ;;  %v2323_v19 = vsel %vm351_vm11, %v2319_v4, %v6990_v28  ;;  %vm9753_vm15 = vmmov %vm9744_vm1  ;;  %v5323_v35 = vpop.permute.xlu0 %5322 }
 0x1e5   :  { %v5328_v41 = vpop.permute.xlu1 %5327  ;;  %v2345_v23 = vsel %vm9752_vm8, %v2341_v57, %v2257_v6  ;;  %v2346_v63 = vsel %vm9753_vm15, %v2342_v52, %v2258_v49  ;;  %v2275_v17 = vsel %vm298_vm9, %v5210_v37, %v5319_v32  ;;  %v2276_v15 = vsel %vm298_vm9, %v5319_v32, %v5320_v14  ;;  %vm9754_vm7 = vmmov %vm9743_vm0 }
 0x1e6   :  { %v5330_v44 = vunpack.i.h.bf16 %v5328_v41  ;;  %v5329_v2 = vunpack.i.l.bf16 %v5328_v41  ;;  %v5325_v3 = vunpack.i.h.bf16 %v5323_v35  ;;  %v5324_v38 = vunpack.i.l.bf16 %v5323_v35  ;;  %vm9755_vm12 = vmmov %vm9743_vm0  ;;  %v4285_v35 = vld [vmem:[%s9198_s1 + $0x68] sm:$0xff] }
 0x1e7   :  { %v2340_v7 = vsel %vm9754_vm7, %v7722_v50, %v2238_v53  ;;  %v2343_v28 = vsel %vm9755_vm12, %v2339_v21, %v2241_v24  ;;  %v2256_v30 = vsel %vm279_vm4, %v5315_v11, %v5190_v0  ;;  %v2327_v54 = vsel %vm356_vm13, %v2323_v19, %v7136_v43  ;;  %vm9759_vm2 = vmmov %vm9750_vm3 }
 0x1e8   :  { %v2259_v20 = vsel %vm279_vm4, %v5310_v45, %v5314_v34  ;;  %vm9756_vm0 = vcmask 261120   ;;  %v2274_v33 = vsel %vm298_vm9, %v5325_v3, %v5210_v37  ;;  %v2349_v62 = vsel %vm351_vm11, %v2345_v23, %v2275_v17  ;;  %v5333_v43 = vpop.permute.xlu0 %5332  ;;  %vm9758_vm4 = vmmov %vm9750_vm3 }
 0x1e9   :  { %v2293_v29 = vsel %vm9756_vm0, %v5230_v1, %v5329_v2  ;;  %v2350_v12 = vsel %vm351_vm11, %v2346_v63, %v2276_v15  ;;  %vm9757_vm1 = vmmov %vm9756_vm0  ;;  %v2277_v25 = vsel %vm298_vm9, %v5320_v14, %v5324_v38  ;;  %v2344_v39 = vsel %vm9758_vm4, %v2340_v7, %v2256_v30  ;;  %v4287_v15 = vld [vmem:[%s9198_s1 + $0x78] sm:$0xff] }
 0x1ea   :  { %v2294_v0 = vsel %vm9757_vm1, %v5329_v2, %v5330_v44  ;;  %v2353_v48 = vsel %vm356_vm13, %v2349_v62, %v2293_v29  ;;  %v5335_v5 = vunpack.i.h.bf16 %v5333_v43  ;;  %v5334_v36 = vunpack.i.l.bf16 %v5333_v43  ;;  %vm9760_vm6 = vmmov %vm9756_vm0 }
 0x1eb   :  { %v5338_v50 = vpop.permute.xlu1 %5337  ;;  %v4391_v45 = vpack.c.bf16 %v2353_v48, %v2325_v56  ;;  %v2347_v13 = vsel %vm9759_vm2, %v2343_v28, %v2259_v20  ;;  %v2348_v37 = vsel %vm351_vm11, %v2344_v39, %v2274_v33  ;;  %vm9761_vm14 = vmmov %vm9756_vm0  ;;  %v2354_v55 = vsel %vm356_vm13, %v2350_v12, %v2294_v0 }
 0x1ec   :  { %v5340_v61 = vunpack.i.h.bf16 %v5338_v50  ;;  %v5339_v9 = vunpack.i.l.bf16 %v5338_v50  ;;  %v2292_v18 = vsel %vm9760_vm6, %v5335_v5, %v5230_v1  ;;  %v2295_v58 = vsel %vm9761_vm14, %v5330_v44, %v5334_v36  ;;  %v4284_v44 = vld [vmem:[%s9198_s1 + $0x60] sm:$0xff] }
 0x1ed   :  { %4392 = vmatprep.subr.bf16.mxu0 %v4391_v45  ;;  %v2351_v21 = vsel %vm351_vm11, %v2347_v13, %v2277_v25  ;;  %v2352_v31 = vsel %vm356_vm13, %v2348_v37, %v2292_v18  ;;  %v2326_v22 = vsel %vm356_vm13, %v2322_v10, %v7099_v27  ;;  %vm9762_vm9 = vcmask 252928  }
 0x1ee   :  { %v2355_v57 = vsel %vm356_vm13, %v2351_v21, %v2295_v58  ;;  %v4393_v60 = vpack.c.bf16 %v2352_v31, %v2324_v46  ;;  %v2447_v1 = vsel %vm9762_vm9, %v5339_v9, %v5340_v61  ;;  %vm9763_vm3 = vmmov %vm9762_vm9  ;;  %v4403_v6 = vpack.c.bf16 %v2354_v55, %v2326_v22 }
 0x1ef   :  { %v4401_v40 = vpack.c.bf16 %v2355_v57, %v2327_v54  ;;  %vm9764_vm11 = vmmov %vm9763_vm3  ;;  %vm9770_vm12 = vcmask 203776  }
 0x1f0   :  { %v5348_v47 = vpop.permute.xlu1 %5347  ;;  %4394 = vmatpush1.bf16.msra.mxu0 %v4393_v60  ;;  %vm9765_vm13 = vmmov %vm9763_vm3 }
 0x1f1   :  { %v5350_v26 = vunpack.i.h.bf16 %v5348_v47  ;;  %v5349_v51 = vunpack.i.l.bf16 %v5348_v47  ;;  %v5343_v59 = vpop.permute.xlu0 %5342  ;;  %4402 = vmatprep.subr.bf16.mxu1 %v4401_v40  ;;  %vm9766_vm5 = vmmov %vm9763_vm3 }
 0x1f2   :  { %v5344_v4 = vunpack.i.l.bf16 %v5343_v59  ;;  %v5345_v14 = vunpack.i.h.bf16 %v5343_v59  ;;  %4404 = vmatpush1.bf16.msra.mxu1 %v4403_v6  ;;  %vm9767_vm8 = vmmov %vm9763_vm3 }
 0x1f3   :  { %v2451_v16 = vsel %vm9763_vm3, %v5349_v51, %v5350_v26  ;;  %vm9768_vm15 = vmmov %vm9763_vm3 }
 0x1f4   :  { %v4395_v49 = vpack.c.bf16 %v2451_v16, %v2447_v1  ;;  %v2448_v27 = vsel %vm9764_vm11, %v5340_v61, %v5344_v4  ;;  %v2449_v41 = vsel %vm9767_vm8, %v5344_v4, %v5345_v14  ;;  %vm9769_vm7 = vmmov %vm9763_vm3 }
 0x1f5   :  { %v5358_v32 = vpop.permute.xlu1 %5357  ;;  %vm9771_vm0 = vmmov %vm9770_vm12 }
 0x1f6   :  { %v5360_v52 = vunpack.i.h.bf16 %v5358_v32  ;;  %v5359_v53 = vunpack.i.l.bf16 %v5358_v32  ;;  %v5353_v11 = vpop.permute.xlu0 %5352  ;;  %4397 = vmatprep.subr.msk.bf16.mxu0 %vm7114_vm10, %v4395_v49  ;;  %vm9772_vm1 = vmmov %vm9771_vm0 }
 0x1f7   :  { %v5355_v56 = vunpack.i.h.bf16 %v5353_v11  ;;  %v5354_v24 = vunpack.i.l.bf16 %v5353_v11  ;;  %vm9774_vm4 = vmmov %vm9771_vm0 }
 0x1f8   :  { %v2446_v10 = vsel %vm9765_vm13, %v5359_v53, %v5339_v9  ;;  %v2450_v34 = vsel %vm9766_vm5, %v5360_v52, %v5349_v51  ;;  %vm9775_vm2 = vmmov %vm9771_vm0 }
 0x1f9   :  { %v4398_v46 = vpack.c.bf16 %v2450_v34, %v2446_v10  ;;  %v2452_v19 = vsel %vm9768_vm15, %v5350_v26, %v5354_v24  ;;  %v2453_v23 = vsel %vm9769_vm7, %v5354_v24, %v5355_v56  ;;  %vm9776_vm6 = vmmov %vm9771_vm0 }
 0x1fa   :  { %v4405_v63 = vpack.c.bf16 %v2453_v23, %v2449_v41  ;;  %v4408_v17 = vpack.c.bf16 %v2452_v19, %v2448_v27  ;;  %vm9777_vm14 = vmmov %vm9771_vm0 }
 0x1fb   :  { %4400 = vmatpush1.bf16.msk.msra.mxu0 %vm7114_vm10, %v4398_v46 }
 0x1fc   :  { %4407 = vmatprep.subr.msk.bf16.mxu1 %vm7114_vm10, %v4405_v63 }
 0x1fd   :  { %4410 = vmatpush1.bf16.msk.msra.mxu1 %vm7114_vm10, %v4408_v17  ;;  %vm9773_vm10 = vmmov %vm9771_vm0 }
 0x1fe   :  { %4290 = vmatmul.mubr.msk.f32.vlgmr.msra.gmra.mrb[24].mxu0 %vm9770_vm12, %v4284_v44 }
 0x1ff   :  { %2553 = vmatprep.mubr.f32.mxu0 %v9582_v8 }
 0x200   :  { %4296 = vmatmul.mubr.msk.f32.vlgmr.msra.gmra.mrb[24].mxu1 %vm9771_vm0, %v4284_v44 }
 0x201   :  { %2642 = vmatprep.mubr.f32.mxu1 %v9582_v8 }
 0x202   :  { %4291 = vmatmul.mubr.msk.f32.gmra.mrb[26].mxu0 %vm9772_vm1, %v4285_v35 }
 0x203   :  { %2559 = vmatprep.mubr.f32.mxu0 %v9582_v8 }
 0x204   :  { %4297 = vmatmul.mubr.msk.f32.gmra.mrb[26].mxu1 %vm9773_vm10, %v4285_v35 }
 0x205   :  { %2648 = vmatprep.mubr.f32.mxu1 %v9582_v8 }
 0x206   :  { %4292 = vmatmul.mubr.msk.f32.gmra.mrb[28].mxu0 %vm9774_vm4, %v4286_v42 }
 0x207   :  { %2565 = vmatprep.mubr.f32.mxu0 %v9582_v8 }
 0x208   :  { %4298 = vmatmul.mubr.msk.f32.gmra.mrb[28].mxu1 %vm9775_vm2, %v4286_v42 }
 0x209   :  { %2654 = vmatprep.mubr.f32.mxu1 %v9582_v8 }
 0x20a   :  { %4293 = vmatmul.mubr.msk.f32.gmra.mrb[30].mxu0 %vm9776_vm6, %v4287_v15 }
 0x20c   :  { %4299 = vmatmul.mubr.msk.f32.gmra.mrb[30].mxu1 %vm9777_vm14, %v4287_v15 }
 0x236   :  { %v7862_v2 = vpop.f32.mrb[0].mxu1 }
 0x237   :  { %9778 = vst [vmem:[#allocation19_spill] sm:$0xff] %v7862_v2  ;;  %v7864_v3 = vpop.f32.mrb[1].mxu1 }
 0x238   :  { %9779 = vst [vmem:[#allocation20_spill] sm:$0xff] %v7864_v3 }
 0x239   :  { %v7866_v38 = vpop.f32.mrb[0].mxu0 }
 0x23a   :  { %v7868_v7 = vpop.f32.mrb[1].mxu0  ;;  %v7870_v28 = vpop.f32.mrb[2].mxu1 }
 0x23b   :  { %9780 = vst [vmem:[#allocation17_spill] sm:$0xff] %v7868_v7  ;;  %9781 = vst [vmem:[#allocation22_spill] sm:$0xff] %v7870_v28  ;;  %v7872_v30 = vpop.f32.mrb[3].mxu1 }
 0x23c   :  { %9782 = vst [vmem:[#allocation21_spill] sm:$0xff] %v7872_v30 }
 0x23d   :  { %v7874_v54 = vpop.f32.mrb[2].mxu0 }
 0x23e   :  { %v7876_v20 = vpop.f32.mrb[3].mxu0  ;;  %v7878_v8 = vpop.f32.mrb[4].mxu1 }
 0x23f   :  { %9783 = vst [vmem:[#allocation16_spill] sm:$0xff] %v7876_v20  ;;  %9784 = vst [vmem:[#allocation28_spill] sm:$0xff] %v7878_v8  ;;  %v7880_v29 = vpop.f32.mrb[5].mxu1 }
 0x240   :  { %9785 = vst [vmem:[#allocation34_spill] sm:$0xff] %v7880_v29 }
 0x241   :  { %v7882_v33 = vpop.f32.mrb[4].mxu0 }
 0x242   :  { %v7884_v50 = vpop.f32.mrb[5].mxu0  ;;  %v7886_v62 = vpop.f32.mrb[6].mxu1 }
 0x243   :  { %9786 = vst [vmem:[#allocation23_spill] sm:$0xff] %v7884_v50  ;;  %9787 = vst [vmem:[#allocation49_spill] sm:$0xff] %v7886_v62  ;;  %v7888_v12 = vpop.f32.mrb[7].mxu1 }
 0x244   :  { %9788 = vst [vmem:[#allocation38_spill] sm:$0xff] %v7888_v12 }
 0x245   :  { %v7890_v0 = vpop.f32.mrb[6].mxu0 }
 0x246   :  { %v7892_v25 = vpop.f32.mrb[7].mxu0 }
 0x247   :  { %9789 = vst [vmem:[#allocation37_spill] sm:$0xff] %v7892_v25 }
 0x262   :  { %v7894_v43 = vpop.f32.mrb[8].mxu0 }
 0x263   :  { %v2661_v48 = vadd.f32 %v7894_v43, %v7866_v38  ;;  %v7898_v39 = vpop.f32.mrb[9].mxu0 }
 0x264   :  { %9790 = vst [vmem:[#allocation18_spill] sm:$0xff] %v7898_v39  ;;  %v7900_v5 = vpop.f32.mrb[8].mxu1  ;;  %v2662_v36 = vadd.f32 %v7898_v39, %v7868_v7 }
 0x265   :  { %9791 = vst [vmem:[#allocation40_spill] sm:$0xff] %v7900_v5  ;;  %v2663_v45 = vadd.f32 %v7900_v5, %v7862_v2  ;;  %v7906_v13 = vpop.f32.mrb[9].mxu1 }
 0x266   :  { %9792 = vst [vmem:[#allocation11_spill] sm:$0xff] %v7906_v13  ;;  %v2664_v37 = vadd.f32 %v7906_v13, %v7864_v3  ;;  %v7910_v61 = vpop.f32.mrb[10].mxu0 }
 0x267   :  { %v2665_v9 = vadd.f32 %v7910_v61, %v7874_v54  ;;  %v7914_v18 = vpop.f32.mrb[11].mxu0 }
 0x268   :  { %9793 = vst [vmem:[#allocation12_spill] sm:$0xff] %v7914_v18  ;;  %v7916_v58 = vpop.f32.mrb[10].mxu1  ;;  %v2666_v47 = vadd.f32 %v7914_v18, %v7876_v20 }
 0x269   :  { %9794 = vst [vmem:[#allocation26_spill] sm:$0xff] %v7916_v58  ;;  %v2667_v21 = vadd.f32 %v7916_v58, %v7870_v28  ;;  %v7922_v55 = vpop.f32.mrb[11].mxu1 }
 0x26a   :  { %9795 = vst [vmem:[#allocation25_spill] sm:$0xff] %v7922_v55  ;;  %v2668_v26 = vadd.f32 %v7922_v55, %v7872_v30  ;;  %v7926_v51 = vpop.f32.mrb[12].mxu0 }
 0x26b   :  { %v2669_v59 = vadd.f32 %v7926_v51, %v7882_v33  ;;  %v7930_v31 = vpop.f32.mrb[13].mxu0 }
 0x26c   :  { %9796 = vst [vmem:[#allocation24_spill] sm:$0xff] %v7930_v31  ;;  %v7932_v57 = vpop.f32.mrb[12].mxu1  ;;  %v2670_v60 = vadd.f32 %v7930_v31, %v7884_v50 }
 0x26d   :  { %9797 = vst [vmem:[#allocation27_spill] sm:$0xff] %v7932_v57  ;;  %v2671_v40 = vadd.f32 %v7932_v57, %v7878_v8  ;;  %v7938_v22 = vpop.f32.mrb[13].mxu1 }
 0x26e   :  { %9798 = vst [vmem:[#allocation31_spill] sm:$0xff] %v7938_v22  ;;  %v2672_v1 = vadd.f32 %v7938_v22, %v7880_v29  ;;  %v7942_v16 = vpop.f32.mrb[14].mxu0 }
 0x26f   :  { %v2673_v4 = vadd.f32 %v7942_v16, %v7890_v0  ;;  %v7946_v6 = vpop.f32.mrb[15].mxu0 }
 0x270   :  { %9799 = vst [vmem:[#allocation32_spill] sm:$0xff] %v7946_v6  ;;  %v7948_v49 = vpop.f32.mrb[14].mxu1  ;;  %v2674_v14 = vadd.f32 %v7946_v6, %v7892_v25 }
 0x271   :  { %9800 = vst [vmem:[#allocation29_spill] sm:$0xff] %v7948_v49  ;;  %v2675_v32 = vadd.f32 %v7948_v49, %v7886_v62  ;;  %v7954_v52 = vpop.f32.mrb[15].mxu1 }
 0x272   :  { %9801 = vst [vmem:[#allocation33_spill] sm:$0xff] %v7954_v52  ;;  %v2676_v53 = vadd.f32 %v7954_v52, %v7888_v12 }
 0x2a2   :  { %v7958_v11 = vpop.f32.mrb[16].mxu1 }
 0x2a3   :  { %9802 = vst [vmem:[#allocation35_spill] sm:$0xff] %v7958_v11  ;;  %v2679_v56 = vadd.f32 %v2663_v45, %v7958_v11  ;;  %v7961_v24 = vpop.f32.mrb[17].mxu1 }
 0x2a4   :  { %9803 = vst [vmem:[#allocation36_spill] sm:$0xff] %v7961_v24  ;;  %v2680_v27 = vadd.f32 %v2664_v37, %v7961_v24  ;;  %v7964_v10 = vpop.f32.mrb[16].mxu0 }
 0x2a5   :  { %v2677_v41 = vadd.f32 %v2661_v48, %v7964_v10  ;;  %v7969_v46 = vpop.f32.mrb[17].mxu0 }
 0x2a6   :  { %v7966_v34 = vpop.f32.mrb[18].mxu1  ;;  %9805 = vst [vmem:[#allocation15_spill] sm:$0xff] %v7969_v46  ;;  %v2678_v63 = vadd.f32 %v2662_v36, %v7969_v46 }
 0x2a7   :  { %9804 = vst [vmem:[#allocation30_spill] sm:$0xff] %v7966_v34  ;;  %v2683_v19 = vadd.f32 %v2667_v21, %v7966_v34  ;;  %v7972_v23 = vpop.f32.mrb[19].mxu1 }
 0x2a8   :  { %9806 = vst [vmem:[#allocation6_spill] sm:$0xff] %v7972_v23  ;;  %v2684_v17 = vadd.f32 %v2668_v26, %v7972_v23  ;;  %v7976_v44 = vpop.f32.mrb[18].mxu0 }
 0x2a9   :  { %9807 = vst [vmem:[#allocation7_spill] sm:$0xff] %v7976_v44  ;;  %v2681_v42 = vadd.f32 %v2665_v9, %v7976_v44  ;;  %v7981_v15 = vpop.f32.mrb[19].mxu0 }
 0x2aa   :  { %v7978_v35 = vpop.f32.mrb[20].mxu1  ;;  %9809 = vst [vmem:[#allocation44_spill] sm:$0xff] %v7981_v15  ;;  %v2682_v37 = vadd.f32 %v2666_v47, %v7981_v15 }
 0x2ab   :  { %9808 = vst [vmem:[#allocation13_spill] sm:$0xff] %v7978_v35  ;;  %v2687_v48 = vadd.f32 %v2671_v40, %v7978_v35  ;;  %v7984_v45 = vpop.f32.mrb[21].mxu1 }
 0x2ac   :  { %9810 = vst [vmem:[#allocation14_spill] sm:$0xff] %v7984_v45  ;;  %v2688_v21 = vadd.f32 %v2672_v1, %v7984_v45  ;;  %v7988_v24 = vpop.f32.mrb[20].mxu0 }
 0x2ad   :  { %9811 = vst [vmem:[#allocation4_spill] sm:$0xff] %v7988_v24  ;;  %v2685_v26 = vadd.f32 %v2669_v59, %v7988_v24  ;;  %v7993_v23 = vpop.f32.mrb[21].mxu0 }
 0x2ae   :  { %v7990_v36 = vpop.f32.mrb[22].mxu1  ;;  %9813 = vst [vmem:[#allocation43_spill] sm:$0xff] %v7993_v23  ;;  %v2686_v40 = vadd.f32 %v2670_v60, %v7993_v23 }
 0x2af   :  { %9812 = vst [vmem:[#allocation47_spill] sm:$0xff] %v7990_v36  ;;  %v7996_v9 = vadd.f32 %v2675_v32, %v7990_v36  ;;  %v7998_v52 = vpop.f32.mrb[23].mxu1 }
 0x2b0   :  { %9814 = vst [vmem:[#allocation45_spill] sm:$0xff] %v7998_v52  ;;  %v8002_v22 = vadd.f32 %v2676_v53, %v7998_v52 }
 0x2b1   :  { %v8004_v47 = vpop.f32.mrb[22].mxu0 }
 0x2b2   :  { %9815 = vst [vmem:[#allocation46_spill] sm:$0xff] %v8004_v47  ;;  %v2689_v1 = vadd.f32 %v2673_v4, %v8004_v47  ;;  %v8007_v45 = vpop.f32.mrb[23].mxu0 }
 0x2b3   :  { %9816 = vst [vmem:[#allocation48_spill] sm:$0xff] %v8007_v45  ;;  %v2690_v59 = vadd.f32 %v2674_v14, %v8007_v45 }
 0x2d1   :  { %v8010_v55 = vpop.f32.mrb[24].mxu0 }
 0x2d2   :  { %9817 = vst [vmem:[#allocation3_spill] sm:$0xff] %v8010_v55  ;;  %v2693_v32 = vadd.f32 %v2677_v41, %v8010_v55  ;;  %v8013_v13 = vpop.f32.mrb[25].mxu0 }
 0x2d3   :  { %9818 = vst [vmem:[#allocation39_spill] sm:$0xff] %v8013_v13  ;;  %v2694_v12 = vadd.f32 %v2678_v63, %v8013_v13  ;;  %v8016_v60 = vpop.f32.mrb[24].mxu1 }
 0x2d4   :  { %9819 = vst [vmem:[#allocation41_spill] sm:$0xff] %v8016_v60  ;;  %v2695_v53 = vadd.f32 %v2679_v56, %v8016_v60  ;;  %v8019_v52 = vpop.f32.mrb[25].mxu1  ;;  %v8021_v29 = vmul.f32 0.125, %v2693_v32 }
 0x2d5   :  { %9820 = vst [vmem:[#allocation42_spill] sm:$0xff] %v8019_v52  ;;  %v8023_v4 = vmul.f32 0.125, %v2694_v12  ;;  %v2696_v14 = vadd.f32 %v2680_v27, %v8019_v52  ;;  %v8026_v30 = vpop.f32.mrb[26].mxu0 }
 0x2d6   :  { %9821 = vst [vmem:[#allocation8_spill] sm:$0xff] %v8026_v30  ;;  %v8028_v3 = vmul.f32 0.125, %v2695_v53  ;;  %v2697_v41 = vadd.f32 %v2681_v42, %v8026_v30  ;;  %v8031_v36 = vpop.f32.mrb[27].mxu0  ;;  %v2725_v27 = vmul.f32 %v8021_v29, %v8021_v29 }
 0x2d7   :  { %9822 = vst [vmem:[#allocation9_spill] sm:$0xff] %v8031_v36  ;;  %v8033_v63 = vmul.f32 0.125, %v2696_v14  ;;  %v2698_v56 = vadd.f32 %v2682_v37, %v8031_v36  ;;  %v8036_v60 = vpop.f32.mrb[26].mxu1  ;;  %v2726_v42 = vmul.f32 %v8023_v4, %v8023_v4 }
 0x2d8   :  { %9823 = vst [vmem:[#allocation50_spill] sm:$0xff] %v8036_v60  ;;  %v8038_v32 = vmul.f32 0.125, %v2697_v41  ;;  %v2699_v12 = vadd.f32 %v2683_v19, %v8036_v60  ;;  %v8041_v35 = vpop.f32.mrb[27].mxu1  ;;  %v2727_v37 = vmul.f32 %v8028_v3, %v8028_v3 }
 0x2d9   :  { %9824 = vst [vmem:[#allocation52_spill] sm:$0xff] %v8041_v35  ;;  %v8047_v53 = vmul.f32 0.125, %v2698_v56  ;;  %v2700_v14 = vadd.f32 %v2684_v17, %v8041_v35  ;;  %v8050_v52 = vpop.f32.mrb[28].mxu0  ;;  %v2728_v56 = vmul.f32 %v8033_v63, %v8033_v63 }
 0x2da   :  { %9825 = vst [vmem:[#allocation10_spill] sm:$0xff] %v8050_v52  ;;  %v2729_v19 = vmul.f32 %v8038_v32, %v8038_v32  ;;  %v8056_v41 = vmul.f32 0.125, %v2699_v12  ;;  %v2701_v60 = vadd.f32 %v2685_v26, %v8050_v52  ;;  %v8059_v34 = vpop.f32.mrb[29].mxu0 }
 0x2db   :  { %9826 = vst [vmem:[#allocation53_spill] sm:$0xff] %v8059_v34  ;;  %v2730_v17 = vmul.f32 %v8047_v53, %v8047_v53  ;;  %v8065_v35 = vmul.f32 0.125, %v2700_v14  ;;  %v2702_v11 = vadd.f32 %v2686_v40, %v8059_v34  ;;  %v8068_v49 = vpop.f32.mrb[28].mxu1 }
 0x2dc   :  { %9827 = vst [vmem:[#allocation51_spill] sm:$0xff] %v8068_v49  ;;  %v2741_v57 = vadd.f32 %v2729_v19, %v2725_v27  ;;  %v2731_v12 = vmul.f32 %v8056_v41, %v8056_v41  ;;  %v2717_v58 = vmul.f32 0.125, %v2701_v60  ;;  %v2703_v26 = vadd.f32 %v2687_v48, %v8068_v49  ;;  %v8073_v5 = vpop.f32.mrb[29].mxu1 }
 0x2dd   :  { %9828 = vst [vmem:[#allocation54_spill] sm:$0xff] %v8073_v5  ;;  %v2744_v62 = vadd.f32 %v2730_v17, %v2726_v42  ;;  %v2732_v8 = vmul.f32 %v8065_v35, %v8065_v35  ;;  %v2718_v28 = vmul.f32 0.125, %v2702_v11  ;;  %v2704_v14 = vadd.f32 %v2688_v21, %v8073_v5  ;;  %v8078_v2 = vpop.f32.mrb[30].mxu0 }
 0x2de   :  { %9829 = vst [vmem:[#allocation5_spill] sm:$0xff] %v8078_v2  ;;  %v2747_v40 = vadd.f32 %v2731_v12, %v2727_v37  ;;  %v2733_v34 = vmul.f32 %v2717_v58, %v2717_v58  ;;  %v2719_v27 = vmul.f32 0.125, %v2703_v26  ;;  %v2705_v19 = vadd.f32 %v2689_v1, %v8078_v2  ;;  %v8081_v36 = vpop.f32.mrb[31].mxu0 }
 0x2df   :  { %9830 = vst [vmem:[#allocation55_spill] sm:$0xff] %v8081_v36  ;;  %v2750_v60 = vadd.f32 %v2732_v8, %v2728_v56  ;;  %v2734_v48 = vmul.f32 %v2718_v28, %v2718_v28  ;;  %v2720_v49 = vmul.f32 0.125, %v2704_v14  ;;  %v2706_v42 = vadd.f32 %v2690_v59, %v8081_v36  ;;  %v8084_v17 = vpop.f32.mrb[30].mxu1 }
 0x2e0   :  { %9831 = vst [vmem:[#allocation56_spill] sm:$0xff] %v8084_v17  ;;  %v2742_v13 = vadd.f32 %v2741_v57, %v2733_v34  ;;  %v2735_v11 = vmul.f32 %v2719_v27, %v2719_v27  ;;  %v2721_v45 = vmul.f32 0.125, %v2705_v19  ;;  %v2707_v21 = vadd.f32 %v7996_v9, %v8084_v17  ;;  %v8088_v37 = vpop.f32.mrb[31].mxu1 }
 0x2e1   :  { %9832 = vst [vmem:[#allocation57_spill] sm:$0xff] %v8088_v37  ;;  %v2736_v12 = vmul.f32 %v2720_v49, %v2720_v49  ;;  %v2722_v26 = vmul.f32 0.125, %v2706_v42  ;;  %v2745_v1 = vadd.f32 %v2744_v62, %v2734_v48  ;;  %v2708_v8 = vadd.f32 %v8002_v22, %v8088_v37 }
 0x2e2   :  { %v2748_v56 = vadd.f32 %v2747_v40, %v2735_v11  ;;  %v2737_v14 = vmul.f32 %v2721_v45, %v2721_v45  ;;  %v2723_v5 = vmul.f32 0.125, %v2707_v21 }
 0x2e3   :  { %v2738_v59 = vmul.f32 %v2722_v26, %v2722_v26  ;;  %v2724_v36 = vmul.f32 0.125, %v2708_v8  ;;  %v2751_v23 = vadd.f32 %v2750_v60, %v2736_v12 }
 0x2e4   :  { %v2743_v57 = vadd.f32 %v2742_v13, %v2737_v14  ;;  %v2739_v34 = vmul.f32 %v2723_v5, %v2723_v5 }
 0x2e5   :  { %v2746_v19 = vadd.f32 %v2745_v1, %v2738_v59  ;;  %v2740_v15 = vmul.f32 %v2724_v36, %v2724_v36 }
 0x2e6   :  { %v2753_v46 = vadd.f32 0.0001, %v2743_v57  ;;  %v2749_v9 = vadd.f32 %v2748_v56, %v2739_v34 }
 0x2e7   :  { %v2754_v17 = vadd.f32 0.0001, %v2746_v19  ;;  %v2752_v6 = vadd.f32 %v2751_v23, %v2740_v15 }
 0x2e8   :  { %5361 = vrsqrt.f32 %v2753_v46  ;;  %v8093_v62 = vmul.f32 %v2753_v46, %v8021_v29  ;;  %v8096_v22 = vmul.f32 %v2753_v46, %v8038_v32  ;;  %v8098_v40 = vmul.f32 %v2753_v46, %v2717_v58 }
 0x2e9   :  { %v8100_v48 = vmul.f32 %v2753_v46, %v2721_v45  ;;  %5363 = vrsqrt.f32 %v2754_v17  ;;  %v8103_v13 = vmul.f32 %v2754_v17, %v8023_v4  ;;  %v8106_v60 = vmul.f32 %v2754_v17, %v8047_v53 }
 0x2ea   :  { %v8108_v42 = vmul.f32 %v2754_v17, %v2718_v28  ;;  %v8110_v23 = vmul.f32 %v2754_v17, %v2722_v26  ;;  %v2755_v29 = vadd.f32 0.0001, %v2749_v9  ;;  %v2756_v15 = vadd.f32 0.0001, %v2752_v6 }
 0x2eb   :  { %vm2759_vm9 = vcmp.eq.f32.partialorder %v2753_v46, inf  ;;  %vm2761_vm3 = vcmp.eq.f32.partialorder %v2753_v46, 0.0  ;;  %vm2766_vm11 = vcmp.eq.f32.partialorder %v2754_v17, inf  ;;  %vm2768_vm13 = vcmp.eq.f32.partialorder %v2754_v17, 0.0 }
 0x2ec   :  { %5365 = vrsqrt.f32 %v2755_v29  ;;  %v8113_v32 = vmul.f32 %v2755_v29, %v8028_v3  ;;  %v8116_v58 = vmul.f32 %v2755_v29, %v8056_v41  ;;  %v8118_v45 = vmul.f32 %v2755_v29, %v2719_v27 }
 0x2ed   :  { %v8120_v4 = vmul.f32 %v2755_v29, %v2723_v5  ;;  %5367 = vrsqrt.f32 %v2756_v15  ;;  %v8123_v53 = vmul.f32 %v2756_v15, %v8033_v63  ;;  %v8126_v28 = vmul.f32 %v2756_v15, %v8065_v35 }
 0x2ee   :  { %v8128_v11 = vmul.f32 %v2756_v15, %v2720_v49  ;;  %v8130_v21 = vmul.f32 %v2756_v15, %v2724_v36  ;;  %v2762_v41 = vand.u32 2147483648, %v2753_v46  ;;  %v2801_v5 = vadd.f32 1.0, %v2753_v46 }
 0x2ef   :  { %v2769_v63 = vand.u32 2147483648, %v2754_v17  ;;  %v2802_v35 = vadd.f32 1.0, %v2754_v17  ;;  %vm2773_vm5 = vcmp.eq.f32.partialorder %v2755_v29, inf  ;;  %vm2775_vm8 = vcmp.eq.f32.partialorder %v2755_v29, 0.0 }
 0x2f0   :  { %v2776_v19 = vand.u32 2147483648, %v2755_v29  ;;  %vm2780_vm15 = vcmp.eq.f32.partialorder %v2756_v15, inf  ;;  %vm2782_vm7 = vcmp.eq.f32.partialorder %v2756_v15, 0.0 }
 0x2f2   :  { %v5362_v6 = vpop.eup %5361 }
 0x2f3   :  { %v2758_v3 = vmul.f32 %v5362_v6, %v2753_v46  ;;  %v5364_v12 = vpop.eup %5363 }
 0x2f4   :  { %v2765_v26 = vmul.f32 %v5364_v12, %v2754_v17 }
 0x2f5   :  { %v2760_v27 = vsel %vm2759_vm9, %v2753_v46, %v2758_v3  ;;  %v2803_v46 = vadd.f32 1.0, %v2755_v29 }
 0x2f6   :  { %v2763_v1 = vsel %vm2761_vm3, %v2762_v41, %v2760_v27  ;;  %v2767_v56 = vsel %vm2766_vm11, %v2754_v17, %v2765_v26  ;;  %v5366_v49 = vpop.eup %5365  ;;  %v2783_v41 = vand.u32 2147483648, %v2756_v15  ;;  %v2804_v17 = vadd.f32 1.0, %v2756_v15 }
 0x2f7   :  { %v2805_v8 = vmul.f32 %v2801_v5, %v2763_v1  ;;  %v2770_v14 = vsel %vm2768_vm13, %v2769_v63, %v2767_v56  ;;  %v2772_v57 = vmul.f32 %v5366_v49, %v2755_v29  ;;  %v5368_v34 = vpop.eup %5367 }
 0x2f8   :  { %v2806_v36 = vmul.f32 %v2802_v35, %v2770_v14  ;;  %v2779_v6 = vmul.f32 %v5368_v34, %v2756_v15 }
 0x2f9   :  { %v2809_v59 = vadd.f32 0.0001, %v2805_v8  ;;  %v2774_v9 = vsel %vm2773_vm5, %v2755_v29, %v2772_v57 }
 0x2fa   :  { %v2810_v3 = vadd.f32 0.0001, %v2806_v36  ;;  %v2777_v12 = vsel %vm2775_vm8, %v2776_v19, %v2774_v9  ;;  %v2781_v5 = vsel %vm2780_vm15, %v2756_v15, %v2779_v6 }
 0x2fb   :  { %5369 = vrcp.f32 %v2809_v59  ;;  %v2807_v27 = vmul.f32 %v2803_v46, %v2777_v12  ;;  %v2784_v26 = vsel %vm2782_vm7, %v2783_v41, %v2781_v5 }
 0x2fc   :  { %v2808_v1 = vmul.f32 %v2804_v17, %v2784_v26  ;;  %5371 = vrcp.f32 %v2810_v3 }
 0x2fd   :  { %v2811_v63 = vadd.f32 0.0001, %v2807_v27 }
 0x2fe   :  { %v2812_v8 = vadd.f32 0.0001, %v2808_v1 }
 0x2ff   :  { %5373 = vrcp.f32 %v2811_v63 }
 0x300   :  { %5375 = vrcp.f32 %v2812_v8 }
 0x305   :  { %v5370_v56 = vpop.eup %5369 }
 0x306   :  { %v2817_v35 = vmul.f32 %v5370_v56, %v8093_v62  ;;  %v2821_v29 = vmul.f32 %v5370_v56, %v8096_v22  ;;  %v2825_v49 = vmul.f32 %v5370_v56, %v8098_v40  ;;  %v2829_v14 = vmul.f32 %v5370_v56, %v8100_v48  ;;  %v5372_v40 = vpop.eup %5371 }
 0x307   :  { %v2818_v56 = vmul.f32 %v5372_v40, %v8103_v13 }
 0x308   :  { %v2833_v59 = vmul.f32 %v2817_v35, %v7866_v38  ;;  %v2837_v15 = vmul.f32 %v2821_v29, %v7874_v54  ;;  %v2841_v36 = vmul.f32 %v2825_v49, %v7882_v33  ;;  %v2845_v57 = vmul.f32 %v2829_v14, %v7890_v0 }
 0x309   :  { %v2865_v34 = vmul.f32 %v2817_v35, %v7894_v43  ;;  %v2869_v19 = vmul.f32 %v2821_v29, %v7910_v61  ;;  %v2873_v62 = vmul.f32 %v2825_v49, %v7926_v51  ;;  %v2877_v22 = vmul.f32 %v2829_v14, %v7942_v16  ;;  %v5374_v37 = vpop.eup %5373 }
 0x30a   :  { %v2849_v9 = vadd.f32 %v2837_v15, %v2833_v59  ;;  %v2897_v48 = vmul.f32 %v2817_v35, %v7964_v10  ;;  %v2901_v46 = vmul.f32 %v2821_v29, %v7976_v44  ;;  %v2905_v6 = vmul.f32 %v2825_v49, %v7988_v24 }
 0x30b   :  { %v2881_v3 = vadd.f32 %v2869_v19, %v2865_v34  ;;  %v2909_v12 = vmul.f32 %v2829_v14, %v8004_v47  ;;  %v2929_v41 = vmul.f32 %v2817_v35, %v8010_v55  ;;  %v2933_v27 = vmul.f32 %v2821_v29, %v8026_v30 }
 0x30c   :  { %v2850_v5 = vadd.f32 %v2849_v9, %v2841_v36  ;;  %v2913_v17 = vadd.f32 %v2901_v46, %v2897_v48  ;;  %v2937_v26 = vmul.f32 %v2825_v49, %v8050_v52  ;;  %v2941_v1 = vmul.f32 %v2829_v14, %v8078_v2 }
 0x30d   :  { %v2882_v63 = vadd.f32 %v2881_v3, %v2873_v62  ;;  %v2945_v8 = vadd.f32 %v2933_v27, %v2929_v41  ;;  %v2822_v59 = vmul.f32 %v5372_v40, %v8106_v60  ;;  %v2826_v19 = vmul.f32 %v5372_v40, %v8108_v42  ;;  %v8160_v60 = vpop.eup %5375 }
 0x30e   :  { %v2851_v15 = vadd.f32 %v2850_v5, %v2845_v57  ;;  %v2914_v34 = vadd.f32 %v2913_v17, %v2905_v6  ;;  %v2830_v35 = vmul.f32 %v5372_v40, %v8110_v23  ;;  %v2834_v9 = vmul.f32 %v2818_v56, %v7868_v7  ;;  %v9833_v5 = vld [vmem:[#allocation32_spill] sm:$0xff] }
 0x30f   :  { %v2883_v29 = vadd.f32 %v2882_v63, %v2877_v22  ;;  %v2946_v36 = vadd.f32 %v2945_v8, %v2937_v26  ;;  %v2838_v49 = vmul.f32 %v2822_v59, %v7876_v20  ;;  %v2842_v48 = vmul.f32 %v2826_v19, %v7884_v50  ;;  %v9834_v8 = vld [vmem:[#allocation15_spill] sm:$0xff] }
 0x310   :  { %v2861_v14 = vadd.f32 0.125, %v2851_v15  ;;  %v2915_v62 = vadd.f32 %v2914_v34, %v2909_v12  ;;  %v2846_v13 = vmul.f32 %v2830_v35, %v7892_v25  ;;  %v2866_v23 = vmul.f32 %v2818_v56, %v7898_v39 }
 0x311   :  { %v2893_v57 = vadd.f32 0.125, %v2883_v29  ;;  %v2947_v46 = vadd.f32 %v2946_v36, %v2941_v1  ;;  %v2852_v42 = vadd.f32 %v2838_v49, %v2834_v9  ;;  %v2870_v6 = vmul.f32 %v2822_v59, %v7914_v18  ;;  %v9835_v29 = vld [vmem:[#allocation44_spill] sm:$0xff]  ;;  %v9836_v49 = vld [vmem:[#allocation43_spill] sm:$0xff] }
 0x312   :  { %v2925_v40 = vadd.f32 0.125, %v2915_v62  ;;  %v2961_v22 = vmul.f32 1.442695, %v2861_v14  ;;  %v2874_v3 = vmul.f32 %v2826_v19, %v7930_v31  ;;  %v2878_v17 = vmul.f32 %v2830_v35, %v9833_v5  ;;  %v9837_v62 = vld [vmem:[#allocation48_spill] sm:$0xff]  ;;  %v9854_v31 = vld [vmem:[#allocation41_spill] sm:$0xff] }
 0x313   :  { %v2957_v41 = vadd.f32 0.125, %v2947_v46  ;;  %v2969_v27 = vmul.f32 1.442695, %v2893_v57  ;;  %v2853_v12 = vadd.f32 %v2852_v42, %v2842_v48  ;;  %v2884_v63 = vadd.f32 %v2870_v6, %v2866_v23  ;;  %v9838_v42 = vld [vmem:[#allocation39_spill] sm:$0xff]  ;;  %v9839_v23 = vld [vmem:[#allocation9_spill] sm:$0xff] }
 0x314   :  { %5377 = vpow2.f32 %v2961_v22  ;;  %v2977_v26 = vmul.f32 1.442695, %v2925_v40  ;;  %v2898_v15 = vmul.f32 %v2818_v56, %v9834_v8  ;;  %v2902_v36 = vmul.f32 %v2822_v59, %v9835_v29  ;;  %v9840_v8 = vld [vmem:[#allocation53_spill] sm:$0xff] }
 0x315   :  { %5379 = vpow2.f32 %v2969_v27  ;;  %v2985_v1 = vmul.f32 1.442695, %v2957_v41  ;;  %v2854_v34 = vadd.f32 %v2853_v12, %v2846_v13  ;;  %v2885_v9 = vadd.f32 %v2884_v63, %v2874_v3  ;;  %v9841_v41 = vld [vmem:[#allocation55_spill] sm:$0xff] }
 0x316   :  { %5381 = vpow2.f32 %v2977_v26  ;;  %v2906_v14 = vmul.f32 %v2826_v19, %v9836_v49  ;;  %v2910_v46 = vmul.f32 %v2830_v35, %v9837_v62  ;;  %v2916_v57 = vadd.f32 %v2902_v36, %v2898_v15 }
 0x317   :  { %5383 = vpow2.f32 %v2985_v1  ;;  %v2862_v48 = vadd.f32 0.125, %v2854_v34  ;;  %v2930_v22 = vmul.f32 %v2818_v56, %v9838_v42  ;;  %v2886_v40 = vadd.f32 %v2885_v9, %v2878_v17  ;;  %v9844_v9 = vld [vmem:[#allocation28_spill] sm:$0xff] }
 0x318   :  { %v2934_v6 = vmul.f32 %v2822_v59, %v9839_v23  ;;  %v2938_v27 = vmul.f32 %v2826_v19, %v9840_v8  ;;  %v2942_v13 = vmul.f32 %v2830_v35, %v9841_v41  ;;  %v2917_v12 = vadd.f32 %v2916_v57, %v2906_v14  ;;  %v9842_v19 = vld [vmem:[#allocation19_spill] sm:$0xff]  ;;  %v9843_v35 = vld [vmem:[#allocation22_spill] sm:$0xff]  ;;  %v9845_v14 = vld [vmem:[#allocation49_spill] sm:$0xff] }
 0x319   :  { %v2963_v29 = vmul.f32 1.442695, %v2862_v48  ;;  %v2819_v3 = vmul.f32 %v5374_v37, %v8113_v32  ;;  %v8176_v26 = vmul.f32 %v5374_v37, %v8116_v58  ;;  %v2894_v63 = vadd.f32 0.125, %v2886_v40  ;;  %v9852_v8 = vld [vmem:[#allocation13_spill] sm:$0xff] }
 0x31a   :  { %v2948_v1 = vadd.f32 %v2934_v6, %v2930_v22  ;;  %v8179_v15 = vmul.f32 %v5374_v37, %v8118_v45  ;;  %v8182_v56 = vmul.f32 %v5374_v37, %v8120_v4  ;;  %v2918_v59 = vadd.f32 %v2917_v12, %v2910_v46  ;;  %v9846_v22 = vld [vmem:[#allocation40_spill] sm:$0xff]  ;;  %v9847_v4 = vld [vmem:[#allocation26_spill] sm:$0xff]  ;;  %v9848_v6 = vld [vmem:[#allocation27_spill] sm:$0xff] }
 0x31b   :  { %5385 = vpow2.f32 %v2963_v29  ;;  %v2835_v17 = vmul.f32 %v2819_v3, %v9842_v19  ;;  %v2839_v34 = vmul.f32 %v8176_v26, %v9843_v35  ;;  %v2971_v32 = vmul.f32 1.442695, %v2894_v63  ;;  %v9849_v12 = vld [vmem:[#allocation29_spill] sm:$0xff] }
 0x31c   :  { %v2949_v36 = vadd.f32 %v2948_v1, %v2938_v27  ;;  %v2843_v58 = vmul.f32 %v8179_v15, %v9844_v9  ;;  %v2847_v48 = vmul.f32 %v8182_v56, %v9845_v14  ;;  %v2926_v45 = vadd.f32 0.125, %v2918_v59 }
 0x31d   :  { %v2855_v57 = vadd.f32 %v2839_v34, %v2835_v17  ;;  %v2867_v37 = vmul.f32 %v2819_v3, %v9846_v22  ;;  %v2871_v29 = vmul.f32 %v8176_v26, %v9847_v4  ;;  %5387 = vpow2.f32 %v2971_v32  ;;  %v9851_v32 = vld [vmem:[#allocation30_spill] sm:$0xff] }
 0x31e   :  { %v8194_v46 = vpop.eup %5377  ;;  %v2950_v40 = vadd.f32 %v2949_v36, %v2942_v13  ;;  %v2875_v27 = vmul.f32 %v8179_v15, %v9848_v6  ;;  %v2879_v63 = vmul.f32 %v8182_v56, %v9849_v12  ;;  %v2979_v17 = vmul.f32 1.442695, %v2926_v45  ;;  %v9850_v13 = vld [vmem:[#allocation35_spill] sm:$0xff] }
 0x31f   :  { %v8200_v1 = vpop.eup %5379  ;;  %v2993_v59 = vrot.slane %v8194_v46, 4  ;;  %v2856_v34 = vadd.f32 %v2855_v57, %v2843_v58  ;;  %v2887_v22 = vadd.f32 %v2871_v29, %v2867_v37  ;;  %v2899_v36 = vmul.f32 %v2819_v3, %v9850_v13 }
 0x320   :  { %v8203_v14 = vpop.eup %5381  ;;  %v3025_v4 = vrot.slane %v8200_v1, 4  ;;  %v2958_v9 = vadd.f32 0.125, %v2950_v40  ;;  %v2903_v6 = vmul.f32 %v8176_v26, %v9851_v32  ;;  %5389 = vpow2.f32 %v2979_v17 }
 0x321   :  { %v8209_v35 = vpop.eup %5383  ;;  %v2994_v12 = vadd.f32 %v8194_v46, %v2993_v59  ;;  %v3057_v19 = vrot.slane %v8203_v14, 4  ;;  %v2857_v45 = vadd.f32 %v2856_v34, %v2847_v48  ;;  %v2888_v29 = vadd.f32 %v2887_v22, %v2875_v27  ;;  %v9853_v34 = vld [vmem:[#allocation47_spill] sm:$0xff] }
 0x322   :  { %v3026_v58 = vadd.f32 %v8200_v1, %v3025_v4  ;;  %v3089_v57 = vrot.slane %v8209_v35, 4  ;;  %v2987_v37 = vmul.f32 1.442695, %v2958_v9  ;;  %v2907_v32 = vmul.f32 %v8179_v15, %v9852_v8 }
 0x323   :  { %v2995_v40 = vrot.slane %v2994_v12, 2  ;;  %v3058_v13 = vadd.f32 %v8203_v14, %v3057_v19  ;;  %v2863_v41 = vadd.f32 0.125, %v2857_v45  ;;  %v2889_v42 = vadd.f32 %v2888_v29, %v2879_v63 }
 0x324   :  { %v3027_v23 = vrot.slane %v3026_v58, 2  ;;  %v3090_v59 = vadd.f32 %v8209_v35, %v3089_v57  ;;  %5391 = vpow2.f32 %v2987_v37  ;;  %v2911_v9 = vmul.f32 %v8182_v56, %v9853_v34 }
 0x325   :  { %v8219_v17 = vpop.eup %5385  ;;  %v2996_v48 = vadd.f32 %v2995_v40, %v2994_v12  ;;  %v3059_v4 = vrot.slane %v3058_v13, 2  ;;  %v2919_v22 = vadd.f32 %v2903_v6, %v2899_v36  ;;  %v2895_v45 = vadd.f32 0.125, %v2889_v42  ;;  %v9855_v40 = vld [vmem:[#allocation50_spill] sm:$0xff] }
 0x326   :  { %v3028_v27 = vadd.f32 %v3027_v23, %v3026_v58  ;;  %v3091_v62 = vrot.slane %v3090_v59, 2  ;;  %v2999_v19 = vrot.slane %v8219_v17, 4  ;;  %v2931_v57 = vmul.f32 %v2819_v3, %v9854_v31 }
 0x327   :  { %v2997_v49 = vrot.slane %v2996_v48, 1  ;;  %v3060_v8 = vadd.f32 %v3059_v4, %v3058_v13  ;;  %v2920_v5 = vadd.f32 %v2919_v22, %v2907_v32  ;;  %v8225_v37 = vpop.eup %5387  ;;  %v2935_v34 = vmul.f32 %v8176_v26, %v9855_v40  ;;  %v9856_v32 = vld [vmem:[#allocation51_spill] sm:$0xff] }
 0x328   :  { %v3029_v63 = vrot.slane %v3028_v27, 1  ;;  %v3092_v29 = vadd.f32 %v3091_v62, %v3090_v59  ;;  %v3000_v12 = vadd.f32 %v8219_v17, %v2999_v19  ;;  %v3031_v36 = vrot.slane %v8225_v37, 4 }
 0x329   :  { %v2998_v6 = vadd.f32 %v2997_v49, %v2996_v48  ;;  %v3061_v23 = vrot.slane %v3060_v8, 1  ;;  %v2921_v58 = vadd.f32 %v2920_v5, %v2911_v9  ;;  %v2939_v3 = vmul.f32 %v8179_v15, %v9856_v32  ;;  %v9857_v9 = vld [vmem:[#allocation56_spill] sm:$0xff] }
 0x32a   :  { %v3030_v42 = vadd.f32 %v3029_v63, %v3028_v27  ;;  %v3093_v18 = vrot.slane %v3092_v29, 1  ;;  %v3001_v13 = vrot.slane %v3000_v12, 2  ;;  %v8233_v4 = vpop.eup %5389  ;;  %v3032_v59 = vadd.f32 %v8225_v37, %v3031_v36 }
 0x32b   :  { %5393 = vrcp.f32 %v2998_v6  ;;  %v3062_v62 = vadd.f32 %v3061_v23, %v3060_v8  ;;  %v2927_v22 = vadd.f32 0.125, %v2921_v58  ;;  %v3063_v48 = vrot.slane %v8233_v4, 4 }
 0x32c   :  { %5395 = vrcp.f32 %v3030_v42  ;;  %v3094_v26 = vadd.f32 %v3093_v18, %v3092_v29  ;;  %v3002_v49 = vadd.f32 %v3001_v13, %v3000_v12  ;;  %v3033_v5 = vrot.slane %v3032_v59, 2 }
 0x32d   :  { %5397 = vrcp.f32 %v3062_v62  ;;  %v2943_v27 = vmul.f32 %v8182_v56, %v9857_v9  ;;  %v2951_v19 = vadd.f32 %v2935_v34, %v2931_v57  ;;  %v3064_v8 = vadd.f32 %v8233_v4, %v3063_v48  ;;  %v9858_v48 = vld [vmem:[#allocation20_spill] sm:$0xff] }
 0x32e   :  { %v8239_v63 = vpop.eup %5391  ;;  %5399 = vrcp.f32 %v3094_v26  ;;  %v3003_v15 = vrot.slane %v3002_v49, 1  ;;  %v2965_v6 = vmul.f32 1.442695, %v2863_v41  ;;  %v3034_v23 = vadd.f32 %v3033_v5, %v3032_v59 }
 0x32f   :  { %v3095_v36 = vrot.slane %v8239_v63, 4  ;;  %v2952_v18 = vadd.f32 %v2951_v19, %v2939_v3  ;;  %v2973_v29 = vmul.f32 1.442695, %v2895_v45  ;;  %v3065_v58 = vrot.slane %v3064_v8, 2  ;;  %v9859_v19 = vld [vmem:[#allocation21_spill] sm:$0xff] }
 0x330   :  { %v3004_v12 = vadd.f32 %v3003_v15, %v3002_v49  ;;  %5401 = vpow2.f32 %v2965_v6  ;;  %v2981_v42 = vmul.f32 1.442695, %v2927_v22  ;;  %v3035_v13 = vrot.slane %v3034_v23, 1 }
 0x331   :  { %v3096_v56 = vadd.f32 %v8239_v63, %v3095_v36  ;;  %v2953_v34 = vadd.f32 %v2952_v18, %v2943_v27  ;;  %5403 = vpow2.f32 %v2973_v29  ;;  %v3066_v57 = vadd.f32 %v3065_v58, %v3064_v8 }
 0x332   :  { %5405 = vrcp.f32 %v3004_v12  ;;  %v8246_v62 = vmul.f32 %v8160_v60, %v8123_v53  ;;  %v8250_v41 = vmul.f32 %v8160_v60, %v8126_v28  ;;  %v3036_v45 = vadd.f32 %v3035_v13, %v3034_v23  ;;  %v9861_v23 = vld [vmem:[#allocation34_spill] sm:$0xff] }
 0x333   :  { %v3097_v3 = vrot.slane %v3096_v56, 2  ;;  %v2959_v59 = vadd.f32 0.125, %v2953_v34  ;;  %5407 = vpow2.f32 %v2981_v42  ;;  %v3067_v22 = vrot.slane %v3066_v57, 1 }
 0x334   :  { %v8254_v26 = vmul.f32 %v8160_v60, %v8128_v11  ;;  %v8258_v49 = vmul.f32 %v8160_v60, %v8130_v21  ;;  %v2836_v53 = vmul.f32 %v8246_v62, %v9858_v48  ;;  %5409 = vrcp.f32 %v3036_v45  ;;  %v9862_v21 = vld [vmem:[#allocation38_spill] sm:$0xff] }
 0x335   :  { %v5394_v5 = vpop.eup %5393  ;;  %v3098_v28 = vadd.f32 %v3097_v3, %v3096_v56  ;;  %v2989_v27 = vmul.f32 1.442695, %v2959_v59  ;;  %v2840_v15 = vmul.f32 %v8250_v41, %v9859_v19  ;;  %v3068_v11 = vadd.f32 %v3067_v22, %v3066_v57 }
 0x336   :  { %v5396_v8 = vpop.eup %5395  ;;  %v8265_v6 = vmul.f32 %v5394_v5, %v8194_v46  ;;  %v8269_v36 = vmul.f32 %v8254_v26, %v9861_v23  ;;  %v8273_v60 = vmul.f32 %v8258_v49, %v9862_v21 }
 0x337   :  { %v5398_v18 = vpop.eup %5397  ;;  %v8276_v29 = vmul.f32 %v5396_v8, %v8200_v1  ;;  %v3099_v12 = vrot.slane %v3098_v28, 1  ;;  %5411 = vpow2.f32 %v2989_v27  ;;  %v8278_v58 = vadd.f32 %v2840_v15, %v2836_v53 }
 0x338   :  { %9860 = vst [vmem:[#allocation58_spill] sm:$0xff] %v8265_v6  ;;  %v5400_v42 = vpop.eup %5399  ;;  %v8281_v46 = vmul.f32 %v5398_v18, %v8203_v14  ;;  %v3121_v13 = vmul.f32 %v8265_v6, %v7866_v38  ;;  %v3125_v56 = vmul.f32 %v8265_v6, %v7874_v54  ;;  %v3129_v34 = vmul.f32 %v8265_v6, %v7882_v33 }
 0x339   :  { %9863 = vst [vmem:[#allocation59_spill] sm:$0xff] %v8276_v29  ;;  %v8290_v1 = vmul.f32 %v5400_v42, %v8209_v35  ;;  %v3133_v57 = vmul.f32 %v8265_v6, %v7890_v0  ;;  %v3137_v45 = vmul.f32 %v8276_v29, %v7894_v43  ;;  %v3141_v14 = vmul.f32 %v8276_v29, %v7910_v61 }
 0x33a   :  { %9864 = vst [vmem:[#allocation60_spill] sm:$0xff] %v8281_v46  ;;  %v8298_v3 = vpop.eup %5401  ;;  %v3145_v59 = vmul.f32 %v8276_v29, %v7926_v51  ;;  %v3149_v22 = vmul.f32 %v8276_v29, %v7942_v16  ;;  %v3169_v35 = vmul.f32 %v8281_v46, %v7964_v10  ;;  %v3173_v53 = vmul.f32 %v8281_v46, %v7976_v44  ;;  %v9883_v44 = vld [vmem:[#allocation33_spill] sm:$0xff] }
 0x33b   :  { %9865 = vst [vmem:[#allocation61_spill] sm:$0xff] %v8290_v1  ;;  %v8308_v5 = vpop.eup %5403  ;;  %v3153_v27 = vadd.f32 %v3137_v45, %v3121_v13  ;;  %v3157_v15 = vadd.f32 %v3141_v14, %v3125_v56  ;;  %v3177_v8 = vmul.f32 %v8281_v46, %v7988_v24  ;;  %v3181_v18 = vmul.f32 %v8281_v46, %v8004_v47 }
 0x33c   :  { %v5406_v42 = vpop.eup %5405  ;;  %v3161_v21 = vadd.f32 %v3145_v59, %v3129_v34  ;;  %v3165_v23 = vadd.f32 %v3149_v22, %v3133_v57  ;;  %v3201_v19 = vmul.f32 %v8290_v1, %v8010_v55  ;;  %v3205_v48 = vmul.f32 %v8290_v1, %v8026_v30 }
 0x33d   :  { %v8318_v29 = vpop.eup %5407  ;;  %v3185_v6 = vadd.f32 %v3169_v35, %v3153_v27  ;;  %v3189_v13 = vadd.f32 %v3173_v53, %v3157_v15  ;;  %v3209_v56 = vmul.f32 %v8290_v1, %v8050_v52  ;;  %v3213_v45 = vmul.f32 %v8290_v1, %v8078_v2 }
 0x33e   :  { %v3193_v14 = vadd.f32 %v3177_v8, %v3161_v21  ;;  %v3197_v46 = vadd.f32 %v3181_v18, %v3165_v23  ;;  %v8325_v34 = vmul.f32 %v5406_v42, %v8219_v17  ;;  %5413 = vrcp.f32 %v3068_v11  ;;  %v5410_v57 = vpop.eup %5409  ;;  %v9869_v18 = vld [vmem:[#allocation24_spill] sm:$0xff] }
 0x33f   :  { %v3217_v59 = vadd.f32 %v3201_v19, %v3185_v6  ;;  %v3221_v22 = vadd.f32 %v3205_v48, %v3189_v13  ;;  %v3100_v30 = vadd.f32 %v3099_v12, %v3098_v28  ;;  %v3005_v55 = vrot.slane %v8298_v3, 4  ;;  %v9870_v42 = vld [vmem:[#allocation32_spill] sm:$0xff] }
 0x340   :  { %9866 = vst [vmem:[#allocation62_spill] sm:$0xff] %v8325_v34  ;;  %v3225_v35 = vadd.f32 %v3209_v56, %v3193_v14  ;;  %v3229_v53 = vadd.f32 %v3213_v45, %v3197_v46  ;;  %v8329_v27 = vmul.f32 %v5410_v57, %v8225_v37  ;;  %v3122_v15 = vmul.f32 %v8325_v34, %v7868_v7  ;;  %v9868_v46 = vld [vmem:[#allocation12_spill] sm:$0xff] }
 0x341   :  { %v8333_v21 = vpop.eup %5411  ;;  %v3233_v23 = vmul.f32 %v3217_v59, %v3217_v59  ;;  %v3237_v17 = vmul.f32 %v3221_v22, %v3221_v22  ;;  %5415 = vrcp.f32 %v3100_v30  ;;  %v3126_v19 = vmul.f32 %v8325_v34, %v7876_v20 }
 0x342   :  { %9867 = vst [vmem:[#allocation63_spill] sm:$0xff] %v8329_v27  ;;  %v3241_v48 = vmul.f32 %v3225_v35, %v3225_v35  ;;  %v3245_v28 = vmul.f32 %v3229_v53, %v3229_v53  ;;  %v3130_v6 = vmul.f32 %v8325_v34, %v7884_v50  ;;  %v3134_v37 = vmul.f32 %v8325_v34, %v7892_v25 }
 0x343   :  { %v3249_v11 = vadd.f32 %v3237_v17, %v3233_v23  ;;  %v3138_v12 = vmul.f32 %v8329_v27, %v7898_v39  ;;  %v3142_v8 = vmul.f32 %v8329_v27, %v9868_v46  ;;  %v3146_v30 = vmul.f32 %v8329_v27, %v9869_v18 }
 0x344   :  { %v3150_v13 = vmul.f32 %v8329_v27, %v9870_v42  ;;  %v3006_v56 = vadd.f32 %v8298_v3, %v3005_v55  ;;  %v3037_v45 = vrot.slane %v8308_v5, 4  ;;  %v3069_v14 = vrot.slane %v8318_v29, 4  ;;  %v9871_v27 = vld [vmem:[#allocation11_spill] sm:$0xff] }
 0x345   :  { %v3250_v57 = vadd.f32 %v3249_v11, %v3241_v48  ;;  %v3154_v23 = vadd.f32 %v3138_v12, %v3122_v15  ;;  %v3158_v17 = vadd.f32 %v3142_v8, %v3126_v19  ;;  %v3162_v34 = vadd.f32 %v3146_v30, %v3130_v6  ;;  %v9872_v6 = vld [vmem:[#allocation25_spill] sm:$0xff] }
 0x346   :  { %v3166_v39 = vadd.f32 %v3150_v13, %v3134_v37  ;;  %v3007_v25 = vrot.slane %v3006_v56, 2  ;;  %v3038_v46 = vadd.f32 %v8308_v5, %v3037_v45  ;;  %v3070_v50 = vadd.f32 %v8318_v29, %v3069_v14 }
 0x347   :  { %v3251_v18 = vadd.f32 %v3250_v57, %v3245_v28  ;;  %v3101_v20 = vrot.slane %v8333_v21, 4  ;;  %v2859_v55 = vadd.f32 %v8278_v58, %v8269_v36  ;;  %v2868_v42 = vmul.f32 %v8246_v62, %v9871_v27  ;;  %v9874_v36 = vld [vmem:[#allocation31_spill] sm:$0xff]  ;;  %v9876_v57 = vld [vmem:[#allocation44_spill] sm:$0xff]  ;;  %v9880_v27 = vld [vmem:[#allocation9_spill] sm:$0xff] }
 0x348   :  { %v5414_v7 = vpop.eup %5413  ;;  %v3008_v48 = vadd.f32 %v3007_v25, %v3006_v56  ;;  %v3039_v15 = vrot.slane %v3038_v46, 2  ;;  %v3071_v19 = vrot.slane %v3070_v50, 2  ;;  %v2872_v37 = vmul.f32 %v8250_v41, %v9872_v6 }
 0x349   :  { %v8361_v11 = vadd.f32 0.0001, %v3251_v18  ;;  %v8364_v12 = vmul.f32 %v5414_v7, %v8233_v4  ;;  %v2860_v28 = vadd.f32 %v2859_v55, %v8273_v60  ;;  %v2876_v58 = vmul.f32 %v8254_v26, %v9874_v36  ;;  %v9877_v55 = vld [vmem:[#allocation43_spill] sm:$0xff] }
 0x34a   :  { %v3009_v8 = vrot.slane %v3008_v48, 1  ;;  %v3040_v30 = vadd.f32 %v3039_v15, %v3038_v46  ;;  %v3072_v56 = vadd.f32 %v3071_v19, %v3070_v50  ;;  %v3102_v45 = vadd.f32 %v8333_v21, %v3101_v20  ;;  %v9875_v50 = vld [vmem:[#allocation15_spill] sm:$0xff]  ;;  %v9878_v15 = vld [vmem:[#allocation48_spill] sm:$0xff] }
 0x34b   :  { %9873 = vst [vmem:[#allocation64_spill] sm:$0xff] %v8364_v12  ;;  %v5416_v13 = vpop.eup %5415  ;;  %5417 = vrsqrt.f32 %v8361_v11  ;;  %v3270_v25 = vand.u32 2147483648, %v8361_v11  ;;  %v8373_v18 = vmul.f32 %v8361_v11, %v3217_v59  ;;  %v8376_v7 = vmul.f32 %v8361_v11, %v3221_v22 }
 0x34c   :  { %v8379_v4 = vmul.f32 %v8361_v11, %v3225_v35  ;;  %v8382_v60 = vmul.f32 %v8361_v11, %v3229_v53  ;;  %v3309_v46 = vadd.f32 1.0, %v8361_v11  ;;  %v8386_v14 = vmul.f32 %v5416_v13, %v8239_v63  ;;  %v9879_v63 = vld [vmem:[#allocation39_spill] sm:$0xff] }
 0x34d   :  { %v3170_v20 = vmul.f32 %v8364_v12, %v9875_v50  ;;  %v3174_v59 = vmul.f32 %v8364_v12, %v9876_v57  ;;  %v3178_v22 = vmul.f32 %v8364_v12, %v9877_v55  ;;  %v3182_v35 = vmul.f32 %v8364_v12, %v9878_v15  ;;  %v9881_v55 = vld [vmem:[#allocation53_spill] sm:$0xff]  ;;  %v9882_v12 = vld [vmem:[#allocation55_spill] sm:$0xff] }
 0x34e   :  { %v3010_v19 = vadd.f32 %v3009_v8, %v3008_v48  ;;  %v3041_v53 = vrot.slane %v3040_v30, 1  ;;  %vm3267_vm12 = vcmp.eq.f32.partialorder %v8361_v11, inf  ;;  %v3202_v13 = vmul.f32 %v8386_v14, %v9879_v63 }
 0x34f   :  { %v3186_v36 = vadd.f32 %v3170_v20, %v3154_v23  ;;  %v3190_v6 = vadd.f32 %v3174_v59, %v3158_v17  ;;  %v3206_v50 = vmul.f32 %v8386_v14, %v9880_v27  ;;  %vm3269_vm0 = vcmp.eq.f32.partialorder %v8361_v11, 0.0 }
 0x350   :  { %v3194_v57 = vadd.f32 %v3178_v22, %v3162_v34  ;;  %v3198_v1 = vadd.f32 %v3182_v35, %v3166_v39  ;;  %v3210_v2 = vmul.f32 %v8386_v14, %v9881_v55  ;;  %v3214_v48 = vmul.f32 %v8386_v14, %v9882_v12 }
 0x351   :  { %v3218_v8 = vadd.f32 %v3202_v13, %v3186_v36  ;;  %v3222_v15 = vadd.f32 %v3206_v50, %v3190_v6  ;;  %5419 = vrcp.f32 %v3010_v19  ;;  %v3042_v23 = vadd.f32 %v3041_v53, %v3040_v30  ;;  %v9884_v50 = vld [vmem:[#allocation36_spill] sm:$0xff] }
 0x352   :  { %v3226_v17 = vadd.f32 %v3210_v2, %v3194_v57  ;;  %v3230_v20 = vadd.f32 %v3214_v48, %v3198_v1  ;;  %v3073_v59 = vrot.slane %v3072_v56, 1  ;;  %v3103_v63 = vrot.slane %v3102_v45, 2  ;;  %v9885_v57 = vld [vmem:[#allocation6_spill] sm:$0xff] }
 0x353   :  { %v3234_v52 = vmul.f32 %v3218_v8, %v3218_v8  ;;  %v3238_v27 = vmul.f32 %v3222_v15, %v3222_v15  ;;  %5421 = vrcp.f32 %v3042_v23  ;;  %v2864_v47 = vadd.f32 0.125, %v2860_v28  ;;  %v9889_v23 = vld [vmem:[#allocation52_spill] sm:$0xff] }
 0x354   :  { %v3242_v34 = vmul.f32 %v3226_v17, %v3226_v17  ;;  %v3246_v39 = vmul.f32 %v3230_v20, %v3230_v20  ;;  %v3074_v22 = vadd.f32 %v3073_v59, %v3072_v56  ;;  %v3104_v35 = vadd.f32 %v3103_v63, %v3102_v45  ;;  %v9886_v56 = vld [vmem:[#allocation14_spill] sm:$0xff] }
 0x355   :  { %v5418_v55 = vpop.eup %5417  ;;  %v3252_v24 = vadd.f32 %v3238_v27, %v3234_v52  ;;  %v2880_v36 = vmul.f32 %v8258_v49, %v9883_v44  ;;  %v2890_v6 = vadd.f32 %v2872_v37, %v2868_v42  ;;  %v2900_v2 = vmul.f32 %v8246_v62, %v9884_v50  ;;  %v9887_v52 = vld [vmem:[#allocation45_spill] sm:$0xff]  ;;  %v9906_v44 = vld [vmem:[#allocation47_spill] sm:$0xff] }
 0x356   :  { %v3266_v1 = vmul.f32 %v5418_v55, %v8361_v11  ;;  %5423 = vrcp.f32 %v3074_v22  ;;  %v3105_v30 = vrot.slane %v3104_v35, 1  ;;  %v2904_v28 = vmul.f32 %v8250_v41, %v9885_v57  ;;  %v9888_v55 = vld [vmem:[#allocation42_spill] sm:$0xff]  ;;  %v9905_v57 = vld [vmem:[#allocation13_spill] sm:$0xff] }
 0x357   :  { %v3253_v19 = vadd.f32 %v3252_v24, %v3242_v34  ;;  %v2891_v53 = vadd.f32 %v2890_v6, %v2876_v58  ;;  %v2908_v45 = vmul.f32 %v8254_v26, %v9886_v56  ;;  %v2912_v27 = vmul.f32 %v8258_v49, %v9887_v52  ;;  %v9890_v6 = vld [vmem:[#allocation54_spill] sm:$0xff] }
 0x358   :  { %v3268_v42 = vsel %vm3267_vm12, %v8361_v11, %v3266_v1  ;;  %v3106_v37 = vadd.f32 %v3105_v30, %v3104_v35  ;;  %v2922_v63 = vadd.f32 %v2904_v28, %v2900_v2  ;;  %v2932_v13 = vmul.f32 %v8246_v62, %v9888_v55  ;;  %v9891_v2 = vld [vmem:[#allocation57_spill] sm:$0xff]  ;;  %v9904_v55 = vld [vmem:[#allocation30_spill] sm:$0xff] }
 0x359   :  { %v3271_v48 = vsel %vm3269_vm0, %v3270_v25, %v3268_v42  ;;  %v3254_v24 = vadd.f32 %v3253_v19, %v3246_v39  ;;  %v2892_v58 = vadd.f32 %v2891_v53, %v2880_v36  ;;  %v2936_v59 = vmul.f32 %v8250_v41, %v9889_v23 }
 0x35a   :  { %v3313_v34 = vmul.f32 %v3309_v46, %v3271_v48  ;;  %5425 = vrcp.f32 %v3106_v37  ;;  %v2923_v22 = vadd.f32 %v2922_v63, %v2908_v45  ;;  %v2940_v52 = vmul.f32 %v8254_v26, %v9890_v6  ;;  %v9894_v45 = vld [vmem:[#allocation19_spill] sm:$0xff] }
 0x35b   :  { %v5420_v1 = vpop.eup %5419  ;;  %v8428_v35 = vadd.f32 0.0001, %v3254_v24  ;;  %v2944_v62 = vmul.f32 %v8258_v49, %v9891_v2  ;;  %v2954_v30 = vadd.f32 %v2936_v59, %v2932_v13  ;;  %v2896_v41 = vadd.f32 0.125, %v2892_v58  ;;  %v9900_v24 = vld [vmem:[#allocation26_spill] sm:$0xff]  ;;  %v9901_v59 = vld [vmem:[#allocation27_spill] sm:$0xff] }
 0x35c   :  { %v3317_v11 = vadd.f32 0.0001, %v3313_v34  ;;  %v8433_v25 = vmul.f32 %v5420_v1, %v8298_v3  ;;  %v2924_v39 = vadd.f32 %v2923_v22, %v2912_v27  ;;  %v2967_v46 = vmul.f32 1.442695, %v2864_v47  ;;  %v9902_v22 = vld [vmem:[#allocation29_spill] sm:$0xff] }
 0x35d   :  { %v5422_v36 = vpop.eup %5421  ;;  %5427 = vrsqrt.f32 %v8428_v35  ;;  %v8437_v26 = vmul.f32 %v8428_v35, %v3218_v8  ;;  %v8440_v28 = vmul.f32 %v8428_v35, %v3222_v15  ;;  %v8443_v49 = vmul.f32 %v8428_v35, %v3226_v17  ;;  %v9895_v8 = vld [vmem:[#allocation22_spill] sm:$0xff]  ;;  %v9896_v15 = vld [vmem:[#allocation28_spill] sm:$0xff]  ;;  %v9897_v17 = vld [vmem:[#allocation49_spill] sm:$0xff] }
 0x35e   :  { %9892 = vst [vmem:[#allocation55_spill] sm:$0xff] %v8433_v25  ;;  %5429 = vrcp.f32 %v3317_v11  ;;  %v8447_v3 = vmul.f32 %v8428_v35, %v3230_v20  ;;  %v8450_v53 = vmul.f32 %v5422_v36, %v8308_v5  ;;  %v3123_v47 = vmul.f32 %v8433_v25, %v9894_v45  ;;  %v9899_v5 = vld [vmem:[#allocation40_spill] sm:$0xff] }
 0x35f   :  { %v3127_v42 = vmul.f32 %v8433_v25, %v9895_v8  ;;  %v3131_v37 = vmul.f32 %v8433_v25, %v9896_v15  ;;  %v3135_v63 = vmul.f32 %v8433_v25, %v9897_v17  ;;  %v2928_v13 = vadd.f32 0.125, %v2924_v39  ;;  %v9936_v15 = vld [vmem:[#allocation43_spill] sm:$0xff] }
 0x360   :  { %9893 = vst [vmem:[#allocation65_spill] sm:$0xff] %v8450_v53  ;;  %v5424_v27 = vpop.eup %5423  ;;  %vm3274_vm1 = vcmp.eq.f32.partialorder %v8428_v35, inf  ;;  %v3139_v48 = vmul.f32 %v8450_v53, %v9899_v5  ;;  %v3143_v58 = vmul.f32 %v8450_v53, %v9900_v24  ;;  %v3147_v34 = vmul.f32 %v8450_v53, %v9901_v59 }
 0x361   :  { %v8462_v20 = vmul.f32 %v5424_v27, %v8318_v29  ;;  %v3151_v1 = vmul.f32 %v8450_v53, %v9902_v22  ;;  %v2955_v11 = vadd.f32 %v2954_v30, %v2940_v52  ;;  %5431 = vpow2.f32 %v2967_v46  ;;  %v9903_v29 = vld [vmem:[#allocation35_spill] sm:$0xff] }
 0x362   :  { %v2975_v39 = vmul.f32 1.442695, %v2896_v41  ;;  %v3155_v36 = vadd.f32 %v3139_v48, %v3123_v47  ;;  %v3159_v19 = vadd.f32 %v3143_v58, %v3127_v42  ;;  %v3163_v2 = vadd.f32 %v3147_v34, %v3131_v37 }
 0x363   :  { %9898 = vst [vmem:[#allocation66_spill] sm:$0xff] %v8462_v20  ;;  %v3171_v27 = vmul.f32 %v8462_v20, %v9903_v29  ;;  %v3167_v23 = vadd.f32 %v3151_v1, %v3135_v63  ;;  %v3175_v56 = vmul.f32 %v8462_v20, %v9904_v55  ;;  %v3179_v50 = vmul.f32 %v8462_v20, %v9905_v57  ;;  %v9915_v55 = vld [vmem:[#allocation10_spill] sm:$0xff] }
 0x364   :  { %v5426_v6 = vpop.eup %5425  ;;  %v3183_v53 = vmul.f32 %v8462_v20, %v9906_v44  ;;  %v2956_v41 = vadd.f32 %v2955_v11, %v2944_v62  ;;  %5433 = vpow2.f32 %v2975_v39  ;;  %v2983_v37 = vmul.f32 1.442695, %v2928_v13  ;;  %v9912_v20 = vld [vmem:[#allocation3_spill] sm:$0xff] }
 0x365   :  { %v8481_v52 = vmul.f32 %v5426_v6, %v8333_v21  ;;  %v3187_v30 = vadd.f32 %v3171_v27, %v3155_v36  ;;  %v3191_v46 = vadd.f32 %v3175_v56, %v3159_v19  ;;  %v3195_v47 = vadd.f32 %v3179_v50, %v3163_v2 }
 0x366   :  { %v3199_v42 = vadd.f32 %v3183_v53, %v3167_v23  ;;  %vm3276_vm10 = vcmp.eq.f32.partialorder %v8428_v35, 0.0  ;;  %v3310_v56 = vadd.f32 1.0, %v8428_v35  ;;  %v2960_v23 = vadd.f32 0.125, %v2956_v41 }
 0x367   :  { %9907 = vst [vmem:[#allocation67_spill] sm:$0xff] %v8481_v52  ;;  %v5428_v63 = vpop.eup %5427  ;;  %v3203_v48 = vmul.f32 %v8481_v52, %v9854_v31  ;;  %v3207_v58 = vmul.f32 %v8481_v52, %v9855_v40  ;;  %v3211_v21 = vmul.f32 %v8481_v52, %v9856_v32  ;;  %v3215_v6 = vmul.f32 %v8481_v52, %v9857_v9  ;;  %v9913_v32 = vld [vmem:[#allocation8_spill] sm:$0xff] }
 0x368   :  { %v5430_v62 = vpop.eup %5429  ;;  %v3273_v50 = vmul.f32 %v5428_v63, %v8428_v35  ;;  %5435 = vpow2.f32 %v2983_v37  ;;  %v9909_v63 = vld [vmem:[#allocation7_spill] sm:$0xff]  ;;  %v9917_v59 = vand.u32 2147483648, %v8428_v35 }
 0x369   :  { %v3325_v2 = vmul.f32 %v5430_v62, %v8373_v18  ;;  %v3329_v19 = vmul.f32 %v5430_v62, %v8376_v7  ;;  %v3333_v53 = vmul.f32 %v5430_v62, %v8379_v4  ;;  %v3337_v13 = vmul.f32 %v5430_v62, %v8382_v60 }
 0x36a   :  { %v3275_v34 = vsel %vm3274_vm1, %v8428_v35, %v3273_v50  ;;  %v8501_v1 = vadd.f32 %v3203_v48, %v3187_v30  ;;  %v8503_v11 = vadd.f32 %v3207_v58, %v3191_v46  ;;  %v8505_v39 = vadd.f32 %v3211_v21, %v3195_v47  ;;  %v9910_v58 = vld [vmem:[#allocation4_spill] sm:$0xff]  ;;  %v9911_v50 = vld [vmem:[#allocation46_spill] sm:$0xff] }
 0x36b   :  { %v3341_v36 = vmul.f32 %v3325_v2, %v7866_v38  ;;  %v3345_v18 = vmul.f32 %v3329_v19, %v7874_v54  ;;  %v3349_v7 = vmul.f32 %v3333_v53, %v7882_v33  ;;  %v3353_v4 = vmul.f32 %v3337_v13, %v7890_v0  ;;  %v8511_v27 = vpop.eup %5431 }
 0x36c   :  { %9908 = vst [vmem:[#allocation68_spill] sm:$0xff] %v8511_v27  ;;  %v3373_v60 = vmul.f32 %v3325_v2, %v7894_v43  ;;  %v3377_v41 = vmul.f32 %v3329_v19, %v7910_v61  ;;  %v3381_v30 = vmul.f32 %v3333_v53, %v7926_v51  ;;  %v3385_v46 = vmul.f32 %v3337_v13, %v7942_v16 }
 0x36d   :  { %v3357_v47 = vadd.f32 %v3345_v18, %v3341_v36  ;;  %v3405_v37 = vmul.f32 %v3325_v2, %v7964_v10  ;;  %v3409_v48 = vmul.f32 %v3329_v19, %v9909_v63  ;;  %v3413_v21 = vmul.f32 %v3333_v53, %v9910_v58  ;;  %v9916_v36 = vld [vmem:[#allocation5_spill] sm:$0xff] }
 0x36e   :  { %v3389_v62 = vadd.f32 %v3377_v41, %v3373_v60  ;;  %v3417_v52 = vmul.f32 %v3337_v13, %v9911_v50  ;;  %v3437_v9 = vmul.f32 %v3325_v2, %v9912_v20  ;;  %v3441_v40 = vmul.f32 %v3329_v19, %v9913_v32  ;;  %v8523_v31 = vpop.eup %5433 }
 0x36f   :  { %9914 = vst [vmem:[#allocation7_spill] sm:$0xff] %v8523_v31  ;;  %v3358_v44 = vadd.f32 %v3357_v47, %v3349_v7  ;;  %v3421_v57 = vadd.f32 %v3409_v48, %v3405_v37  ;;  %v3445_v25 = vmul.f32 %v3333_v53, %v9915_v55  ;;  %v3449_v18 = vmul.f32 %v3337_v13, %v9916_v36 }
 0x370   :  { %v3390_v29 = vadd.f32 %v3389_v62, %v3381_v30  ;;  %v3453_v22 = vadd.f32 %v3441_v40, %v3437_v9  ;;  %v3278_v60 = vsel %vm3276_vm10, %v9917_v59, %v3275_v34  ;;  %v3231_v41 = vadd.f32 %v3215_v6, %v3199_v42  ;;  %v9919_v9 = vld [vmem:[#allocation58_spill] sm:$0xff]  ;;  %v9921_v30 = vld [vmem:[#allocation60_spill] sm:$0xff] }
 0x371   :  { %v3359_v24 = vadd.f32 %v3358_v44, %v3353_v4  ;;  %v3422_v2 = vadd.f32 %v3421_v57, %v3413_v21  ;;  %v3314_v5 = vmul.f32 %v3310_v56, %v3278_v60  ;;  %v3235_v19 = vmul.f32 %v8501_v1, %v8501_v1  ;;  %v9920_v57 = vld [vmem:[#allocation59_spill] sm:$0xff] }
 0x372   :  { %v8533_v7 = vpop.eup %5435  ;;  %v3391_v47 = vadd.f32 %v3390_v29, %v3385_v46  ;;  %v3454_v53 = vadd.f32 %v3453_v22, %v3445_v25  ;;  %v3239_v13 = vmul.f32 %v8503_v11, %v8503_v11  ;;  %v3243_v40 = vmul.f32 %v8505_v39, %v8505_v39  ;;  %v9922_v22 = vld [vmem:[#allocation61_spill] sm:$0xff] }
 0x373   :  { %9918 = vst [vmem:[#allocation4_spill] sm:$0xff] %v8533_v7  ;;  %v3369_v35 = vadd.f32 %v3359_v24, %v9919_v9  ;;  %v3423_v59 = vadd.f32 %v3422_v2, %v3417_v52  ;;  %v3318_v42 = vadd.f32 0.0001, %v3314_v5  ;;  %v3247_v44 = vmul.f32 %v3231_v41, %v3231_v41 }
 0x374   :  { %v3401_v6 = vadd.f32 %v3391_v47, %v9920_v57  ;;  %v3455_v56 = vadd.f32 %v3454_v53, %v3449_v18  ;;  %v3255_v34 = vadd.f32 %v3239_v13, %v3235_v19  ;;  %v2991_v4 = vmul.f32 1.442695, %v2960_v23 }
 0x375   :  { %v3433_v37 = vadd.f32 %v3423_v59, %v9921_v30  ;;  %v3469_v29 = vmul.f32 1.442695, %v3369_v35  ;;  %5437 = vrcp.f32 %v3318_v42  ;;  %v3011_v25 = vrot.slane %v8511_v27, 4 }
 0x376   :  { %v3465_v46 = vadd.f32 %v3455_v56, %v9922_v22  ;;  %v3477_v48 = vmul.f32 1.442695, %v3401_v6  ;;  %v3256_v21 = vadd.f32 %v3255_v34, %v3243_v40  ;;  %5439 = vpow2.f32 %v2991_v4  ;;  %v9926_v22 = vld [vmem:[#allocation17_spill] sm:$0xff]  ;;  %v9933_v4 = vld [vmem:[#allocation32_spill] sm:$0xff] }
 0x377   :  { %5441 = vpow2.f32 %v3469_v29  ;;  %v3485_v24 = vmul.f32 1.442695, %v3433_v37  ;;  %v3012_v5 = vadd.f32 %v8511_v27, %v3011_v25  ;;  %v3043_v52 = vrot.slane %v8523_v31, 4 }
 0x378   :  { %5443 = vpow2.f32 %v3477_v48  ;;  %v3493_v62 = vmul.f32 1.442695, %v3465_v46  ;;  %v3257_v23 = vadd.f32 %v3256_v21, %v3247_v44  ;;  %v3075_v18 = vrot.slane %v8533_v7, 4  ;;  %v9927_v46 = vld [vmem:[#allocation16_spill] sm:$0xff]  ;;  %v9928_v48 = vld [vmem:[#allocation23_spill] sm:$0xff] }
 0x379   :  { %5445 = vpow2.f32 %v3485_v24  ;;  %v3013_v60 = vrot.slane %v3012_v5, 2  ;;  %v3044_v2 = vadd.f32 %v8523_v31, %v3043_v52 }
 0x37a   :  { %5447 = vpow2.f32 %v3493_v62  ;;  %v8548_v19 = vadd.f32 0.0001, %v3257_v23  ;;  %v3076_v47 = vadd.f32 %v8533_v7, %v3075_v18  ;;  %v9930_v62 = vld [vmem:[#allocation18_spill] sm:$0xff]  ;;  %v9931_v18 = vld [vmem:[#allocation12_spill] sm:$0xff] }
 0x37b   :  { %v3045_v53 = vrot.slane %v3044_v2, 2  ;;  %v8551_v13 = vadd.f32 %v3013_v60, %v3012_v5  ;;  %v9929_v5 = vld [vmem:[#allocation37_spill] sm:$0xff] }
 0x37c   :  { %v8555_v40 = vmul.f32 %v8548_v19, %v8501_v1  ;;  %v8559_v9 = vmul.f32 %v8548_v19, %v8503_v11  ;;  %v8563_v35 = vmul.f32 %v8548_v19, %v8505_v39  ;;  %v8566_v59 = vmul.f32 %v8548_v19, %v3231_v41 }
 0x37d   :  { %v8568_v42 = vadd.f32 %v3045_v53, %v3044_v2  ;;  %v3077_v44 = vrot.slane %v3076_v47, 2  ;;  %5449 = vrsqrt.f32 %v8548_v19  ;;  %vm3281_vm4 = vcmp.eq.f32.partialorder %v8548_v19, inf }
 0x37e   :  { %9923 = vst [vmem:[#allocation46_spill] sm:$0xff] %v8559_v9  ;;  %9924 = vst [vmem:[#allocation3_spill] sm:$0xff] %v8563_v35  ;;  %vm3283_vm2 = vcmp.eq.f32.partialorder %v8548_v19, 0.0  ;;  %v9942_v9 = vld [vmem:[#allocation53_spill] sm:$0xff] }
 0x37f   :  { %9925 = vst [vmem:[#allocation8_spill] sm:$0xff] %v8566_v59  ;;  %v5438_v57 = vpop.eup %5437  ;;  %v8582_v37 = vadd.f32 %v3077_v44, %v3076_v47  ;;  %v9937_v59 = vld [vmem:[#allocation48_spill] sm:$0xff] }
 0x380   :  { %v8572_v6 = vpop.eup %5439  ;;  %v3326_v11 = vmul.f32 %v5438_v57, %v8437_v26  ;;  %v3330_v56 = vmul.f32 %v5438_v57, %v8440_v28  ;;  %v3334_v39 = vmul.f32 %v5438_v57, %v8443_v49  ;;  %v3338_v34 = vmul.f32 %v5438_v57, %v8447_v3  ;;  %v9932_v57 = vld [vmem:[#allocation24_spill] sm:$0xff] }
 0x381   :  { %v8578_v41 = vpop.eup %5441 }
 0x382   :  { %v8585_v25 = vpop.eup %5443  ;;  %v3501_v26 = vrot.slane %v8578_v41, 4  ;;  %v3342_v28 = vmul.f32 %v3326_v11, %v9926_v22  ;;  %v3346_v49 = vmul.f32 %v3330_v56, %v9927_v46  ;;  %v3350_v3 = vmul.f32 %v3334_v39, %v9928_v48  ;;  %v9934_v22 = vld [vmem:[#allocation15_spill] sm:$0xff] }
 0x383   :  { %v8591_v21 = vpop.eup %5445  ;;  %v3533_v24 = vrot.slane %v8585_v25, 4  ;;  %v3354_v52 = vmul.f32 %v3338_v34, %v9929_v5  ;;  %v3374_v23 = vmul.f32 %v3326_v11, %v9930_v62  ;;  %v3378_v60 = vmul.f32 %v3330_v56, %v9931_v18 }
 0x384   :  { %v8597_v2 = vpop.eup %5447  ;;  %v3502_v47 = vadd.f32 %v8578_v41, %v3501_v26  ;;  %v3565_v53 = vrot.slane %v8591_v21, 4  ;;  %v3360_v44 = vadd.f32 %v3346_v49, %v3342_v28  ;;  %v3382_v30 = vmul.f32 %v3334_v39, %v9932_v57  ;;  %v9935_v28 = vld [vmem:[#allocation44_spill] sm:$0xff] }
 0x385   :  { %v3534_v1 = vadd.f32 %v8585_v25, %v3533_v24  ;;  %v3597_v29 = vrot.slane %v8597_v2, 4  ;;  %v3386_v48 = vmul.f32 %v3338_v34, %v9933_v4  ;;  %v3392_v5 = vadd.f32 %v3378_v60, %v3374_v23 }
 0x386   :  { %v3503_v46 = vrot.slane %v3502_v47, 2  ;;  %v3566_v62 = vadd.f32 %v8591_v21, %v3565_v53  ;;  %v3361_v18 = vadd.f32 %v3360_v44, %v3350_v3  ;;  %v3406_v7 = vmul.f32 %v3326_v11, %v9934_v22  ;;  %v9938_v22 = vld [vmem:[#allocation62_spill] sm:$0xff] }
 0x387   :  { %v3535_v31 = vrot.slane %v3534_v1, 2  ;;  %v3598_v26 = vadd.f32 %v8597_v2, %v3597_v29  ;;  %v3393_v27 = vadd.f32 %v3392_v5, %v3382_v30  ;;  %v3410_v49 = vmul.f32 %v3330_v56, %v9935_v28  ;;  %v5450_v45 = vpop.eup %5449 }
 0x388   :  { %v3504_v57 = vadd.f32 %v3503_v46, %v3502_v47  ;;  %v3567_v17 = vrot.slane %v3566_v62, 2  ;;  %v3362_v24 = vadd.f32 %v3361_v18, %v3354_v52  ;;  %v3414_v8 = vmul.f32 %v3334_v39, %v9936_v15  ;;  %v9939_v52 = vld [vmem:[#allocation63_spill] sm:$0xff] }
 0x389   :  { %v3536_v4 = vadd.f32 %v3535_v31, %v3534_v1  ;;  %v3599_v23 = vrot.slane %v3598_v26, 2  ;;  %v3394_v60 = vadd.f32 %v3393_v27, %v3386_v48  ;;  %v3418_v53 = vmul.f32 %v3338_v34, %v9937_v59  ;;  %v9940_v47 = vld [vmem:[#allocation39_spill] sm:$0xff]  ;;  %v9941_v48 = vld [vmem:[#allocation9_spill] sm:$0xff] }
 0x38a   :  { %v3505_v3 = vrot.slane %v3504_v57, 1  ;;  %v3568_v44 = vadd.f32 %v3567_v17, %v3566_v62  ;;  %v3370_v29 = vadd.f32 %v3362_v24, %v9938_v22  ;;  %v3424_v30 = vadd.f32 %v3410_v49, %v3406_v7 }
 0x38b   :  { %v3537_v46 = vrot.slane %v3536_v4, 1  ;;  %v3600_v5 = vadd.f32 %v3599_v23, %v3598_v26  ;;  %v3402_v18 = vadd.f32 %v3394_v60, %v9939_v52  ;;  %v3438_v15 = vmul.f32 %v3326_v11, %v9940_v47  ;;  %v9943_v11 = vld [vmem:[#allocation64_spill] sm:$0xff] }
 0x38c   :  { %v3506_v31 = vadd.f32 %v3505_v3, %v3504_v57  ;;  %v3569_v1 = vrot.slane %v3568_v44, 1  ;;  %v3425_v27 = vadd.f32 %v3424_v30, %v3414_v8  ;;  %v3442_v59 = vmul.f32 %v3330_v56, %v9941_v48 }
 0x38d   :  { %v3538_v28 = vadd.f32 %v3537_v46, %v3536_v4  ;;  %v3601_v35 = vrot.slane %v3600_v5, 1  ;;  %v3446_v17 = vmul.f32 %v3334_v39, %v9942_v9  ;;  %v3450_v22 = vmul.f32 %v3338_v34, %v9882_v12 }
 0x38e   :  { %5451 = vrcp.f32 %v3506_v31  ;;  %v3570_v7 = vadd.f32 %v3569_v1, %v3568_v44  ;;  %v3426_v62 = vadd.f32 %v3425_v27, %v3418_v53  ;;  %v3456_v49 = vadd.f32 %v3442_v59, %v3438_v15 }
 0x38f   :  { %5453 = vrcp.f32 %v3538_v28  ;;  %v3602_v26 = vadd.f32 %v3601_v35, %v3600_v5  ;;  %v3471_v24 = vmul.f32 1.442695, %v3370_v29  ;;  %v3479_v23 = vmul.f32 1.442695, %v3402_v18 }
 0x390   :  { %5455 = vrcp.f32 %v3570_v7  ;;  %v3434_v57 = vadd.f32 %v3426_v62, %v9943_v11  ;;  %v3457_v8 = vadd.f32 %v3456_v49, %v3446_v17  ;;  %v3280_v56 = vmul.f32 %v5450_v45, %v8548_v19 }
 0x391   :  { %5457 = vrcp.f32 %v3602_v26  ;;  %v3311_v4 = vadd.f32 1.0, %v8548_v19  ;;  %v9944_v39 = vrot.slane %v8551_v13, 1  ;;  %v3079_v60 = vrot.slane %v8582_v37, 1 }
 0x392   :  { %v3458_v15 = vadd.f32 %v3457_v8, %v3450_v22  ;;  %v3487_v59 = vmul.f32 1.442695, %v3434_v57  ;;  %v3282_v35 = vsel %vm3281_vm4, %v8548_v19, %v3280_v56  ;;  %v9945_v28 = vrot.slane %v8572_v6, 4 }
 0x393   :  { %v3016_v34 = vadd.f32 %v9944_v39, %v8551_v13  ;;  %5459 = vpow2.f32 %v3471_v24  ;;  %v9946_v45 = vand.u32 2147483648, %v8548_v19  ;;  %v9947_v13 = vrot.slane %v8568_v42, 1 }
 0x394   :  { %v3108_v53 = vadd.f32 %v8572_v6, %v9945_v28  ;;  %v3466_v29 = vadd.f32 %v3458_v15, %v8386_v14  ;;  %5461 = vpow2.f32 %v3479_v23  ;;  %v3080_v46 = vadd.f32 %v3079_v60, %v8582_v37 }
 0x395   :  { %v3285_v3 = vsel %vm3283_vm2, %v9946_v45, %v3282_v35  ;;  %v3048_v44 = vadd.f32 %v9947_v13, %v8568_v42  ;;  %5463 = vpow2.f32 %v3487_v59 }
 0x396   :  { %v3315_v30 = vmul.f32 %v3311_v4, %v3285_v3  ;;  %v3495_v5 = vmul.f32 1.442695, %v3466_v29  ;;  %5465 = vrcp.f32 %v3016_v34  ;;  %v3109_v18 = vrot.slane %v3108_v53, 2 }
 0x397   :  { %5467 = vrcp.f32 %v3048_v44 }
 0x398   :  { %v3319_v52 = vadd.f32 0.0001, %v3315_v30  ;;  %v5452_v31 = vpop.eup %5451  ;;  %5469 = vpow2.f32 %v3495_v5  ;;  %v8643_v14 = vadd.f32 %v3109_v18, %v3108_v53 }
 0x399   :  { %v5454_v19 = vpop.eup %5453  ;;  %v3529_v1 = vmul.f32 %v5452_v31, %v8578_v41 }
 0x39a   :  { %5471 = vrcp.f32 %v3319_v52  ;;  %v5456_v27 = vpop.eup %5455  ;;  %v3561_v42 = vmul.f32 %v5454_v19, %v8585_v25  ;;  %v3111_v28 = vrot.slane %v8643_v14, 1 }
 0x39b   :  { %5473 = vrcp.f32 %v3080_v46  ;;  %v5458_v17 = vpop.eup %5457  ;;  %v3593_v37 = vmul.f32 %v5456_v27, %v8591_v21  ;;  %v3629_v22 = vmul.f32 %v3529_v1, %v7866_v38  ;;  %v3633_v7 = vmul.f32 %v3529_v1, %v7874_v54 }
 0x39c   :  { %v3637_v62 = vmul.f32 %v3529_v1, %v7882_v33  ;;  %v3625_v49 = vmul.f32 %v5458_v17, %v8597_v2  ;;  %v3641_v41 = vmul.f32 %v3529_v1, %v7890_v0  ;;  %v3645_v26 = vmul.f32 %v3561_v42, %v7894_v43 }
 0x39d   :  { %v3649_v25 = vmul.f32 %v3561_v42, %v7910_v61  ;;  %v8653_v24 = vpop.eup %5459  ;;  %v3653_v23 = vmul.f32 %v3561_v42, %v7926_v51  ;;  %v3657_v21 = vmul.f32 %v3561_v42, %v7942_v16  ;;  %v3677_v38 = vmul.f32 %v3593_v37, %v7964_v10 }
 0x39e   :  { %v3681_v54 = vmul.f32 %v3593_v37, %v9909_v63  ;;  %v8659_v11 = vpop.eup %5461  ;;  %v3661_v33 = vadd.f32 %v3645_v26, %v3629_v22  ;;  %v3685_v0 = vmul.f32 %v3593_v37, %v9910_v58  ;;  %v3689_v43 = vmul.f32 %v3593_v37, %v9911_v50  ;;  %v9948_v22 = vld [vmem:[#allocation46_spill] sm:$0xff] }
 0x39f   :  { %v3665_v2 = vadd.f32 %v3649_v25, %v3633_v7  ;;  %v8663_v57 = vpop.eup %5463  ;;  %v3669_v61 = vadd.f32 %v3653_v23, %v3637_v62  ;;  %v3673_v8 = vadd.f32 %v3657_v21, %v3641_v41  ;;  %v3709_v51 = vmul.f32 %v3625_v49, %v9912_v20  ;;  %v9949_v62 = vld [vmem:[#allocation3_spill] sm:$0xff]  ;;  %v9950_v23 = vld [vmem:[#allocation8_spill] sm:$0xff] }
 0x3a0   :  { %v3713_v16 = vmul.f32 %v3625_v49, %v9913_v32  ;;  %v8667_v56 = vpop.eup %5465  ;;  %v3693_v10 = vadd.f32 %v3677_v38, %v3661_v33  ;;  %v3717_v4 = vmul.f32 %v3625_v49, %v9915_v55  ;;  %v3721_v39 = vmul.f32 %v3625_v49, %v9916_v36  ;;  %v9951_v33 = vld [vmem:[#allocation19_spill] sm:$0xff] }
 0x3a1   :  { %v3697_v63 = vadd.f32 %v3681_v54, %v3665_v2  ;;  %v8671_v34 = vpop.eup %5467  ;;  %v3701_v58 = vadd.f32 %v3685_v0, %v3669_v61  ;;  %v3705_v50 = vadd.f32 %v3689_v43, %v3673_v8  ;;  %v3507_v60 = vrot.slane %v8653_v24, 4  ;;  %v9952_v0 = vld [vmem:[#allocation22_spill] sm:$0xff] }
 0x3a2   :  { %v3539_v15 = vrot.slane %v8659_v11, 4  ;;  %v8675_v59 = vpop.eup %5469  ;;  %v3725_v20 = vadd.f32 %v3709_v51, %v3693_v10  ;;  %v3571_v35 = vrot.slane %v8663_v57, 4  ;;  %v9953_v51 = vld [vmem:[#allocation28_spill] sm:$0xff] }
 0x3a3   :  { %v3729_v32 = vadd.f32 %v3713_v16, %v3697_v63  ;;  %v3733_v55 = vadd.f32 %v3717_v4, %v3701_v58  ;;  %v3737_v45 = vadd.f32 %v3721_v39, %v3705_v50  ;;  %v3508_v36 = vadd.f32 %v8653_v24, %v3507_v60  ;;  %v9954_v4 = vld [vmem:[#allocation49_spill] sm:$0xff] }
 0x3a4   :  { %v5472_v53 = vpop.eup %5471  ;;  %v3540_v3 = vadd.f32 %v8659_v11, %v3539_v15  ;;  %v3741_v44 = vmul.f32 %v3725_v20, %v3725_v20  ;;  %v3572_v30 = vadd.f32 %v8663_v57, %v3571_v35  ;;  %v3603_v46 = vrot.slane %v8675_v59, 4  ;;  %v9955_v35 = vld [vmem:[#allocation40_spill] sm:$0xff] }
 0x3a5   :  { %v8681_v13 = vpop.eup %5473  ;;  %v3745_v29 = vmul.f32 %v3729_v32, %v3729_v32  ;;  %v3749_v5 = vmul.f32 %v3733_v55, %v3733_v55  ;;  %v3753_v52 = vmul.f32 %v3737_v45, %v3737_v45  ;;  %v3509_v18 = vrot.slane %v3508_v36, 2 }
 0x3a6   :  { %v3541_v31 = vrot.slane %v3540_v3, 2  ;;  %v3573_v1 = vrot.slane %v3572_v30, 2  ;;  %v3604_v27 = vadd.f32 %v8675_v59, %v3603_v46  ;;  %v3327_v42 = vmul.f32 %v5472_v53, %v8555_v40 }
 0x3a7   :  { %v3757_v19 = vadd.f32 %v3745_v29, %v3741_v44  ;;  %v3510_v17 = vadd.f32 %v3509_v18, %v3508_v36  ;;  %v3331_v7 = vmul.f32 %v5472_v53, %v9948_v22  ;;  %v3335_v49 = vmul.f32 %v5472_v53, %v9949_v62  ;;  %v9957_v29 = vld [vmem:[#allocation27_spill] sm:$0xff]  ;;  %v9960_v22 = vld [vmem:[#allocation29_spill] sm:$0xff] }
 0x3a8   :  { %v3542_v37 = vadd.f32 %v3541_v31, %v3540_v3  ;;  %v3574_v26 = vadd.f32 %v3573_v1, %v3572_v30  ;;  %v3605_v25 = vrot.slane %v3604_v27, 2  ;;  %v3339_v21 = vmul.f32 %v5472_v53, %v9950_v23  ;;  %v9956_v3 = vld [vmem:[#allocation26_spill] sm:$0xff] }
 0x3a9   :  { %v3758_v41 = vadd.f32 %v3757_v19, %v3749_v5  ;;  %v3511_v38 = vrot.slane %v3510_v17, 1  ;;  %v3343_v2 = vmul.f32 %v3327_v42, %v9951_v33  ;;  %v3347_v43 = vmul.f32 %v3331_v7, %v9952_v0  ;;  %v9958_v5 = vld [vmem:[#allocation68_spill] sm:$0xff] }
 0x3aa   :  { %v3543_v54 = vrot.slane %v3542_v37, 1  ;;  %v3575_v8 = vrot.slane %v3574_v26, 1  ;;  %v3606_v40 = vadd.f32 %v3605_v25, %v3604_v27  ;;  %v3351_v16 = vmul.f32 %v3335_v49, %v9953_v51 }
 0x3ab   :  { %v3759_v61 = vadd.f32 %v3758_v41, %v3753_v52  ;;  %v3512_v10 = vadd.f32 %v3511_v38, %v3510_v17  ;;  %v3355_v39 = vmul.f32 %v3339_v21, %v9954_v4  ;;  %v3363_v58 = vadd.f32 %v3347_v43, %v3343_v2  ;;  %v9963_v41 = vld [vmem:[#allocation30_spill] sm:$0xff]  ;;  %v9965_v38 = vld [vmem:[#allocation47_spill] sm:$0xff]  ;;  %v9966_v2 = vld [vmem:[#allocation41_spill] sm:$0xff] }
 0x3ac   :  { %v3544_v63 = vadd.f32 %v3543_v54, %v3542_v37  ;;  %v3576_v60 = vadd.f32 %v3575_v8, %v3574_v26  ;;  %v3607_v15 = vrot.slane %v3606_v40, 1  ;;  %v3375_v53 = vmul.f32 %v3327_v42, %v9955_v35 }
 0x3ad   :  { %v8694_v50 = vadd.f32 0.0001, %v3759_v61  ;;  %5475 = vrcp.f32 %v3512_v10  ;;  %v3364_v36 = vadd.f32 %v3363_v58, %v3351_v16  ;;  %v3379_v44 = vmul.f32 %v3331_v7, %v9956_v3  ;;  %v9967_v61 = vld [vmem:[#allocation50_spill] sm:$0xff]  ;;  %v9968_v16 = vld [vmem:[#allocation51_spill] sm:$0xff] }
 0x3ae   :  { %v3383_v30 = vmul.f32 %v3335_v49, %v9957_v29  ;;  %v8703_v52 = vmul.f32 %v8667_v56, %v9958_v5  ;;  %v3112_v18 = vadd.f32 %v3111_v28, %v8643_v14  ;;  %v3608_v37 = vadd.f32 %v3607_v15, %v3606_v40 }
 0x3af   :  { %5477 = vrsqrt.f32 %v8694_v50  ;;  %v8707_v31 = vmul.f32 %v8694_v50, %v3725_v20  ;;  %v8710_v19 = vmul.f32 %v8694_v50, %v3729_v32  ;;  %v8713_v1 = vmul.f32 %v8694_v50, %v3733_v55  ;;  %v9961_v20 = vld [vmem:[#allocation35_spill] sm:$0xff] }
 0x3b0   :  { %9959 = vst [vmem:[#allocation10_spill] sm:$0xff] %v8703_v52  ;;  %v8716_v27 = vmul.f32 %v8694_v50, %v3737_v45  ;;  %v3817_v17 = vadd.f32 1.0, %v8694_v50  ;;  %5479 = vrcp.f32 %v3544_v63  ;;  %v3365_v56 = vadd.f32 %v3364_v36, %v3355_v39  ;;  %v9962_v32 = vld [vmem:[#allocation55_spill] sm:$0xff]  ;;  %v9964_v45 = vld [vmem:[#allocation13_spill] sm:$0xff]  ;;  %v9969_v63 = vld [vmem:[#allocation56_spill] sm:$0xff] }
 0x3b1   :  { %5481 = vrcp.f32 %v3576_v60  ;;  %v3387_v14 = vmul.f32 %v3339_v21, %v9960_v22  ;;  %v3395_v28 = vadd.f32 %v3379_v44, %v3375_v53  ;;  %v3407_v62 = vmul.f32 %v3327_v42, %v9961_v20  ;;  %v9970_v53 = vld [vmem:[#allocation7_spill] sm:$0xff]  ;;  %v9972_v44 = vld [vmem:[#allocation4_spill] sm:$0xff] }
 0x3b2   :  { %vm3775_vm6 = vcmp.eq.f32.partialorder %v8694_v50, inf  ;;  %5483 = vrcp.f32 %v3608_v37  ;;  %v3371_v55 = vadd.f32 %v3365_v56, %v9962_v32  ;;  %v3411_v26 = vmul.f32 %v3331_v7, %v9963_v41  ;;  %v9976_v56 = vld [vmem:[#allocation65_spill] sm:$0xff] }
 0x3b3   :  { %v3415_v25 = vmul.f32 %v3335_v49, %v9964_v45  ;;  %vm3777_vm14 = vcmp.eq.f32.partialorder %v8694_v50, 0.0  ;;  %v3396_v23 = vadd.f32 %v3395_v28, %v3383_v30  ;;  %v3419_v54 = vmul.f32 %v3339_v21, %v9965_v38 }
 0x3b4   :  { %v3439_v43 = vmul.f32 %v3327_v42, %v9966_v2  ;;  %v3443_v8 = vmul.f32 %v3331_v7, %v9967_v61  ;;  %v3427_v40 = vadd.f32 %v3411_v26, %v3407_v62  ;;  %v3447_v10 = vmul.f32 %v3335_v49, %v9968_v16  ;;  %v9974_v42 = vld [vmem:[#allocation20_spill] sm:$0xff]  ;;  %v9975_v49 = vld [vmem:[#allocation21_spill] sm:$0xff]  ;;  %v9978_v26 = vld [vmem:[#allocation38_spill] sm:$0xff] }
 0x3b5   :  { %v3451_v39 = vmul.f32 %v3339_v21, %v9969_v63  ;;  %v3473_v58 = vmul.f32 1.442695, %v3371_v55  ;;  %v3397_v60 = vadd.f32 %v3396_v23, %v3387_v14  ;;  %v8733_v36 = vmul.f32 %v8671_v34, %v9970_v53  ;;  %v9977_v34 = vld [vmem:[#allocation34_spill] sm:$0xff]  ;;  %v9979_v23 = vld [vmem:[#allocation11_spill] sm:$0xff] }
 0x3b6   :  { %v3459_v15 = vadd.f32 %v3443_v8, %v3439_v43  ;;  %v8737_v30 = vmul.f32 %v8681_v13, %v9972_v44  ;;  %v3428_v5 = vadd.f32 %v3427_v40, %v3415_v25  ;;  %v8741_v7 = vmul.f32 %v8703_v52, %v9974_v42  ;;  %v9983_v44 = vld [vmem:[#allocation23_spill] sm:$0xff] }
 0x3b7   :  { %9971 = vst [vmem:[#allocation5_spill] sm:$0xff] %v8733_v36  ;;  %5485 = vpow2.f32 %v3473_v58  ;;  %v8745_v21 = vmul.f32 %v8703_v52, %v9975_v49  ;;  %v5476_v37 = vpop.eup %5475  ;;  %v3403_v14 = vadd.f32 %v3397_v60, %v9976_v56  ;;  %v8750_v62 = vmul.f32 %v8703_v52, %v9977_v34  ;;  %v9992_v34 = vld [vmem:[#allocation32_spill] sm:$0xff]  ;;  %v9993_v42 = vld [vmem:[#allocation15_spill] sm:$0xff] }
 0x3b8   :  { %9973 = vst [vmem:[#allocation58_spill] sm:$0xff] %v8737_v30  ;;  %v3460_v28 = vadd.f32 %v3459_v15, %v3447_v10  ;;  %5487 = vrcp.f32 %v3112_v18  ;;  %v3530_v32 = vmul.f32 %v5476_v37, %v8653_v24  ;;  %v3429_v55 = vadd.f32 %v3428_v5, %v3419_v54  ;;  %v9980_v10 = vld [vmem:[#allocation25_spill] sm:$0xff]  ;;  %v9982_v24 = vld [vmem:[#allocation16_spill] sm:$0xff]  ;;  %v9995_v63 = vld [vmem:[#allocation43_spill] sm:$0xff] }
 0x3b9   :  { %v5478_v13 = vpop.eup %5477  ;;  %v8755_v25 = vmul.f32 %v8703_v52, %v9978_v26  ;;  %v8759_v43 = vmul.f32 %v8733_v36, %v9979_v23  ;;  %v3481_v18 = vmul.f32 1.442695, %v3403_v14  ;;  %v3144_v58 = vmul.f32 %v8733_v36, %v9980_v10  ;;  %v9981_v15 = vld [vmem:[#allocation17_spill] sm:$0xff]  ;;  %v9985_v14 = vld [vmem:[#allocation66_spill] sm:$0xff] }
 0x3ba   :  { %v3774_v8 = vmul.f32 %v5478_v13, %v8694_v50  ;;  %v3461_v40 = vadd.f32 %v3460_v28, %v3451_v39  ;;  %v5480_v60 = vpop.eup %5479  ;;  %v3630_v53 = vmul.f32 %v3530_v32, %v9981_v15  ;;  %v3634_v54 = vmul.f32 %v3530_v32, %v9982_v24  ;;  %v9984_v37 = vld [vmem:[#allocation37_spill] sm:$0xff]  ;;  %v9986_v13 = vld [vmem:[#allocation67_spill] sm:$0xff] }
 0x3bb   :  { %v3638_v5 = vmul.f32 %v3530_v32, %v9983_v44  ;;  %v3642_v56 = vmul.f32 %v3530_v32, %v9984_v37  ;;  %v5482_v46 = vpop.eup %5481  ;;  %v3562_v39 = vmul.f32 %v5480_v60, %v8659_v11  ;;  %v3435_v28 = vadd.f32 %v3429_v55, %v9985_v14  ;;  %v9988_v32 = vld [vmem:[#allocation31_spill] sm:$0xff]  ;;  %v9989_v11 = vld [vmem:[#allocation18_spill] sm:$0xff]  ;;  %v9990_v55 = vld [vmem:[#allocation12_spill] sm:$0xff] }
 0x3bc   :  { %v3776_v52 = vsel %vm3775_vm6, %v8694_v50, %v3774_v8  ;;  %v3467_v10 = vadd.f32 %v3461_v40, %v9986_v13  ;;  %v5484_v23 = vpop.eup %5483  ;;  %v9987_v15 = vand.u32 2147483648, %v8694_v50  ;;  %v3594_v44 = vmul.f32 %v5482_v46, %v8663_v57  ;;  %v9991_v40 = vld [vmem:[#allocation24_spill] sm:$0xff] }
 0x3bd   :  { %5489 = vpow2.f32 %v3481_v18  ;;  %v3148_v37 = vmul.f32 %v8733_v36, %v9988_v32  ;;  %v3626_v8 = vmul.f32 %v5484_v23, %v8675_v59  ;;  %v3646_v60 = vmul.f32 %v3562_v39, %v9989_v11 }
 0x3be   :  { %v3779_v24 = vsel %vm3777_vm14, %v9987_v15, %v3776_v52  ;;  %v3650_v14 = vmul.f32 %v3562_v39, %v9990_v55  ;;  %v3654_v13 = vmul.f32 %v3562_v39, %v9991_v40  ;;  %v3658_v49 = vmul.f32 %v3562_v39, %v9992_v34  ;;  %v9994_v52 = vld [vmem:[#allocation44_spill] sm:$0xff] }
 0x3bf   :  { %v3821_v26 = vmul.f32 %v3817_v17, %v3779_v24  ;;  %v3678_v50 = vmul.f32 %v3594_v44, %v9993_v42  ;;  %v3682_v15 = vmul.f32 %v3594_v44, %v9994_v52  ;;  %v3662_v46 = vadd.f32 %v3646_v60, %v3630_v53  ;;  %v9996_v24 = vld [vmem:[#allocation48_spill] sm:$0xff] }
 0x3c0   :  { %v3666_v18 = vadd.f32 %v3650_v14, %v3634_v54  ;;  %v3686_v32 = vmul.f32 %v3594_v44, %v9995_v63  ;;  %v3670_v59 = vadd.f32 %v3654_v13, %v3638_v5  ;;  %v3674_v23 = vadd.f32 %v3658_v49, %v3642_v56 }
 0x3c1   :  { %v3825_v57 = vadd.f32 0.0001, %v3821_v26  ;;  %v8789_v17 = vpop.eup %5485  ;;  %v3690_v11 = vmul.f32 %v3594_v44, %v9996_v24  ;;  %v3710_v55 = vmul.f32 %v3626_v8, %v9940_v47  ;;  %v3694_v34 = vadd.f32 %v3678_v50, %v3662_v46 }
 0x3c2   :  { %v5488_v40 = vpop.eup %5487  ;;  %v3698_v39 = vadd.f32 %v3682_v15, %v3666_v18  ;;  %v3714_v42 = vmul.f32 %v3626_v8, %v9941_v48  ;;  %v3702_v52 = vadd.f32 %v3686_v32, %v3670_v59  ;;  %v3718_v53 = vmul.f32 %v3626_v8, %v9942_v9  ;;  %v9998_v48 = vld [vmem:[#allocation33_spill] sm:$0xff] }
 0x3c3   :  { %5491 = vrcp.f32 %v3825_v57  ;;  %v3706_v26 = vadd.f32 %v3690_v11, %v3674_v23  ;;  %v3722_v63 = vmul.f32 %v3626_v8, %v9882_v12  ;;  %v3726_v54 = vadd.f32 %v3710_v55, %v3694_v34  ;;  %v9999_v23 = vld [vmem:[#allocation36_spill] sm:$0xff] }
 0x3c4   :  { %v3730_v60 = vadd.f32 %v3714_v42, %v3698_v39  ;;  %v3489_v5 = vmul.f32 1.442695, %v3435_v28  ;;  %v3497_v49 = vmul.f32 1.442695, %v3467_v10  ;;  %v3734_v56 = vadd.f32 %v3718_v53, %v3702_v52  ;;  %v10001_v39 = vld [vmem:[#allocation14_spill] sm:$0xff] }
 0x3c5   :  { %v3738_v44 = vadd.f32 %v3722_v63, %v3706_v26  ;;  %v3513_v47 = vrot.slane %v8789_v17, 4  ;;  %v8798_v14 = vmul.f32 %v5488_v40, %v8572_v6  ;;  %v3742_v13 = vmul.f32 %v3726_v54, %v3726_v54  ;;  %v10000_v40 = vld [vmem:[#allocation6_spill] sm:$0xff] }
 0x3c6   :  { %v3746_v50 = vmul.f32 %v3730_v60, %v3730_v60  ;;  %5493 = vpow2.f32 %v3489_v5  ;;  %v3152_v32 = vmul.f32 %v8733_v36, %v9998_v48  ;;  %v3750_v12 = vmul.f32 %v3734_v56, %v3734_v56 }
 0x3c7   :  { %9997 = vst [vmem:[#allocation59_spill] sm:$0xff] %v8798_v14  ;;  %v8802_v9 = vpop.eup %5489  ;;  %v3754_v8 = vmul.f32 %v3738_v44, %v3738_v44  ;;  %5495 = vpow2.f32 %v3497_v49  ;;  %v3514_v10 = vadd.f32 %v8789_v17, %v3513_v47  ;;  %v3156_v6 = vadd.f32 %v8759_v43, %v8741_v7  ;;  %v10002_v43 = vld [vmem:[#allocation45_spill] sm:$0xff] }
 0x3c8   :  { %v3760_v28 = vadd.f32 %v3746_v50, %v3742_v13  ;;  %v3545_v15 = vrot.slane %v8802_v9, 4  ;;  %v3160_v57 = vadd.f32 %v3144_v58, %v8745_v21  ;;  %v3164_v18 = vadd.f32 %v3148_v37, %v8750_v62  ;;  %v10003_v62 = vld [vmem:[#allocation42_spill] sm:$0xff] }
 0x3c9   :  { %v3515_v46 = vrot.slane %v3514_v10, 2  ;;  %v3168_v59 = vadd.f32 %v3152_v32, %v8755_v25  ;;  %v3172_v24 = vmul.f32 %v8737_v30, %v9999_v23  ;;  %v3176_v34 = vmul.f32 %v8737_v30, %v10000_v40 }
 0x3ca   :  { %v3761_v11 = vadd.f32 %v3760_v28, %v3750_v12  ;;  %v3546_v55 = vadd.f32 %v8802_v9, %v3545_v15  ;;  %v3180_v42 = vmul.f32 %v8737_v30, %v10001_v39  ;;  %v3184_v21 = vmul.f32 %v8737_v30, %v10002_v43  ;;  %v10005_v15 = vld [vmem:[#allocation54_spill] sm:$0xff] }
 0x3cb   :  { %v3516_v7 = vadd.f32 %v3515_v46, %v3514_v10  ;;  %v3188_v58 = vadd.f32 %v3172_v24, %v3156_v6  ;;  %v3204_v25 = vmul.f32 %v8798_v14, %v10003_v62  ;;  %v3192_v53 = vadd.f32 %v3176_v34, %v3160_v57  ;;  %v10006_v6 = vld [vmem:[#allocation57_spill] sm:$0xff] }
 0x3cc   :  { %v3762_v52 = vadd.f32 %v3761_v11, %v3754_v8  ;;  %v3547_v26 = vrot.slane %v3546_v55, 2  ;;  %v3196_v63 = vadd.f32 %v3180_v42, %v3164_v18  ;;  %v3200_v10 = vadd.f32 %v3184_v21, %v3168_v59  ;;  %v10004_v8 = vld [vmem:[#allocation52_spill] sm:$0xff] }
 0x3cd   :  { %v5492_v37 = vpop.eup %5491  ;;  %v3517_v32 = vrot.slane %v3516_v7, 1  ;;  %v3208_v28 = vmul.f32 %v8798_v14, %v10004_v8  ;;  %v3220_v57 = vadd.f32 %v3204_v25, %v3188_v58 }
 0x3ce   :  { %v8823_v5 = vmul.f32 %v5492_v37, %v8707_v31  ;;  %v8826_v49 = vmul.f32 %v5492_v37, %v8710_v19  ;;  %v8829_v47 = vmul.f32 %v5492_v37, %v8713_v1  ;;  %v8832_v13 = vmul.f32 %v5492_v37, %v8716_v27 }
 0x3cf   :  { %v3770_v50 = vadd.f32 0.0001, %v3762_v52  ;;  %v3548_v12 = vadd.f32 %v3547_v26, %v3546_v55  ;;  %v3212_v31 = vmul.f32 %v8798_v14, %v10005_v15  ;;  %v3216_v19 = vmul.f32 %v8798_v14, %v10006_v6 }
 0x3d0   :  { %v8840_v46 = vpop.eup %5493  ;;  %v3518_v11 = vadd.f32 %v3517_v32, %v3516_v7  ;;  %v3224_v21 = vadd.f32 %v3208_v28, %v3192_v53  ;;  %v3236_v52 = vmul.f32 %v3220_v57, %v3220_v57 }
 0x3d1   :  { %5497 = vrsqrt.f32 %v3770_v50  ;;  %v8842_v1 = vpop.eup %5495  ;;  %v8844_v27 = vmul.f32 %v3770_v50, %v3726_v54  ;;  %v8846_v18 = vmul.f32 %v3770_v50, %v3730_v60  ;;  %v8848_v59 = vmul.f32 %v3770_v50, %v3734_v56 }
 0x3d2   :  { %v8850_v24 = vmul.f32 %v3770_v50, %v3738_v44  ;;  %v3549_v55 = vrot.slane %v3548_v12, 1  ;;  %v3577_v34 = vrot.slane %v8840_v46, 4  ;;  %v3609_v42 = vrot.slane %v8842_v1, 4 }
 0x3d3   :  { %v3228_v58 = vadd.f32 %v3212_v31, %v3196_v63  ;;  %v3232_v25 = vadd.f32 %v3216_v19, %v3200_v10  ;;  %5499 = vrcp.f32 %v3518_v11  ;;  %v3240_v56 = vmul.f32 %v3224_v21, %v3224_v21 }
 0x3d4   :  { %v3550_v37 = vadd.f32 %v3549_v55, %v3548_v12  ;;  %v3578_v54 = vadd.f32 %v8840_v46, %v3577_v34  ;;  %v3610_v60 = vadd.f32 %v8842_v1, %v3609_v42  ;;  %vm3782_vm9 = vcmp.eq.f32.partialorder %v3770_v50, inf }
 0x3d5   :  { %v3244_v7 = vmul.f32 %v3228_v58, %v3228_v58  ;;  %v3258_v32 = vadd.f32 %v3240_v56, %v3236_v52  ;;  %v3248_v36 = vmul.f32 %v3232_v25, %v3232_v25  ;;  %vm3784_vm3 = vcmp.eq.f32.partialorder %v3770_v50, 0.0 }
 0x3d6   :  { %5501 = vrcp.f32 %v3550_v37  ;;  %v3579_v44 = vrot.slane %v3578_v54, 2  ;;  %v3611_v26 = vrot.slane %v3610_v60, 2  ;;  %v3785_v31 = vand.u32 2147483648, %v3770_v50 }
 0x3d7   :  { %v3259_v6 = vadd.f32 %v3258_v32, %v3244_v7  ;;  %v3818_v55 = vadd.f32 1.0, %v3770_v50 }
 0x3d8   :  { %v3580_v14 = vadd.f32 %v3579_v44, %v3578_v54  ;;  %v3612_v30 = vadd.f32 %v3611_v26, %v3610_v60  ;;  %v5556_v44 = vmov 1966171168  }
 0x3d9   :  { %v3260_v12 = vadd.f32 %v3259_v6, %v3248_v36  ;;  %v3858_v26 = vunpack.c.l.s4 %v5556_v44 }
 0x3da   :  { %v3581_v63 = vrot.slane %v3580_v14, 1  ;;  %v3613_v28 = vrot.slane %v3612_v30, 1 }
 0x3db   :  { %v5498_v53 = vpop.eup %5497  ;;  %v8856_v42 = vadd.f32 0.0001, %v3260_v12 }
 0x3dc   :  { %v3781_v10 = vmul.f32 %v5498_v53, %v3770_v50  ;;  %v3582_v19 = vadd.f32 %v3581_v63, %v3580_v14  ;;  %v3614_v34 = vadd.f32 %v3613_v28, %v3612_v30 }
 0x3dd   :  { %v5500_v37 = vpop.eup %5499  ;;  %v8860_v36 = vmul.f32 %v8856_v42, %v3220_v57  ;;  %v8871_v53 = vmul.f32 %v8856_v42, %v3228_v58  ;;  %vm3288_vm11 = vcmp.eq.f32.partialorder %v8856_v42, inf  ;;  %vm3290_vm13 = vcmp.eq.f32.partialorder %v8856_v42, 0.0 }
 0x3de   :  { %v3783_v11 = vsel %vm3782_vm9, %v3770_v50, %v3781_v10  ;;  %5503 = vrcp.f32 %v3582_v19  ;;  %v3531_v60 = vmul.f32 %v5500_v37, %v8789_v17  ;;  %v8868_v17 = vmul.f32 %v8856_v42, %v3224_v21 }
 0x3df   :  { %v3786_v52 = vsel %vm3784_vm3, %v3785_v31, %v3783_v11  ;;  %5505 = vrcp.f32 %v3614_v34  ;;  %v3859_v21 = vunpack.c.0.s8 %v3858_v26  ;;  %v10007_v31 = vld [vmem:[#allocation2_spill] sm:$0xff] }
 0x3e0   :  { %v3822_v54 = vmul.f32 %v3818_v55, %v3786_v52  ;;  %v5502_v56 = vpop.eup %5501  ;;  %v3631_v30 = vmul.f32 %v3531_v60, %v9951_v33  ;;  %v3635_v50 = vmul.f32 %v3531_v60, %v9952_v0  ;;  %v3639_v7 = vmul.f32 %v3531_v60, %v9953_v51 }
 0x3e1   :  { %v3563_v14 = vmul.f32 %v5502_v56, %v8802_v9  ;;  %v3643_v32 = vmul.f32 %v3531_v60, %v9954_v4  ;;  %v8878_v0 = vmul.f32 %v8856_v42, %v3232_v25 }
 0x3e2   :  { %v3826_v6 = vadd.f32 0.0001, %v3822_v54 }
 0x3e3   :  { %v3647_v57 = vmul.f32 %v3563_v14, %v9955_v35  ;;  %v3651_v63 = vmul.f32 %v3563_v14, %v9956_v3  ;;  %v3655_v9 = vmul.f32 %v3563_v14, %v9957_v29  ;;  %v3659_v33 = vmul.f32 %v3563_v14, %v9960_v22 }
 0x3e4   :  { %5507 = vrcp.f32 %v3826_v6  ;;  %v8883_v3 = vsub.s32 %v3859_v21, %v10007_v31 }
 0x3e5   :  { %v3663_v51 = vadd.f32 %v3647_v57, %v3631_v30  ;;  %v3667_v4 = vadd.f32 %v3651_v63, %v3635_v50  ;;  %v3671_v10 = vadd.f32 %v3655_v9, %v3639_v7  ;;  %v3675_v28 = vadd.f32 %v3659_v33, %v3643_v32 }
 0x3e6   :  { %5509 = vrsqrt.f32 %v8856_v42 }
 0x3e8   :  { %v5504_v12 = vpop.eup %5503 }
 0x3e9   :  { %v5506_v58 = vpop.eup %5505  ;;  %v3595_v35 = vmul.f32 %v5504_v12, %v8840_v46  ;;  %v10008_v46 = vld [vmem:[#allocation56_spill] sm:$0xff] }
 0x3ea   :  { %v3627_v29 = vmul.f32 %v5506_v58, %v8842_v1  ;;  %v3312_v58 = vadd.f32 1.0, %v8856_v42 }
 0x3eb   :  { %v3679_v22 = vmul.f32 %v3595_v35, %v9961_v20  ;;  %v3683_v25 = vmul.f32 %v3595_v35, %v9963_v41  ;;  %v3687_v19 = vmul.f32 %v3595_v35, %v9964_v45  ;;  %v3691_v11 = vmul.f32 %v3595_v35, %v9965_v38 }
 0x3ec   :  { %v3711_v55 = vmul.f32 %v3627_v29, %v9966_v2  ;;  %v3715_v34 = vmul.f32 %v3627_v29, %v9967_v61  ;;  %v3719_v37 = vmul.f32 %v3627_v29, %v9968_v16  ;;  %v3723_v52 = vmul.f32 %v3627_v29, %v10008_v46 }
 0x3ed   :  { %v3695_v60 = vadd.f32 %v3679_v22, %v3663_v51  ;;  %v3699_v56 = vadd.f32 %v3683_v25, %v3667_v4  ;;  %v3703_v1 = vadd.f32 %v3687_v19, %v3671_v10  ;;  %v3707_v44 = vadd.f32 %v3691_v11, %v3675_v28 }
 0x3ee   :  { %v5508_v54 = vpop.eup %5507  ;;  %v3291_v28 = vand.u32 2147483648, %v8856_v42 }
 0x3ef   :  { %v3834_v20 = vmul.f32 %v5508_v54, %v8844_v27  ;;  %v3838_v41 = vmul.f32 %v5508_v54, %v8846_v18  ;;  %v3842_v45 = vmul.f32 %v5508_v54, %v8848_v59  ;;  %v3846_v38 = vmul.f32 %v5508_v54, %v8850_v24 }
 0x3f0   :  { %v3727_v2 = vadd.f32 %v3711_v55, %v3695_v60  ;;  %v3731_v26 = vadd.f32 %v3715_v34, %v3699_v56  ;;  %v3735_v61 = vadd.f32 %v3719_v37, %v3703_v1  ;;  %v3739_v6 = vadd.f32 %v3723_v52, %v3707_v44  ;;  %v5510_v7 = vpop.eup %5509 }
 0x3f1   :  { %v3853_v16 = vcombine.low %v8823_v5, %v3834_v20  ;;  %v3854_v14 = vcombine.high %v8823_v5, %v3834_v20  ;;  %v3952_v30 = vcombine.low %v8826_v49, %v3838_v41  ;;  %v3953_v50 = vcombine.high %v8826_v49, %v3838_v41 }
 0x3f2   :  { %v4048_v27 = vcombine.low %v8829_v47, %v3842_v45  ;;  %v4049_v18 = vcombine.high %v8829_v47, %v3842_v45  ;;  %v4144_v59 = vcombine.low %v8832_v13, %v3846_v38  ;;  %v4145_v24 = vcombine.high %v8832_v13, %v3846_v38  ;;  %v10009_v45 = vld [vmem:[#allocation20_spill] sm:$0xff] }
 0x3f3   :  { %v8907_v32 = vrot.slane %v3853_v16, %v8883_v3  ;;  %v8910_v57 = vrot.slane %v3854_v14, %v8883_v3  ;;  %v8913_v5 = vrot.slane %v3952_v30, %v8883_v3  ;;  %v8916_v49 = vrot.slane %v3953_v50, %v8883_v3  ;;  %v10012_v16 = vld [vmem:[#allocation38_spill] sm:$0xff] }
 0x3f4   :  { %v8919_v63 = vrot.slane %v4048_v27, %v8883_v3  ;;  %v8922_v47 = vrot.slane %v4049_v18, %v8883_v3  ;;  %v8925_v13 = vrot.slane %v4144_v59, %v8883_v3  ;;  %v8928_v9 = vrot.slane %v4145_v24, %v8883_v3 }
 0x3f5   :  { %v3743_v33 = vmul.f32 %v3727_v2, %v3727_v2  ;;  %v3747_v51 = vmul.f32 %v3731_v26, %v3731_v26  ;;  %v3287_v4 = vmul.f32 %v5510_v7, %v8856_v42  ;;  %v3751_v10 = vmul.f32 %v3735_v61, %v3735_v61 }
 0x3f6   :  { %v3755_v35 = vmul.f32 %v3739_v6, %v3739_v6 }
 0x3f7   :  { %v3763_v21 = vadd.f32 %v3747_v51, %v3743_v33  ;;  %v3289_v12 = vsel %vm3288_vm11, %v8856_v42, %v3287_v4 }
 0x3f8   :  { %v3292_v29 = vsel %vm3290_vm13, %v3291_v28, %v3289_v12 }
 0x3f9   :  { %v3764_v31 = vadd.f32 %v3763_v21, %v3751_v10  ;;  %v3316_v22 = vmul.f32 %v3312_v58, %v3292_v29 }
 0x3fb   :  { %v3765_v25 = vadd.f32 %v3764_v31, %v3755_v35  ;;  %v3320_v19 = vadd.f32 0.0001, %v3316_v22 }
 0x3fd   :  { %v3771_v11 = vadd.f32 0.0001, %v3765_v25  ;;  %5511 = vrcp.f32 %v3320_v19  ;;  %v10016_v19 = vld [vmem:[#allocation57_spill] sm:$0xff] }
 0x3ff   :  { %5513 = vrsqrt.f32 %v3771_v11  ;;  %v3803_v55 = vmul.f32 %v3771_v11, %v3727_v2  ;;  %v3807_v34 = vmul.f32 %v3771_v11, %v3731_v26  ;;  %v3811_v37 = vmul.f32 %v3771_v11, %v3735_v61  ;;  %v10010_v2 = vld [vmem:[#allocation21_spill] sm:$0xff]  ;;  %v10011_v61 = vld [vmem:[#allocation34_spill] sm:$0xff] }
 0x400   :  { %v3815_v46 = vmul.f32 %v3771_v11, %v3739_v6  ;;  %vm3789_vm5 = vcmp.eq.f32.partialorder %v3771_v11, inf  ;;  %vm3791_vm8 = vcmp.eq.f32.partialorder %v3771_v11, 0.0  ;;  %v3792_v20 = vand.u32 2147483648, %v3771_v11 }
 0x401   :  { %v3819_v41 = vadd.f32 1.0, %v3771_v11 }
 0x407   :  { %v5512_v52 = vpop.eup %5511 }
 0x408   :  { %v3328_v60 = vmul.f32 %v5512_v52, %v8860_v36  ;;  %v3332_v42 = vmul.f32 %v5512_v52, %v8868_v17  ;;  %v3336_v56 = vmul.f32 %v5512_v52, %v8871_v53  ;;  %v3340_v1 = vmul.f32 %v5512_v52, %v8878_v0  ;;  %v10013_v36 = vld [vmem:[#allocation11_spill] sm:$0xff]  ;;  %v10014_v17 = vld [vmem:[#allocation25_spill] sm:$0xff] }
 0x409   :  { %v5514_v54 = vpop.eup %5513  ;;  %v10015_v53 = vld [vmem:[#allocation31_spill] sm:$0xff] }
 0x40a   :  { %v3788_v44 = vmul.f32 %v5514_v54, %v3771_v11  ;;  %v3344_v38 = vmul.f32 %v3328_v60, %v10009_v45  ;;  %v3348_v26 = vmul.f32 %v3332_v42, %v10010_v2  ;;  %v3352_v6 = vmul.f32 %v3336_v56, %v10011_v61 }
 0x40b   :  { %v3356_v14 = vmul.f32 %v3340_v1, %v10012_v16  ;;  %v3376_v50 = vmul.f32 %v3328_v60, %v10013_v36  ;;  %v3380_v27 = vmul.f32 %v3332_v42, %v10014_v17  ;;  %v3384_v18 = vmul.f32 %v3336_v56, %v10015_v53 }
 0x40c   :  { %v3790_v30 = vsel %vm3789_vm5, %v3771_v11, %v3788_v44  ;;  %v3366_v59 = vadd.f32 %v3348_v26, %v3344_v38  ;;  %v3388_v24 = vmul.f32 %v3340_v1, %v9998_v48  ;;  %v3408_v7 = vmul.f32 %v3328_v60, %v9999_v23  ;;  %v10018_v26 = vld [vmem:[#allocation5_spill] sm:$0xff] }
 0x40d   :  { %v3793_v0 = vsel %vm3791_vm8, %v3792_v20, %v3790_v30  ;;  %v3398_v51 = vadd.f32 %v3380_v27, %v3376_v50  ;;  %v3412_v4 = vmul.f32 %v3332_v42, %v10000_v40  ;;  %v3416_v10 = vmul.f32 %v3336_v56, %v10001_v39  ;;  %v10017_v20 = vld [vmem:[#allocation10_spill] sm:$0xff] }
 0x40e   :  { %v3823_v33 = vmul.f32 %v3819_v41, %v3793_v0  ;;  %v3367_v21 = vadd.f32 %v3366_v59, %v3352_v6  ;;  %v3420_v28 = vmul.f32 %v3340_v1, %v10002_v43  ;;  %v3440_v12 = vmul.f32 %v3328_v60, %v10003_v62  ;;  %v10019_v50 = vld [vmem:[#allocation58_spill] sm:$0xff]  ;;  %v10020_v0 = vld [vmem:[#allocation59_spill] sm:$0xff] }
 0x40f   :  { %v3444_v58 = vmul.f32 %v3332_v42, %v10004_v8  ;;  %v3399_v31 = vadd.f32 %v3398_v51, %v3384_v18  ;;  %v3430_v29 = vadd.f32 %v3412_v4, %v3408_v7  ;;  %v3448_v22 = vmul.f32 %v3336_v56, %v10005_v15 }
 0x410   :  { %v3827_v35 = vadd.f32 0.0001, %v3823_v33  ;;  %v3368_v25 = vadd.f32 %v3367_v21, %v3356_v14  ;;  %v3452_v11 = vmul.f32 %v3340_v1, %v10016_v19 }
 0x411   :  { %v3462_v52 = vadd.f32 %v3444_v58, %v3440_v12  ;;  %v3400_v54 = vadd.f32 %v3399_v31, %v3388_v24  ;;  %v3431_v44 = vadd.f32 %v3430_v29, %v3416_v10 }
 0x412   :  { %5515 = vrcp.f32 %v3827_v35  ;;  %v3372_v41 = vadd.f32 %v3368_v25, %v10017_v20 }
 0x413   :  { %v3463_v38 = vadd.f32 %v3462_v52, %v3448_v22  ;;  %v3404_v6 = vadd.f32 %v3400_v54, %v10018_v26  ;;  %v3432_v60 = vadd.f32 %v3431_v44, %v3420_v28 }
 0x414   :  { %v3475_v42 = vmul.f32 1.442695, %v3372_v41 }
 0x415   :  { %v3464_v30 = vadd.f32 %v3463_v38, %v3452_v11  ;;  %v3436_v27 = vadd.f32 %v3432_v60, %v10019_v50  ;;  %v3483_v18 = vmul.f32 1.442695, %v3404_v6 }
 0x416   :  { %5517 = vpow2.f32 %v3475_v42 }
 0x417   :  { %v3468_v56 = vadd.f32 %v3464_v30, %v10020_v0  ;;  %5519 = vpow2.f32 %v3483_v18  ;;  %v3491_v1 = vmul.f32 1.442695, %v3436_v27 }
 0x419   :  { %v3499_v14 = vmul.f32 1.442695, %v3468_v56  ;;  %5521 = vpow2.f32 %v3491_v1 }
 0x41b   :  { %5523 = vpow2.f32 %v3499_v14 }
 0x41c   :  { %v5516_v59 = vpop.eup %5515 }
 0x41d   :  { %v8960_v24 = vmul.f32 %v5516_v59, %v3803_v55  ;;  %v8962_v7 = vmul.f32 %v5516_v59, %v3807_v34  ;;  %v8964_v33 = vmul.f32 %v5516_v59, %v3811_v37  ;;  %v8966_v51 = vmul.f32 %v5516_v59, %v3815_v46 }
 0x420   :  { %v5518_v4 = vpop.eup %5517 }
 0x421   :  { %v5520_v10 = vpop.eup %5519  ;;  %v3519_v21 = vrot.slane %v5518_v4, 4 }
 0x422   :  { %v3551_v28 = vrot.slane %v5520_v10, 4 }
 0x423   :  { %v5522_v12 = vpop.eup %5521  ;;  %v3520_v58 = vadd.f32 %v5518_v4, %v3519_v21 }
 0x424   :  { %v3552_v31 = vadd.f32 %v5520_v10, %v3551_v28  ;;  %v3583_v29 = vrot.slane %v5522_v12, 4 }
 0x425   :  { %v5524_v35 = vpop.eup %5523  ;;  %v3521_v22 = vrot.slane %v3520_v58, 2 }
 0x426   :  { %v3615_v25 = vrot.slane %v5524_v35, 4  ;;  %v3553_v11 = vrot.slane %v3552_v31, 2  ;;  %v3584_v55 = vadd.f32 %v5522_v12, %v3583_v29 }
 0x427   :  { %v3522_v52 = vadd.f32 %v3521_v22, %v3520_v58 }
 0x428   :  { %v3616_v34 = vadd.f32 %v5524_v35, %v3615_v25  ;;  %v3554_v54 = vadd.f32 %v3553_v11, %v3552_v31  ;;  %v3585_v37 = vrot.slane %v3584_v55, 2 }
 0x429   :  { %v3523_v44 = vrot.slane %v3522_v52, 1 }
 0x42a   :  { %v3617_v46 = vrot.slane %v3616_v34, 2  ;;  %v3555_v20 = vrot.slane %v3554_v54, 1  ;;  %v3586_v41 = vadd.f32 %v3585_v37, %v3584_v55 }
 0x42b   :  { %v3524_v38 = vadd.f32 %v3523_v44, %v3522_v52 }
 0x42c   :  { %v3618_v26 = vadd.f32 %v3617_v46, %v3616_v34  ;;  %v3556_v6 = vadd.f32 %v3555_v20, %v3554_v54  ;;  %v3587_v60 = vrot.slane %v3586_v41, 1 }
 0x42d   :  { %5525 = vrcp.f32 %v3524_v38 }
 0x42e   :  { %v3619_v30 = vrot.slane %v3618_v26, 1  ;;  %5527 = vrcp.f32 %v3556_v6  ;;  %v3588_v42 = vadd.f32 %v3587_v60, %v3586_v41 }
 0x430   :  { %v3620_v50 = vadd.f32 %v3619_v30, %v3618_v26  ;;  %5529 = vrcp.f32 %v3588_v42 }
 0x432   :  { %5531 = vrcp.f32 %v3620_v50 }
 0x437   :  { %v5526_v27 = vpop.eup %5525 }
 0x438   :  { %v5528_v18 = vpop.eup %5527  ;;  %v3532_v0 = vmul.f32 %v5526_v27, %v5518_v4 }
 0x439   :  { %v3564_v56 = vmul.f32 %v5528_v18, %v5520_v10 }
 0x43a   :  { %v5530_v1 = vpop.eup %5529  ;;  %v3632_v14 = vmul.f32 %v3532_v0, %v10009_v45  ;;  %v3636_v59 = vmul.f32 %v3532_v0, %v10010_v2  ;;  %v3640_v21 = vmul.f32 %v3532_v0, %v10011_v61  ;;  %v3644_v28 = vmul.f32 %v3532_v0, %v10012_v16 }
 0x43b   :  { %v3596_v31 = vmul.f32 %v5530_v1, %v5522_v12  ;;  %v3648_v29 = vmul.f32 %v3564_v56, %v10013_v36  ;;  %v3652_v22 = vmul.f32 %v3564_v56, %v10014_v17  ;;  %v3656_v25 = vmul.f32 %v3564_v56, %v10015_v53 }
 0x43c   :  { %v5532_v58 = vpop.eup %5531  ;;  %v3660_v4 = vmul.f32 %v3564_v56, %v9998_v48 }
 0x43d   :  { %v3628_v11 = vmul.f32 %v5532_v58, %v5524_v35  ;;  %v3664_v10 = vadd.f32 %v3648_v29, %v3632_v14  ;;  %v3668_v55 = vadd.f32 %v3652_v22, %v3636_v59  ;;  %v3672_v45 = vadd.f32 %v3656_v25, %v3640_v21 }
 0x43e   :  { %v3680_v2 = vmul.f32 %v3596_v31, %v9999_v23  ;;  %v3676_v52 = vadd.f32 %v3660_v4, %v3644_v28  ;;  %v3684_v61 = vmul.f32 %v3596_v31, %v10000_v40  ;;  %v3688_v16 = vmul.f32 %v3596_v31, %v10001_v39 }
 0x43f   :  { %v3692_v12 = vmul.f32 %v3596_v31, %v10002_v43  ;;  %v3712_v17 = vmul.f32 %v3628_v11, %v10003_v62  ;;  %v3716_v53 = vmul.f32 %v3628_v11, %v10004_v8  ;;  %v3720_v35 = vmul.f32 %v3628_v11, %v10005_v15 }
 0x440   :  { %v3696_v36 = vadd.f32 %v3680_v2, %v3664_v10  ;;  %v3700_v48 = vadd.f32 %v3684_v61, %v3668_v55  ;;  %v3704_v34 = vadd.f32 %v3688_v16, %v3672_v45  ;;  %v3724_v37 = vmul.f32 %v3628_v11, %v10016_v19 }
 0x441   :  { %v3708_v54 = vadd.f32 %v3692_v12, %v3676_v52  ;;  %v10021_v31 = vlaneseq }
 0x442   :  { %v3728_v23 = vadd.f32 %v3712_v17, %v3696_v36  ;;  %v3732_v44 = vadd.f32 %v3716_v53, %v3700_v48  ;;  %v3736_v46 = vadd.f32 %v3720_v35, %v3704_v34 }
 0x443   :  { %v3740_v40 = vadd.f32 %v3724_v37, %v3708_v54  ;;  %vm8985_vm12 = vcmp.lt.s32.totalorder %v10021_v31, 512 }
 0x444   :  { %v3744_v20 = vmul.f32 %v3728_v23, %v3728_v23  ;;  %v3748_v39 = vmul.f32 %v3732_v44, %v3732_v44  ;;  %v3752_v41 = vmul.f32 %v3736_v46, %v3736_v46 }
 0x445   :  { %v3756_v38 = vmul.f32 %v3740_v40, %v3740_v40 }
 0x446   :  { %v3766_v43 = vadd.f32 %v3748_v39, %v3744_v20 }
 0x448   :  { %v3767_v26 = vadd.f32 %v3766_v43, %v3752_v41 }
 0x44a   :  { %v3768_v62 = vadd.f32 %v3767_v26, %v3756_v38 }
 0x44c   :  { %v3772_v6 = vadd.f32 0.0001, %v3768_v62 }
 0x44e   :  { %5533 = vrsqrt.f32 %v3772_v6  ;;  %v3804_v8 = vmul.f32 %v3772_v6, %v3728_v23  ;;  %v3808_v15 = vmul.f32 %v3772_v6, %v3732_v44  ;;  %v3812_v60 = vmul.f32 %v3772_v6, %v3736_v46 }
 0x44f   :  { %v3816_v30 = vmul.f32 %v3772_v6, %v3740_v40  ;;  %vm3796_vm15 = vcmp.eq.f32.partialorder %v3772_v6, inf  ;;  %v3799_v19 = vand.u32 2147483648, %v3772_v6  ;;  %vm3798_vm7 = vcmp.eq.f32.partialorder %v3772_v6, 0.0 }
 0x450   :  { %v3820_v18 = vadd.f32 1.0, %v3772_v6 }
 0x458   :  { %v5534_v42 = vpop.eup %5533 }
 0x459   :  { %v3795_v50 = vmul.f32 %v5534_v42, %v3772_v6 }
 0x45b   :  { %v3797_v27 = vsel %vm3796_vm15, %v3772_v6, %v3795_v50 }
 0x45c   :  { %v3800_v0 = vsel %vm3798_vm7, %v3799_v19, %v3797_v27 }
 0x45d   :  { %v3824_v56 = vmul.f32 %v3820_v18, %v3800_v0 }
 0x45f   :  { %v3828_v1 = vadd.f32 0.0001, %v3824_v56 }
 0x461   :  { %5535 = vrcp.f32 %v3828_v1 }
 0x46b   :  { %v5536_v14 = vpop.eup %5535 }
 0x46c   :  { %v3836_v59 = vmul.f32 %v5536_v14, %v3804_v8  ;;  %v3840_v21 = vmul.f32 %v5536_v14, %v3808_v15  ;;  %v3844_v28 = vmul.f32 %v5536_v14, %v3812_v60  ;;  %v3848_v58 = vmul.f32 %v5536_v14, %v3816_v30 }
 0x46e   :  { %v3855_v22 = vcombine.low %v8960_v24, %v3836_v59  ;;  %v3856_v25 = vcombine.high %v8960_v24, %v3836_v59  ;;  %v3954_v11 = vcombine.low %v8962_v7, %v3840_v21  ;;  %v3955_v4 = vcombine.high %v8962_v7, %v3840_v21 }
 0x46f   :  { %v4050_v10 = vcombine.low %v8964_v33, %v3844_v28  ;;  %v4051_v55 = vcombine.high %v8964_v33, %v3844_v28  ;;  %v4146_v45 = vcombine.low %v8966_v51, %v3848_v58  ;;  %v4147_v2 = vcombine.high %v8966_v51, %v3848_v58 }
 0x470   :  { %v3877_v52 = vrot.slane %v3855_v22, %v8883_v3  ;;  %v3884_v61 = vrot.slane %v3856_v25, %v8883_v3  ;;  %v3976_v16 = vrot.slane %v3954_v11, %v8883_v3  ;;  %v3983_v24 = vrot.slane %v3955_v4, %v8883_v3 }
 0x471   :  { %v4072_v12 = vrot.slane %v4050_v10, %v8883_v3  ;;  %v4079_v7 = vrot.slane %v4051_v55, %v8883_v3  ;;  %v4168_v36 = vrot.slane %v4146_v45, %v8883_v3  ;;  %v4175_v33 = vrot.slane %v4147_v2, %v8883_v3 }
 0x472   :  { %v3885_v17 = vcombine.low %v8907_v32, %v3877_v52  ;;  %v3886_v51 = vcombine.high %v8907_v32, %v3877_v52  ;;  %v3887_v53 = vcombine.low %v8910_v57, %v3884_v61  ;;  %v3888_v35 = vcombine.high %v8910_v57, %v3884_v61 }
 0x473   :  { %v3984_v48 = vcombine.low %v8913_v5, %v3976_v16  ;;  %v3985_v34 = vcombine.high %v8913_v5, %v3976_v16  ;;  %v3986_v54 = vcombine.low %v8916_v49, %v3983_v24  ;;  %v3987_v37 = vcombine.high %v8916_v49, %v3983_v24 }
 0x474   :  { %v3895_v23 = vrot.slane %v3885_v17, %v8883_v3  ;;  %v3902_v44 = vrot.slane %v3887_v53, %v8883_v3  ;;  %v3909_v46 = vrot.slane %v3886_v51, %v8883_v3  ;;  %v3916_v32 = vrot.slane %v3888_v35, %v8883_v3 }
 0x475   :  { %v3994_v40 = vrot.slane %v3984_v48, %v8883_v3  ;;  %v4001_v57 = vrot.slane %v3986_v54, %v8883_v3  ;;  %v4008_v20 = vrot.slane %v3985_v34, %v8883_v3  ;;  %v4015_v5 = vrot.slane %v3987_v37, %v8883_v3 }
 0x476   :  { %v3917_v39 = vcombine.high %v3895_v23, %v3895_v23  ;;  %v3918_v41 = vcombine.high %v3902_v44, %v3902_v44  ;;  %v3919_v43 = vcombine.high %v3909_v46, %v3909_v46  ;;  %v3920_v49 = vcombine.high %v3916_v32, %v3916_v32  ;;  %3933 = vst.msk [vmem:[%s9199_s2] ss:$4 sm:$0xf] %vm8985_vm12, %v3895_v23 }
 0x477   :  { %4300 = vst.msk [vmem:[%s9199_s2 + $0x10] ss:$4 sm:$0xf] %vm8985_vm12, %v3909_v46  ;;  %4303 = vst.msk [vmem:[%s9199_s2 + $0x40] ss:$4 sm:$0xf] %vm8985_vm12, %v3902_v44  ;;  %v4016_v38 = vcombine.high %v3994_v40, %v3994_v40  ;;  %v4017_v26 = vcombine.high %v4001_v57, %v4001_v57  ;;  %v4018_v62 = vcombine.high %v4008_v20, %v4008_v20 }
 0x478   :  { %4304 = vst.msk [vmem:[%s9199_s2 + $0x50] ss:$4 sm:$0xf] %vm8985_vm12, %v3916_v32  ;;  %v4019_v6 = vcombine.high %v4015_v5, %v4015_v5  ;;  %4307 = vst.msk [vmem:[%s9199_s2 + $0x1] ss:$4 sm:$0xf] %vm8985_vm12, %v3994_v40  ;;  %v4080_v8 = vcombine.low %v8919_v63, %v4072_v12  ;;  %v4081_v15 = vcombine.high %v8919_v63, %v4072_v12 }
 0x479   :  { %4308 = vst.msk [vmem:[%s9199_s2 + $0x11] ss:$4 sm:$0xf] %vm8985_vm12, %v4008_v20  ;;  %4311 = vst.msk [vmem:[%s9199_s2 + $0x41] ss:$4 sm:$0xf] %vm8985_vm12, %v4001_v57  ;;  %v4082_v60 = vcombine.low %v8922_v47, %v4079_v7  ;;  %v4083_v30 = vcombine.high %v8922_v47, %v4079_v7  ;;  %v4176_v63 = vcombine.low %v8925_v13, %v4168_v36 }
 0x47a   :  { %4312 = vst.msk [vmem:[%s9199_s2 + $0x51] ss:$4 sm:$0xf] %vm8985_vm12, %v4015_v5  ;;  %4301 = vst.msk [vmem:[%s9199_s2 + $0x20] ss:$4 sm:$0xf] %vm8985_vm12, %v3917_v39  ;;  %v4177_v47 = vcombine.high %v8925_v13, %v4168_v36  ;;  %v4178_v42 = vcombine.low %v8928_v9, %v4175_v33  ;;  %v4179_v50 = vcombine.high %v8928_v9, %v4175_v33 }
 0x47b   :  { %4302 = vst.msk [vmem:[%s9199_s2 + $0x30] ss:$4 sm:$0xf] %vm8985_vm12, %v3919_v43  ;;  %4305 = vst.msk [vmem:[%s9199_s2 + $0x60] ss:$4 sm:$0xf] %vm8985_vm12, %v3918_v41  ;;  %v4090_v19 = vrot.slane %v4080_v8, %v8883_v3  ;;  %v4097_v27 = vrot.slane %v4082_v60, %v8883_v3  ;;  %v4104_v18 = vrot.slane %v4081_v15, %v8883_v3 }
 0x47c   :  { %4306 = vst.msk [vmem:[%s9199_s2 + $0x70] ss:$4 sm:$0xf] %vm8985_vm12, %v3920_v49  ;;  %4309 = vst.msk [vmem:[%s9199_s2 + $0x21] ss:$4 sm:$0xf] %vm8985_vm12, %v4016_v38  ;;  %v4111_v0 = vrot.slane %v4083_v30, %v8883_v3  ;;  %v4186_v56 = vrot.slane %v4176_v63, %v8883_v3  ;;  %v4193_v1 = vrot.slane %v4178_v42, %v8883_v3 }
 0x47d   :  { %4310 = vst.msk [vmem:[%s9199_s2 + $0x31] ss:$4 sm:$0xf] %vm8985_vm12, %v4018_v62  ;;  %4313 = vst.msk [vmem:[%s9199_s2 + $0x61] ss:$4 sm:$0xf] %vm8985_vm12, %v4017_v26  ;;  %v4200_v14 = vrot.slane %v4177_v47, %v8883_v3  ;;  %v4207_v13 = vrot.slane %v4179_v50, %v8883_v3  ;;  %v4112_v59 = vcombine.high %v4090_v19, %v4090_v19 }
 0x47e   :  { %4314 = vst.msk [vmem:[%s9199_s2 + $0x71] ss:$4 sm:$0xf] %vm8985_vm12, %v4019_v6  ;;  %v4113_v21 = vcombine.high %v4097_v27, %v4097_v27  ;;  %v4114_v28 = vcombine.high %v4104_v18, %v4104_v18  ;;  %v4115_v9 = vcombine.high %v4111_v0, %v4111_v0  ;;  %4315 = vst.msk [vmem:[%s9199_s2 + $0x2] ss:$4 sm:$0xf] %vm8985_vm12, %v4090_v19 }
 0x47f   :  { %4316 = vst.msk [vmem:[%s9199_s2 + $0x12] ss:$4 sm:$0xf] %vm8985_vm12, %v4104_v18  ;;  %4319 = vst.msk [vmem:[%s9199_s2 + $0x42] ss:$4 sm:$0xf] %vm8985_vm12, %v4097_v27  ;;  %v4208_v3 = vcombine.high %v4186_v56, %v4186_v56  ;;  %v4209_v58 = vcombine.high %v4193_v1, %v4193_v1  ;;  %v4210_v31 = vcombine.high %v4200_v14, %v4200_v14 }
 0x480   :  { %4320 = vst.msk [vmem:[%s9199_s2 + $0x52] ss:$4 sm:$0xf] %vm8985_vm12, %v4111_v0  ;;  %v4211_v22 = vcombine.high %v4207_v13, %v4207_v13  ;;  %4323 = vst.msk [vmem:[%s9199_s2 + $0x3] ss:$4 sm:$0xf] %vm8985_vm12, %v4186_v56 }
 0x481   :  { %4324 = vst.msk [vmem:[%s9199_s2 + $0x13] ss:$4 sm:$0xf] %vm8985_vm12, %v4200_v14  ;;  %4327 = vst.msk [vmem:[%s9199_s2 + $0x43] ss:$4 sm:$0xf] %vm8985_vm12, %v4193_v1 }
 0x482   :  { %4328 = vst.msk [vmem:[%s9199_s2 + $0x53] ss:$4 sm:$0xf] %vm8985_vm12, %v4207_v13  ;;  %4317 = vst.msk [vmem:[%s9199_s2 + $0x22] ss:$4 sm:$0xf] %vm8985_vm12, %v4112_v59 }
 0x483   :  { %4318 = vst.msk [vmem:[%s9199_s2 + $0x32] ss:$4 sm:$0xf] %vm8985_vm12, %v4114_v28  ;;  %4321 = vst.msk [vmem:[%s9199_s2 + $0x62] ss:$4 sm:$0xf] %vm8985_vm12, %v4113_v21 }
 0x484   :  { %4322 = vst.msk [vmem:[%s9199_s2 + $0x72] ss:$4 sm:$0xf] %vm8985_vm12, %v4115_v9  ;;  %4325 = vst.msk [vmem:[%s9199_s2 + $0x23] ss:$4 sm:$0xf] %vm8985_vm12, %v4208_v3 }
 0x485   :  { %4326 = vst.msk [vmem:[%s9199_s2 + $0x33] ss:$4 sm:$0xf] %vm8985_vm12, %v4210_v31  ;;  %4329 = vst.msk [vmem:[%s9199_s2 + $0x63] ss:$4 sm:$0xf] %vm8985_vm12, %v4209_v58 }
 0x486   :  { %4330 = vst.msk [vmem:[%s9199_s2 + $0x73] ss:$4 sm:$0xf] %vm8985_vm12, %v4211_v22 }

</bundles_post_ra>
